<compile_context>
chip_gen: v7x
topology: tpu7x:2x2x1
jax: 0.10.0
libtpu: 0.0.40
codegen_flags: <defaults>
</compile_context>

<pallas_src>
import jax
import jax.numpy as jnp
from jax.experimental import pallas as pl
from jax.experimental.pallas import tpu as pltpu


def _leaky(v):
    return jnp.where(v > 0, v, 0.2 * v)


# --------------------------------------------------------------------------
# Fused encoder kernel: TB batch rows per grid step, everything stays in VMEM.
# Row index of every intermediate = time_group * TB + batch_row.
# --------------------------------------------------------------------------
def encoder_kernel(x_ref, w1_ref, b1_ref, w2_ref, b2_ref,
                   w3_ref, b3_ref, w4_ref, b4_ref, o_ref):
    f32 = jnp.float32
    TB = o_ref.shape[0]                 # batch rows handled by this grid step
    N8 = 8 * TB

    xf = x_ref[...]                     # (9*TB, 8): xf[u*TB + b, j] = x_pad[b, 8u + j]
    b1 = b1_ref[...]                    # (1, 64)
    w1 = [w1_ref[k:k + 1, :] for k in range(4)]      # 4 x (1, 64)

    def conv1(t0, t1, t2, t3):          # 4-tap conv + bias + LeakyReLU on the VPU
        return _leaky(t0 * w1[0] + t1 * w1[1] + t2 * w1[2] + t3 * w1[3] + b1)

    col = [xf[:, j:j + 1] for j in range(8)]                        # (9*TB, 1)
    hi5, hi6, hi7 = xf[:N8, 5:6], xf[:N8, 6:7], xf[:N8, 7:8]        # groups u=0..7
    nx0, nx1, nx2 = xf[TB:, 0:1], xf[TB:, 1:2], xf[TB:, 2:3]        # next group

    # ---- block 1: Conv1d(1,64,k=4,p=2), phase-split by position mod 8 ------
    c0 = conv1(col[0], col[1], col[2], col[3])       # (9*TB, 64)
    c1 = conv1(col[1], col[2], col[3], col[4])
    c2 = conv1(col[2], col[3], col[4], col[5])
    c3 = conv1(col[3], col[4], col[5], col[6])
    c4 = conv1(col[4], col[5], col[6], col[7])
    c5 = conv1(hi5, hi6, hi7, nx0)                   # (8*TB, 64)
    c6 = conv1(hi6, hi7, nx0, nx1)
    c7 = conv1(hi7, nx0, nx1, nx2)

    # ---- block 1 MaxPool(3,2): pool index q = 4u + s, split by s ------------
    q0 = jnp.maximum(jnp.maximum(c0, c1), c2)        # s=0, (9*TB, 64)
    q1 = jnp.maximum(jnp.maximum(c2, c3), c4)        # s=1, (9*TB, 64)
    q2 = jnp.maximum(jnp.maximum(c4[:N8], c5), c6)   # s=2, (8*TB, 64)
    q3 = jnp.maximum(jnp.maximum(c6, c7), c0[TB:])   # s=3, (8*TB, 64)

    # ---- block 2: Conv1d(64,16,k=4,s=2,p=1) on the MXU, even/odd split -----
    b2 = b2_ref[...]                                 # (1, 16)
    mm = lambda a, w: jnp.dot(a, w, preferred_element_type=f32)
    zrow = jnp.zeros((TB, 16), f32)

    # even conv-2 positions t = 2u (u = 0..8); boundary taps are zero-padded
    ze = _leaky(mm(q0, w2_ref[1]) + mm(q1, w2_ref[2]) + b2
                + jnp.concatenate([zrow, mm(q3, w2_ref[0])], axis=0)
                + jnp.concatenate([mm(q2, w2_ref[3]), zrow], axis=0))   # (9*TB,16)
    # odd conv-2 positions t = 2u+1 (u = 0..7)
    zo = _leaky(mm(q1[:N8], w2_ref[0]) + mm(q2, w2_ref[1])
                + mm(q3, w2_ref[2]) + mm(q0[TB:], w2_ref[3]) + b2)      # (8*TB,16)

    # ---- block 2 MaxPool(3,2): y2[p] = max(z[2p], z[2p+1], z[2p+2]) ---------
    y2 = jnp.maximum(jnp.maximum(ze[:N8], zo), ze[TB:])                 # (8*TB,16)

    # ---- MLP: pack the 8 time blocks into lanes -> (TB,128) (t-major,
    # c-minor; w3 pre-permuted in the wrapper), then two full MXU matmuls ----
    y2cat = jnp.concatenate([y2[p * TB:(p + 1) * TB, :] for p in range(8)],
                            axis=1)                                     # (TB, 128)
    h = _leaky(mm(y2cat, w3_ref[...]) + b3_ref[...])                    # (TB, 32)
    o_ref[...] = mm(h, w4_ref[...]) + b4_ref[...]                       # (TB, 16)


# --------------------------------------------------------------------------
# Wrapper: batch-tiled single fused pallas_call
# --------------------------------------------------------------------------
def _choose_tb(batch, tb_max=128):
    """Batch rows per grid step: multiple of 8, <= tb_max, >=2 steps if possible."""
    tb = min(tb_max, max(8, -(-batch // 2)))
    return -(-tb // 8) * 8


def encoder_forward(x, params, tb_max=128):
    """x: (B, 1, 68) float32 -> (B, 1, 16) float32 (PyTorch semantics)."""
    w1, b1, w2, b2, w3, b3, w4, b4 = params
    B = x.shape[0]
    L = x.shape[-1]
    assert L == 68, "Linear(128,32) requires input length 68 (flatten = 16ch * 8)"

    TB = _choose_tb(B, tb_max)
    G = -(-B // TB)                     # grid steps
    Bp = G * TB                         # padded batch

    # Input layout plumbing (x only; all intermediates stay on-chip):
    # row = g*9*TB + u*TB + b_local, col j = x_pad[b, 8u + j]
    xg = jnp.pad(x.reshape(B, L), ((0, Bp - B), (2, 2)))                # (Bp, 72)
    xg = xg.reshape(G, TB, 9, 8).transpose(0, 2, 1, 3).reshape(G * 9 * TB, 8)

    # Weight layout plumbing (done once, outside the grid loop).
    w1m = jnp.transpose(w1[:, 0, :], (1, 0))                            # (4, 64)
    w2r = jnp.transpose(w2, (2, 1, 0))                                  # (4, 64, 16)
    # t-major / c-minor flatten: w3q[p*16 + c, j] = w3[j, c*8 + p]
    w3q = jnp.transpose(w3.T.reshape(16, 8, 32), (1, 0, 2)).reshape(128, 32)
    w4m = w4.T                                                          # (32, 16)
    b1r = b1.reshape(1, 64)
    b2r = b2.reshape(1, 16)
    b3r = b3.reshape(1, 32)
    b4r = b4.reshape(1, 16)

    out = pl.pallas_call(
        encoder_kernel,
        out_shape=jax.ShapeDtypeStruct((Bp, 16), jnp.float32),
        grid=(G,),
        in_specs=[
            pl.BlockSpec((9 * TB, 8), lambda g: (g, 0)),       # x (grouped layout)
            pl.BlockSpec((4, 64), lambda g: (0, 0)),           # w1
            pl.BlockSpec((1, 64), lambda g: (0, 0)),           # b1
            pl.BlockSpec((4, 64, 16), lambda g: (0, 0, 0)),    # w2 (per-tap)
            pl.BlockSpec((1, 16), lambda g: (0, 0)),           # b2
            pl.BlockSpec((128, 32), lambda g: (0, 0)),         # w3 (pre-permuted)
            pl.BlockSpec((1, 32), lambda g: (0, 0)),           # b3
            pl.BlockSpec((32, 16), lambda g: (0, 0)),          # w4
            pl.BlockSpec((1, 16), lambda g: (0, 0)),           # b4
        ],
        out_specs=pl.BlockSpec((TB, 16), lambda g: (g, 0)),
        compiler_params=pltpu.CompilerParams(
            dimension_semantics=("parallel",),
            vmem_limit_bytes=32 * 1024 * 1024),
    )(xg, w1m, b1r, w2r, b2r, w3q, b3r, w4m, b4r)

    return out[:B].reshape(B, 1, 16)


# --------------------------------------------------------------------------
# Deterministic parameter init (PyTorch-default-like uniform(-1/sqrt(fan_in), .))
# --------------------------------------------------------------------------
def init_params(key):
    def u(k, shape, fan_in):
        bound = 1.0 / float(fan_in) ** 0.5
        return jax.random.uniform(k, shape, jnp.float32, -bound, bound)

    ks = jax.random.split(key, 8)
    w1 = u(ks[0], (64, 1, 4), 1 * 4)
    b1 = u(ks[1], (64,), 1 * 4)
    w2 = u(ks[2], (16, 64, 4), 64 * 4)
    b2 = u(ks[3], (16,), 64 * 4)
    w3 = u(ks[4], (32, 128), 128)
    b3 = u(ks[5], (32,), 128)
    w4 = u(ks[6], (16, 32), 32)
    b4 = u(ks[7], (16,), 32)
    return (w1, b1, w2, b2, w3, b3, w4, b4)


# --------------------------------------------------------------------------
# Pure-JAX reference (high precision) for sanity checking
# --------------------------------------------------------------------------
def encoder_reference(x, params):
    w1, b1, w2, b2, w3, b3, w4, b4 = params
    dn = ("NCH", "OIH", "NCH")
    hp = jax.lax.Precision.HIGHEST
    y = jax.lax.conv_general_dilated(x, w1, (1,), [(2, 2)],
                                     dimension_numbers=dn, precision=hp)
    y = y + b1[None, :, None]
    y = jnp.where(y > 0, y, 0.2 * y)
    y = jax.lax.reduce_window(y, -jnp.inf, jax.lax.max, (1, 1, 3), (1, 1, 2), "VALID")
    y = jax.lax.conv_general_dilated(y, w2, (2,), [(1, 1)],
                                     dimension_numbers=dn, precision=hp)
    y = y + b2[None, :, None]
    y = jnp.where(y > 0, y, 0.2 * y)
    y = jax.lax.reduce_window(y, -jnp.inf, jax.lax.max, (1, 1, 3), (1, 1, 2), "VALID")
    flat = y.reshape(y.shape[0], -1)                     # (B, 128) channel-major
    h = jnp.dot(flat, w3.T, precision=hp) + b3
    h = jnp.where(h > 0, h, 0.2 * h)
    out = jnp.dot(h, w4.T, precision=hp) + b4
    return out.reshape(-1, 1, 16)


if __name__ == "__main__":
    key = jax.random.PRNGKey(0)
    k_x, k_p = jax.random.split(key)

    B = 2
    x = jax.random.normal(k_x, (B, 1, 68), dtype=jnp.float32)   # length 68 -> flatten 128
    params = init_params(k_p)

    fwd = jax.jit(encoder_forward)
    out = jax.block_until_ready(fwd(x, params))
    assert out.shape == (B, 1, 16), out.shape

    ref = jax.block_until_ready(encoder_reference(x, params))
    max_err = float(jnp.max(jnp.abs(out - ref)))
    # All-f32 path typically agrees to ~1e-5; margin left for MXU f32 pass-count
    # differences across TPU generations.
    assert jnp.allclose(out, ref, atol=2e-3, rtol=2e-3), max_err

    print("KERNEL_OK")
</pallas_src>

<mosaic_0001>
module attributes {stable_mosaic.version = 11 : i64} {
  func.func @encoder_kernel(%arg0: i32, %arg1: memref<72x8xf32, #tpu.memory_space<vmem>>, %arg2: memref<4x64xf32, #tpu.memory_space<vmem>>, %arg3: memref<1x64xf32, #tpu.memory_space<vmem>>, %arg4: memref<4x64x16xf32, #tpu.memory_space<vmem>>, %arg5: memref<1x16xf32, #tpu.memory_space<vmem>>, %arg6: memref<128x32xf32, #tpu.memory_space<vmem>>, %arg7: memref<1x32xf32, #tpu.memory_space<vmem>>, %arg8: memref<32x16xf32, #tpu.memory_space<vmem>>, %arg9: memref<1x16xf32, #tpu.memory_space<vmem>>, %arg10: memref<8x16xf32, #tpu.memory_space<vmem>>) attributes {dimension_semantics = [#tpu.dimension_semantics<parallel>], iteration_bounds = array<i64: 1>, scalar_prefetch = 0 : i64, scratch_operands = 0 : i64, tpu.core_type = #tpu.core_type<tc>, window_params = [{transform_indices = @transform_0, window_bounds = array<i64: 72, 8>}, {pipeline_mode = #tpu.pipeline_mode<synchronous>, transform_indices = @transform_1, window_bounds = array<i64: 4, 64>}, {pipeline_mode = #tpu.pipeline_mode<synchronous>, transform_indices = @transform_2, window_bounds = array<i64: 1, 64>}, {pipeline_mode = #tpu.pipeline_mode<synchronous>, transform_indices = @transform_3, window_bounds = array<i64: 4, 64, 16>}, {pipeline_mode = #tpu.pipeline_mode<synchronous>, transform_indices = @transform_4, window_bounds = array<i64: 1, 16>}, {pipeline_mode = #tpu.pipeline_mode<synchronous>, transform_indices = @transform_5, window_bounds = array<i64: 128, 32>}, {pipeline_mode = #tpu.pipeline_mode<synchronous>, transform_indices = @transform_6, window_bounds = array<i64: 1, 32>}, {pipeline_mode = #tpu.pipeline_mode<synchronous>, transform_indices = @transform_7, window_bounds = array<i64: 32, 16>}, {pipeline_mode = #tpu.pipeline_mode<synchronous>, transform_indices = @transform_8, window_bounds = array<i64: 1, 16>}, {transform_indices = @transform_9, window_bounds = array<i64: 8, 16>}]} {
    %c0 = arith.constant 0 : index
    %c0_0 = arith.constant 0 : index
    %0 = vector.load %arg1[%c0, %c0_0] : memref<72x8xf32, #tpu.memory_space<vmem>>, vector<72x8xf32>
    %c0_1 = arith.constant 0 : index
    %c0_2 = arith.constant 0 : index
    %1 = vector.load %arg3[%c0_1, %c0_2] : memref<1x64xf32, #tpu.memory_space<vmem>>, vector<1x64xf32>
    %c0_3 = arith.constant 0 : index
    %c0_4 = arith.constant 0 : index
    %2 = vector.load %arg2[%c0_3, %c0_4] : memref<4x64xf32, #tpu.memory_space<vmem>>, vector<1x64xf32>
    %c1 = arith.constant 1 : index
    %c0_5 = arith.constant 0 : index
    %3 = vector.load %arg2[%c1, %c0_5] : memref<4x64xf32, #tpu.memory_space<vmem>>, vector<1x64xf32>
    %c2 = arith.constant 2 : index
    %c0_6 = arith.constant 0 : index
    %4 = vector.load %arg2[%c2, %c0_6] : memref<4x64xf32, #tpu.memory_space<vmem>>, vector<1x64xf32>
    %c3 = arith.constant 3 : index
    %c0_7 = arith.constant 0 : index
    %5 = vector.load %arg2[%c3, %c0_7] : memref<4x64xf32, #tpu.memory_space<vmem>>, vector<1x64xf32>
    %6 = vector.extract_strided_slice %0 {offsets = [0, 0], sizes = [72, 1], strides = [1, 1]} : vector<72x8xf32> to vector<72x1xf32>
    %7 = vector.extract_strided_slice %0 {offsets = [0, 1], sizes = [72, 1], strides = [1, 1]} : vector<72x8xf32> to vector<72x1xf32>
    %8 = vector.extract_strided_slice %0 {offsets = [0, 2], sizes = [72, 1], strides = [1, 1]} : vector<72x8xf32> to vector<72x1xf32>
    %9 = vector.extract_strided_slice %0 {offsets = [0, 3], sizes = [72, 1], strides = [1, 1]} : vector<72x8xf32> to vector<72x1xf32>
    %10 = vector.extract_strided_slice %0 {offsets = [0, 4], sizes = [72, 1], strides = [1, 1]} : vector<72x8xf32> to vector<72x1xf32>
    %11 = vector.extract_strided_slice %0 {offsets = [0, 5], sizes = [72, 1], strides = [1, 1]} : vector<72x8xf32> to vector<72x1xf32>
    %12 = vector.extract_strided_slice %0 {offsets = [0, 6], sizes = [72, 1], strides = [1, 1]} : vector<72x8xf32> to vector<72x1xf32>
    %13 = vector.extract_strided_slice %0 {offsets = [0, 7], sizes = [72, 1], strides = [1, 1]} : vector<72x8xf32> to vector<72x1xf32>
    %14 = vector.extract_strided_slice %0 {offsets = [0, 5], sizes = [64, 1], strides = [1, 1]} : vector<72x8xf32> to vector<64x1xf32>
    %15 = vector.extract_strided_slice %0 {offsets = [0, 6], sizes = [64, 1], strides = [1, 1]} : vector<72x8xf32> to vector<64x1xf32>
    %16 = vector.extract_strided_slice %0 {offsets = [0, 7], sizes = [64, 1], strides = [1, 1]} : vector<72x8xf32> to vector<64x1xf32>
    %17 = vector.extract_strided_slice %0 {offsets = [8, 0], sizes = [64, 1], strides = [1, 1]} : vector<72x8xf32> to vector<64x1xf32>
    %18 = vector.extract_strided_slice %0 {offsets = [8, 1], sizes = [64, 1], strides = [1, 1]} : vector<72x8xf32> to vector<64x1xf32>
    %19 = vector.extract_strided_slice %0 {offsets = [8, 2], sizes = [64, 1], strides = [1, 1]} : vector<72x8xf32> to vector<64x1xf32>
    %20 = vector.broadcast %6 : vector<72x1xf32> to vector<72x64xf32>
    %21 = vector.broadcast %2 : vector<1x64xf32> to vector<72x64xf32>
    %22 = arith.mulf %20, %21 : vector<72x64xf32>
    %23 = vector.broadcast %7 : vector<72x1xf32> to vector<72x64xf32>
    %24 = vector.broadcast %3 : vector<1x64xf32> to vector<72x64xf32>
    %25 = arith.mulf %23, %24 : vector<72x64xf32>
    %26 = arith.addf %22, %25 : vector<72x64xf32>
    %27 = vector.broadcast %8 : vector<72x1xf32> to vector<72x64xf32>
    %28 = vector.broadcast %4 : vector<1x64xf32> to vector<72x64xf32>
    %29 = arith.mulf %27, %28 : vector<72x64xf32>
    %30 = arith.addf %26, %29 : vector<72x64xf32>
    %31 = vector.broadcast %9 : vector<72x1xf32> to vector<72x64xf32>
    %32 = vector.broadcast %5 : vector<1x64xf32> to vector<72x64xf32>
    %33 = arith.mulf %31, %32 : vector<72x64xf32>
    %34 = arith.addf %30, %33 : vector<72x64xf32>
    %35 = vector.broadcast %1 : vector<1x64xf32> to vector<72x64xf32>
    %36 = arith.addf %34, %35 : vector<72x64xf32>
    %cst = arith.constant 0.000000e+00 : f32
    %37 = vector.broadcast %cst : f32 to vector<72x64xf32>
    %38 = arith.cmpf ogt, %36, %37 : vector<72x64xf32>
    %cst_8 = arith.constant 2.000000e-01 : f32
    %39 = vector.broadcast %cst_8 : f32 to vector<72x64xf32>
    %40 = arith.mulf %39, %36 : vector<72x64xf32>
    %41 = arith.select %38, %36, %40 : vector<72x64xi1>, vector<72x64xf32>
    %42 = vector.broadcast %7 : vector<72x1xf32> to vector<72x64xf32>
    %43 = vector.broadcast %2 : vector<1x64xf32> to vector<72x64xf32>
    %44 = arith.mulf %42, %43 : vector<72x64xf32>
    %45 = vector.broadcast %8 : vector<72x1xf32> to vector<72x64xf32>
    %46 = vector.broadcast %3 : vector<1x64xf32> to vector<72x64xf32>
    %47 = arith.mulf %45, %46 : vector<72x64xf32>
    %48 = arith.addf %44, %47 : vector<72x64xf32>
    %49 = vector.broadcast %9 : vector<72x1xf32> to vector<72x64xf32>
    %50 = vector.broadcast %4 : vector<1x64xf32> to vector<72x64xf32>
    %51 = arith.mulf %49, %50 : vector<72x64xf32>
    %52 = arith.addf %48, %51 : vector<72x64xf32>
    %53 = vector.broadcast %10 : vector<72x1xf32> to vector<72x64xf32>
    %54 = vector.broadcast %5 : vector<1x64xf32> to vector<72x64xf32>
    %55 = arith.mulf %53, %54 : vector<72x64xf32>
    %56 = arith.addf %52, %55 : vector<72x64xf32>
    %57 = vector.broadcast %1 : vector<1x64xf32> to vector<72x64xf32>
    %58 = arith.addf %56, %57 : vector<72x64xf32>
    %cst_9 = arith.constant 0.000000e+00 : f32
    %59 = vector.broadcast %cst_9 : f32 to vector<72x64xf32>
    %60 = arith.cmpf ogt, %58, %59 : vector<72x64xf32>
    %cst_10 = arith.constant 2.000000e-01 : f32
    %61 = vector.broadcast %cst_10 : f32 to vector<72x64xf32>
    %62 = arith.mulf %61, %58 : vector<72x64xf32>
    %63 = arith.select %60, %58, %62 : vector<72x64xi1>, vector<72x64xf32>
    %64 = vector.broadcast %8 : vector<72x1xf32> to vector<72x64xf32>
    %65 = vector.broadcast %2 : vector<1x64xf32> to vector<72x64xf32>
    %66 = arith.mulf %64, %65 : vector<72x64xf32>
    %67 = vector.broadcast %9 : vector<72x1xf32> to vector<72x64xf32>
    %68 = vector.broadcast %3 : vector<1x64xf32> to vector<72x64xf32>
    %69 = arith.mulf %67, %68 : vector<72x64xf32>
    %70 = arith.addf %66, %69 : vector<72x64xf32>
    %71 = vector.broadcast %10 : vector<72x1xf32> to vector<72x64xf32>
    %72 = vector.broadcast %4 : vector<1x64xf32> to vector<72x64xf32>
    %73 = arith.mulf %71, %72 : vector<72x64xf32>
    %74 = arith.addf %70, %73 : vector<72x64xf32>
    %75 = vector.broadcast %11 : vector<72x1xf32> to vector<72x64xf32>
    %76 = vector.broadcast %5 : vector<1x64xf32> to vector<72x64xf32>
    %77 = arith.mulf %75, %76 : vector<72x64xf32>
    %78 = arith.addf %74, %77 : vector<72x64xf32>
    %79 = vector.broadcast %1 : vector<1x64xf32> to vector<72x64xf32>
    %80 = arith.addf %78, %79 : vector<72x64xf32>
    %cst_11 = arith.constant 0.000000e+00 : f32
    %81 = vector.broadcast %cst_11 : f32 to vector<72x64xf32>
    %82 = arith.cmpf ogt, %80, %81 : vector<72x64xf32>
    %cst_12 = arith.constant 2.000000e-01 : f32
    %83 = vector.broadcast %cst_12 : f32 to vector<72x64xf32>
    %84 = arith.mulf %83, %80 : vector<72x64xf32>
    %85 = arith.select %82, %80, %84 : vector<72x64xi1>, vector<72x64xf32>
    %86 = vector.broadcast %9 : vector<72x1xf32> to vector<72x64xf32>
    %87 = vector.broadcast %2 : vector<1x64xf32> to vector<72x64xf32>
    %88 = arith.mulf %86, %87 : vector<72x64xf32>
    %89 = vector.broadcast %10 : vector<72x1xf32> to vector<72x64xf32>
    %90 = vector.broadcast %3 : vector<1x64xf32> to vector<72x64xf32>
    %91 = arith.mulf %89, %90 : vector<72x64xf32>
    %92 = arith.addf %88, %91 : vector<72x64xf32>
    %93 = vector.broadcast %11 : vector<72x1xf32> to vector<72x64xf32>
    %94 = vector.broadcast %4 : vector<1x64xf32> to vector<72x64xf32>
    %95 = arith.mulf %93, %94 : vector<72x64xf32>
    %96 = arith.addf %92, %95 : vector<72x64xf32>
    %97 = vector.broadcast %12 : vector<72x1xf32> to vector<72x64xf32>
    %98 = vector.broadcast %5 : vector<1x64xf32> to vector<72x64xf32>
    %99 = arith.mulf %97, %98 : vector<72x64xf32>
    %100 = arith.addf %96, %99 : vector<72x64xf32>
    %101 = vector.broadcast %1 : vector<1x64xf32> to vector<72x64xf32>
    %102 = arith.addf %100, %101 : vector<72x64xf32>
    %cst_13 = arith.constant 0.000000e+00 : f32
    %103 = vector.broadcast %cst_13 : f32 to vector<72x64xf32>
    %104 = arith.cmpf ogt, %102, %103 : vector<72x64xf32>
    %cst_14 = arith.constant 2.000000e-01 : f32
    %105 = vector.broadcast %cst_14 : f32 to vector<72x64xf32>
    %106 = arith.mulf %105, %102 : vector<72x64xf32>
    %107 = arith.select %104, %102, %106 : vector<72x64xi1>, vector<72x64xf32>
    %108 = vector.broadcast %10 : vector<72x1xf32> to vector<72x64xf32>
    %109 = vector.broadcast %2 : vector<1x64xf32> to vector<72x64xf32>
    %110 = arith.mulf %108, %109 : vector<72x64xf32>
    %111 = vector.broadcast %11 : vector<72x1xf32> to vector<72x64xf32>
    %112 = vector.broadcast %3 : vector<1x64xf32> to vector<72x64xf32>
    %113 = arith.mulf %111, %112 : vector<72x64xf32>
    %114 = arith.addf %110, %113 : vector<72x64xf32>
    %115 = vector.broadcast %12 : vector<72x1xf32> to vector<72x64xf32>
    %116 = vector.broadcast %4 : vector<1x64xf32> to vector<72x64xf32>
    %117 = arith.mulf %115, %116 : vector<72x64xf32>
    %118 = arith.addf %114, %117 : vector<72x64xf32>
    %119 = vector.broadcast %13 : vector<72x1xf32> to vector<72x64xf32>
    %120 = vector.broadcast %5 : vector<1x64xf32> to vector<72x64xf32>
    %121 = arith.mulf %119, %120 : vector<72x64xf32>
    %122 = arith.addf %118, %121 : vector<72x64xf32>
    %123 = vector.broadcast %1 : vector<1x64xf32> to vector<72x64xf32>
    %124 = arith.addf %122, %123 : vector<72x64xf32>
    %cst_15 = arith.constant 0.000000e+00 : f32
    %125 = vector.broadcast %cst_15 : f32 to vector<72x64xf32>
    %126 = arith.cmpf ogt, %124, %125 : vector<72x64xf32>
    %cst_16 = arith.constant 2.000000e-01 : f32
    %127 = vector.broadcast %cst_16 : f32 to vector<72x64xf32>
    %128 = arith.mulf %127, %124 : vector<72x64xf32>
    %129 = arith.select %126, %124, %128 : vector<72x64xi1>, vector<72x64xf32>
    %130 = vector.broadcast %14 : vector<64x1xf32> to vector<64x64xf32>
    %131 = vector.broadcast %2 : vector<1x64xf32> to vector<64x64xf32>
    %132 = arith.mulf %130, %131 : vector<64x64xf32>
    %133 = vector.broadcast %15 : vector<64x1xf32> to vector<64x64xf32>
    %134 = vector.broadcast %3 : vector<1x64xf32> to vector<64x64xf32>
    %135 = arith.mulf %133, %134 : vector<64x64xf32>
    %136 = arith.addf %132, %135 : vector<64x64xf32>
    %137 = vector.broadcast %16 : vector<64x1xf32> to vector<64x64xf32>
    %138 = vector.broadcast %4 : vector<1x64xf32> to vector<64x64xf32>
    %139 = arith.mulf %137, %138 : vector<64x64xf32>
    %140 = arith.addf %136, %139 : vector<64x64xf32>
    %141 = vector.broadcast %17 : vector<64x1xf32> to vector<64x64xf32>
    %142 = vector.broadcast %5 : vector<1x64xf32> to vector<64x64xf32>
    %143 = arith.mulf %141, %142 : vector<64x64xf32>
    %144 = arith.addf %140, %143 : vector<64x64xf32>
    %145 = vector.broadcast %1 : vector<1x64xf32> to vector<64x64xf32>
    %146 = arith.addf %144, %145 : vector<64x64xf32>
    %cst_17 = arith.constant 0.000000e+00 : f32
    %147 = vector.broadcast %cst_17 : f32 to vector<64x64xf32>
    %148 = arith.cmpf ogt, %146, %147 : vector<64x64xf32>
    %cst_18 = arith.constant 2.000000e-01 : f32
    %149 = vector.broadcast %cst_18 : f32 to vector<64x64xf32>
    %150 = arith.mulf %149, %146 : vector<64x64xf32>
    %151 = arith.select %148, %146, %150 : vector<64x64xi1>, vector<64x64xf32>
    %152 = vector.broadcast %15 : vector<64x1xf32> to vector<64x64xf32>
    %153 = vector.broadcast %2 : vector<1x64xf32> to vector<64x64xf32>
    %154 = arith.mulf %152, %153 : vector<64x64xf32>
    %155 = vector.broadcast %16 : vector<64x1xf32> to vector<64x64xf32>
    %156 = vector.broadcast %3 : vector<1x64xf32> to vector<64x64xf32>
    %157 = arith.mulf %155, %156 : vector<64x64xf32>
    %158 = arith.addf %154, %157 : vector<64x64xf32>
    %159 = vector.broadcast %17 : vector<64x1xf32> to vector<64x64xf32>
    %160 = vector.broadcast %4 : vector<1x64xf32> to vector<64x64xf32>
    %161 = arith.mulf %159, %160 : vector<64x64xf32>
    %162 = arith.addf %158, %161 : vector<64x64xf32>
    %163 = vector.broadcast %18 : vector<64x1xf32> to vector<64x64xf32>
    %164 = vector.broadcast %5 : vector<1x64xf32> to vector<64x64xf32>
    %165 = arith.mulf %163, %164 : vector<64x64xf32>
    %166 = arith.addf %162, %165 : vector<64x64xf32>
    %167 = vector.broadcast %1 : vector<1x64xf32> to vector<64x64xf32>
    %168 = arith.addf %166, %167 : vector<64x64xf32>
    %cst_19 = arith.constant 0.000000e+00 : f32
    %169 = vector.broadcast %cst_19 : f32 to vector<64x64xf32>
    %170 = arith.cmpf ogt, %168, %169 : vector<64x64xf32>
    %cst_20 = arith.constant 2.000000e-01 : f32
    %171 = vector.broadcast %cst_20 : f32 to vector<64x64xf32>
    %172 = arith.mulf %171, %168 : vector<64x64xf32>
    %173 = arith.select %170, %168, %172 : vector<64x64xi1>, vector<64x64xf32>
    %174 = vector.broadcast %16 : vector<64x1xf32> to vector<64x64xf32>
    %175 = vector.broadcast %2 : vector<1x64xf32> to vector<64x64xf32>
    %176 = arith.mulf %174, %175 : vector<64x64xf32>
    %177 = vector.broadcast %17 : vector<64x1xf32> to vector<64x64xf32>
    %178 = vector.broadcast %3 : vector<1x64xf32> to vector<64x64xf32>
    %179 = arith.mulf %177, %178 : vector<64x64xf32>
    %180 = arith.addf %176, %179 : vector<64x64xf32>
    %181 = vector.broadcast %18 : vector<64x1xf32> to vector<64x64xf32>
    %182 = vector.broadcast %4 : vector<1x64xf32> to vector<64x64xf32>
    %183 = arith.mulf %181, %182 : vector<64x64xf32>
    %184 = arith.addf %180, %183 : vector<64x64xf32>
    %185 = vector.broadcast %19 : vector<64x1xf32> to vector<64x64xf32>
    %186 = vector.broadcast %5 : vector<1x64xf32> to vector<64x64xf32>
    %187 = arith.mulf %185, %186 : vector<64x64xf32>
    %188 = arith.addf %184, %187 : vector<64x64xf32>
    %189 = vector.broadcast %1 : vector<1x64xf32> to vector<64x64xf32>
    %190 = arith.addf %188, %189 : vector<64x64xf32>
    %cst_21 = arith.constant 0.000000e+00 : f32
    %191 = vector.broadcast %cst_21 : f32 to vector<64x64xf32>
    %192 = arith.cmpf ogt, %190, %191 : vector<64x64xf32>
    %cst_22 = arith.constant 2.000000e-01 : f32
    %193 = vector.broadcast %cst_22 : f32 to vector<64x64xf32>
    %194 = arith.mulf %193, %190 : vector<64x64xf32>
    %195 = arith.select %192, %190, %194 : vector<64x64xi1>, vector<64x64xf32>
    %196 = arith.maximumf %41, %63 : vector<72x64xf32>
    %197 = arith.maximumf %196, %85 : vector<72x64xf32>
    %198 = arith.maximumf %85, %107 : vector<72x64xf32>
    %199 = arith.maximumf %198, %129 : vector<72x64xf32>
    %200 = vector.extract_strided_slice %129 {offsets = [0, 0], sizes = [64, 64], strides = [1, 1]} : vector<72x64xf32> to vector<64x64xf32>
    %201 = arith.maximumf %200, %151 : vector<64x64xf32>
    %202 = arith.maximumf %201, %173 : vector<64x64xf32>
    %203 = arith.maximumf %173, %195 : vector<64x64xf32>
    %204 = vector.extract_strided_slice %41 {offsets = [8, 0], sizes = [64, 64], strides = [1, 1]} : vector<72x64xf32> to vector<64x64xf32>
    %205 = arith.maximumf %203, %204 : vector<64x64xf32>
    %c0_23 = arith.constant 0 : index
    %c0_24 = arith.constant 0 : index
    %206 = vector.load %arg5[%c0_23, %c0_24] : memref<1x16xf32, #tpu.memory_space<vmem>>, vector<1x16xf32>
    %cst_25 = arith.constant 0.000000e+00 : f32
    %207 = vector.broadcast %cst_25 : f32 to vector<8x16xf32>
    %c1_26 = arith.constant 1 : index
    %c0_27 = arith.constant 0 : index
    %c0_28 = arith.constant 0 : index
    %208 = vector.load %arg4[%c1_26, %c0_27, %c0_28] : memref<4x64x16xf32, #tpu.memory_space<vmem>>, vector<1x64x16xf32>
    %209 = vector.shape_cast %208 : vector<1x64x16xf32> to vector<64x16xf32>
    %cst_29 = arith.constant dense<0.000000e+00> : vector<72x16xf32>
    %210 = tpu.matmul %197, %209, %cst_29 {dimension_numbers = #tpu.dot_dimension_numbers<[1], [0], [0], [1], [0, 0, 1, 1], [], []>} : vector<72x64xf32>, vector<64x16xf32>, vector<72x16xf32> -> vector<72x16xf32>
    %c2_30 = arith.constant 2 : index
    %c0_31 = arith.constant 0 : index
    %c0_32 = arith.constant 0 : index
    %211 = vector.load %arg4[%c2_30, %c0_31, %c0_32] : memref<4x64x16xf32, #tpu.memory_space<vmem>>, vector<1x64x16xf32>
    %212 = vector.shape_cast %211 : vector<1x64x16xf32> to vector<64x16xf32>
    %cst_33 = arith.constant dense<0.000000e+00> : vector<72x16xf32>
    %213 = tpu.matmul %199, %212, %cst_33 {dimension_numbers = #tpu.dot_dimension_numbers<[1], [0], [0], [1], [0, 0, 1, 1], [], []>} : vector<72x64xf32>, vector<64x16xf32>, vector<72x16xf32> -> vector<72x16xf32>
    %214 = arith.addf %210, %213 : vector<72x16xf32>
    %215 = vector.broadcast %206 : vector<1x16xf32> to vector<72x16xf32>
    %216 = arith.addf %214, %215 : vector<72x16xf32>
    %c0_34 = arith.constant 0 : index
    %c0_35 = arith.constant 0 : index
    %c0_36 = arith.constant 0 : index
    %217 = vector.load %arg4[%c0_34, %c0_35, %c0_36] : memref<4x64x16xf32, #tpu.memory_space<vmem>>, vector<1x64x16xf32>
    %218 = vector.shape_cast %217 : vector<1x64x16xf32> to vector<64x16xf32>
    %cst_37 = arith.constant dense<0.000000e+00> : vector<64x16xf32>
    %219 = tpu.matmul %205, %218, %cst_37 {dimension_numbers = #tpu.dot_dimension_numbers<[1], [0], [0], [1], [0, 0, 1, 1], [], []>} : vector<64x64xf32>, vector<64x16xf32>, vector<64x16xf32> -> vector<64x16xf32>
    %220 = tpu.concatenate %207, %219 in 0 : vector<8x16xf32>, vector<64x16xf32> -> vector<72x16xf32>
    %221 = arith.addf %216, %220 : vector<72x16xf32>
    %c3_38 = arith.constant 3 : index
    %c0_39 = arith.constant 0 : index
    %c0_40 = arith.constant 0 : index
    %222 = vector.load %arg4[%c3_38, %c0_39, %c0_40] : memref<4x64x16xf32, #tpu.memory_space<vmem>>, vector<1x64x16xf32>
    %223 = vector.shape_cast %222 : vector<1x64x16xf32> to vector<64x16xf32>
    %cst_41 = arith.constant dense<0.000000e+00> : vector<64x16xf32>
    %224 = tpu.matmul %202, %223, %cst_41 {dimension_numbers = #tpu.dot_dimension_numbers<[1], [0], [0], [1], [0, 0, 1, 1], [], []>} : vector<64x64xf32>, vector<64x16xf32>, vector<64x16xf32> -> vector<64x16xf32>
    %225 = tpu.concatenate %224, %207 in 0 : vector<64x16xf32>, vector<8x16xf32> -> vector<72x16xf32>
    %226 = arith.addf %221, %225 : vector<72x16xf32>
    %cst_42 = arith.constant 0.000000e+00 : f32
    %227 = vector.broadcast %cst_42 : f32 to vector<72x16xf32>
    %228 = arith.cmpf ogt, %226, %227 : vector<72x16xf32>
    %cst_43 = arith.constant 2.000000e-01 : f32
    %229 = vector.broadcast %cst_43 : f32 to vector<72x16xf32>
    %230 = arith.mulf %229, %226 : vector<72x16xf32>
    %231 = arith.select %228, %226, %230 : vector<72x16xi1>, vector<72x16xf32>
    %232 = vector.extract_strided_slice %199 {offsets = [0, 0], sizes = [64, 64], strides = [1, 1]} : vector<72x64xf32> to vector<64x64xf32>
    %c0_44 = arith.constant 0 : index
    %c0_45 = arith.constant 0 : index
    %c0_46 = arith.constant 0 : index
    %233 = vector.load %arg4[%c0_44, %c0_45, %c0_46] : memref<4x64x16xf32, #tpu.memory_space<vmem>>, vector<1x64x16xf32>
    %234 = vector.shape_cast %233 : vector<1x64x16xf32> to vector<64x16xf32>
    %cst_47 = arith.constant dense<0.000000e+00> : vector<64x16xf32>
    %235 = tpu.matmul %232, %234, %cst_47 {dimension_numbers = #tpu.dot_dimension_numbers<[1], [0], [0], [1], [0, 0, 1, 1], [], []>} : vector<64x64xf32>, vector<64x16xf32>, vector<64x16xf32> -> vector<64x16xf32>
    %c1_48 = arith.constant 1 : index
    %c0_49 = arith.constant 0 : index
    %c0_50 = arith.constant 0 : index
    %236 = vector.load %arg4[%c1_48, %c0_49, %c0_50] : memref<4x64x16xf32, #tpu.memory_space<vmem>>, vector<1x64x16xf32>
    %237 = vector.shape_cast %236 : vector<1x64x16xf32> to vector<64x16xf32>
    %cst_51 = arith.constant dense<0.000000e+00> : vector<64x16xf32>
    %238 = tpu.matmul %202, %237, %cst_51 {dimension_numbers = #tpu.dot_dimension_numbers<[1], [0], [0], [1], [0, 0, 1, 1], [], []>} : vector<64x64xf32>, vector<64x16xf32>, vector<64x16xf32> -> vector<64x16xf32>
    %239 = arith.addf %235, %238 : vector<64x16xf32>
    %c2_52 = arith.constant 2 : index
    %c0_53 = arith.constant 0 : index
    %c0_54 = arith.constant 0 : index
    %240 = vector.load %arg4[%c2_52, %c0_53, %c0_54] : memref<4x64x16xf32, #tpu.memory_space<vmem>>, vector<1x64x16xf32>
    %241 = vector.shape_cast %240 : vector<1x64x16xf32> to vector<64x16xf32>
    %cst_55 = arith.constant dense<0.000000e+00> : vector<64x16xf32>
    %242 = tpu.matmul %205, %241, %cst_55 {dimension_numbers = #tpu.dot_dimension_numbers<[1], [0], [0], [1], [0, 0, 1, 1], [], []>} : vector<64x64xf32>, vector<64x16xf32>, vector<64x16xf32> -> vector<64x16xf32>
    %243 = arith.addf %239, %242 : vector<64x16xf32>
    %244 = vector.extract_strided_slice %197 {offsets = [8, 0], sizes = [64, 64], strides = [1, 1]} : vector<72x64xf32> to vector<64x64xf32>
    %c3_56 = arith.constant 3 : index
    %c0_57 = arith.constant 0 : index
    %c0_58 = arith.constant 0 : index
    %245 = vector.load %arg4[%c3_56, %c0_57, %c0_58] : memref<4x64x16xf32, #tpu.memory_space<vmem>>, vector<1x64x16xf32>
    %246 = vector.shape_cast %245 : vector<1x64x16xf32> to vector<64x16xf32>
    %cst_59 = arith.constant dense<0.000000e+00> : vector<64x16xf32>
    %247 = tpu.matmul %244, %246, %cst_59 {dimension_numbers = #tpu.dot_dimension_numbers<[1], [0], [0], [1], [0, 0, 1, 1], [], []>} : vector<64x64xf32>, vector<64x16xf32>, vector<64x16xf32> -> vector<64x16xf32>
    %248 = arith.addf %243, %247 : vector<64x16xf32>
    %249 = vector.broadcast %206 : vector<1x16xf32> to vector<64x16xf32>
    %250 = arith.addf %248, %249 : vector<64x16xf32>
    %cst_60 = arith.constant 0.000000e+00 : f32
    %251 = vector.broadcast %cst_60 : f32 to vector<64x16xf32>
    %252 = arith.cmpf ogt, %250, %251 : vector<64x16xf32>
    %cst_61 = arith.constant 2.000000e-01 : f32
    %253 = vector.broadcast %cst_61 : f32 to vector<64x16xf32>
    %254 = arith.mulf %253, %250 : vector<64x16xf32>
    %255 = arith.select %252, %250, %254 : vector<64x16xi1>, vector<64x16xf32>
    %256 = vector.extract_strided_slice %231 {offsets = [0, 0], sizes = [64, 16], strides = [1, 1]} : vector<72x16xf32> to vector<64x16xf32>
    %257 = arith.maximumf %256, %255 : vector<64x16xf32>
    %258 = vector.extract_strided_slice %231 {offsets = [8, 0], sizes = [64, 16], strides = [1, 1]} : vector<72x16xf32> to vector<64x16xf32>
    %259 = arith.maximumf %257, %258 : vector<64x16xf32>
    %260 = vector.extract_strided_slice %259 {offsets = [0, 0], sizes = [8, 16], strides = [1, 1]} : vector<64x16xf32> to vector<8x16xf32>
    %261 = vector.extract_strided_slice %259 {offsets = [8, 0], sizes = [8, 16], strides = [1, 1]} : vector<64x16xf32> to vector<8x16xf32>
    %262 = vector.extract_strided_slice %259 {offsets = [16, 0], sizes = [8, 16], strides = [1, 1]} : vector<64x16xf32> to vector<8x16xf32>
    %263 = vector.extract_strided_slice %259 {offsets = [24, 0], sizes = [8, 16], strides = [1, 1]} : vector<64x16xf32> to vector<8x16xf32>
    %264 = vector.extract_strided_slice %259 {offsets = [32, 0], sizes = [8, 16], strides = [1, 1]} : vector<64x16xf32> to vector<8x16xf32>
    %265 = vector.extract_strided_slice %259 {offsets = [40, 0], sizes = [8, 16], strides = [1, 1]} : vector<64x16xf32> to vector<8x16xf32>
    %266 = vector.extract_strided_slice %259 {offsets = [48, 0], sizes = [8, 16], strides = [1, 1]} : vector<64x16xf32> to vector<8x16xf32>
    %267 = vector.extract_strided_slice %259 {offsets = [56, 0], sizes = [8, 16], strides = [1, 1]} : vector<64x16xf32> to vector<8x16xf32>
    %268 = tpu.concatenate %260, %261, %262, %263, %264, %265, %266, %267 in 1 : vector<8x16xf32>, vector<8x16xf32>, vector<8x16xf32>, vector<8x16xf32>, vector<8x16xf32>, vector<8x16xf32>, vector<8x16xf32>, vector<8x16xf32> -> vector<8x128xf32>
    %c0_62 = arith.constant 0 : index
    %c0_63 = arith.constant 0 : index
    %269 = vector.load %arg6[%c0_62, %c0_63] : memref<128x32xf32, #tpu.memory_space<vmem>>, vector<128x32xf32>
    %cst_64 = arith.constant dense<0.000000e+00> : vector<8x32xf32>
    %270 = tpu.matmul %268, %269, %cst_64 {dimension_numbers = #tpu.dot_dimension_numbers<[1], [0], [0], [1], [0, 0, 1, 1], [], []>} : vector<8x128xf32>, vector<128x32xf32>, vector<8x32xf32> -> vector<8x32xf32>
    %c0_65 = arith.constant 0 : index
    %c0_66 = arith.constant 0 : index
    %271 = vector.load %arg7[%c0_65, %c0_66] : memref<1x32xf32, #tpu.memory_space<vmem>>, vector<1x32xf32>
    %272 = vector.broadcast %271 : vector<1x32xf32> to vector<8x32xf32>
    %273 = arith.addf %270, %272 : vector<8x32xf32>
    %cst_67 = arith.constant 0.000000e+00 : f32
    %274 = vector.broadcast %cst_67 : f32 to vector<8x32xf32>
    %275 = arith.cmpf ogt, %273, %274 : vector<8x32xf32>
    %cst_68 = arith.constant 2.000000e-01 : f32
    %276 = vector.broadcast %cst_68 : f32 to vector<8x32xf32>
    %277 = arith.mulf %276, %273 : vector<8x32xf32>
    %278 = arith.select %275, %273, %277 : vector<8x32xi1>, vector<8x32xf32>
    %c0_69 = arith.constant 0 : index
    %c0_70 = arith.constant 0 : index
    %279 = vector.load %arg8[%c0_69, %c0_70] : memref<32x16xf32, #tpu.memory_space<vmem>>, vector<32x16xf32>
    %cst_71 = arith.constant dense<0.000000e+00> : vector<8x16xf32>
    %280 = tpu.matmul %278, %279, %cst_71 {dimension_numbers = #tpu.dot_dimension_numbers<[1], [0], [0], [1], [0, 0, 1, 1], [], []>} : vector<8x32xf32>, vector<32x16xf32>, vector<8x16xf32> -> vector<8x16xf32>
    %c0_72 = arith.constant 0 : index
    %c0_73 = arith.constant 0 : index
    %281 = vector.load %arg9[%c0_72, %c0_73] : memref<1x16xf32, #tpu.memory_space<vmem>>, vector<1x16xf32>
    %282 = vector.broadcast %281 : vector<1x16xf32> to vector<8x16xf32>
    %283 = arith.addf %280, %282 : vector<8x16xf32>
    %c0_74 = arith.constant 0 : index
    %c0_75 = arith.constant 0 : index
    %284 = vector.load %arg10[%c0_74, %c0_75] : memref<8x16xf32, #tpu.memory_space<vmem>>, vector<8x16xf32>
    tpu.vector_store %arg10[%c0_74, %c0_75], %283 {strides = array<i32>} : memref<8x16xf32, #tpu.memory_space<vmem>>, vector<8x16xf32>,
    return
  }
  func.func @transform_0(%arg0: i32) -> (i32, i32) {
    %c0_i32 = arith.constant 0 : i32
    %c0_i32_0 = arith.constant 0 : i32
    return %arg0, %c0_i32 : i32, i32
  }
  func.func @transform_1(%arg0: i32) -> (i32, i32) {
    %c0_i32 = arith.constant 0 : i32
    %c0_i32_0 = arith.constant 0 : i32
    %c0_i32_1 = arith.constant 0 : i32
    return %c0_i32, %c0_i32_0 : i32, i32
  }
  func.func @transform_2(%arg0: i32) -> (i32, i32) {
    %c0_i32 = arith.constant 0 : i32
    %c0_i32_0 = arith.constant 0 : i32
    %c0_i32_1 = arith.constant 0 : i32
    return %c0_i32, %c0_i32_0 : i32, i32
  }
  func.func @transform_3(%arg0: i32) -> (i32, i32, i32) {
    %c0_i32 = arith.constant 0 : i32
    %c0_i32_0 = arith.constant 0 : i32
    %c0_i32_1 = arith.constant 0 : i32
    %c0_i32_2 = arith.constant 0 : i32
    return %c0_i32, %c0_i32_0, %c0_i32_1 : i32, i32, i32
  }
  func.func @transform_4(%arg0: i32) -> (i32, i32) {
    %c0_i32 = arith.constant 0 : i32
    %c0_i32_0 = arith.constant 0 : i32
    %c0_i32_1 = arith.constant 0 : i32
    return %c0_i32, %c0_i32_0 : i32, i32
  }
  func.func @transform_5(%arg0: i32) -> (i32, i32) {
    %c0_i32 = arith.constant 0 : i32
    %c0_i32_0 = arith.constant 0 : i32
    %c0_i32_1 = arith.constant 0 : i32
    return %c0_i32, %c0_i32_0 : i32, i32
  }
  func.func @transform_6(%arg0: i32) -> (i32, i32) {
    %c0_i32 = arith.constant 0 : i32
    %c0_i32_0 = arith.constant 0 : i32
    %c0_i32_1 = arith.constant 0 : i32
    return %c0_i32, %c0_i32_0 : i32, i32
  }
  func.func @transform_7(%arg0: i32) -> (i32, i32) {
    %c0_i32 = arith.constant 0 : i32
    %c0_i32_0 = arith.constant 0 : i32
    %c0_i32_1 = arith.constant 0 : i32
    return %c0_i32, %c0_i32_0 : i32, i32
  }
  func.func @transform_8(%arg0: i32) -> (i32, i32) {
    %c0_i32 = arith.constant 0 : i32
    %c0_i32_0 = arith.constant 0 : i32
    %c0_i32_1 = arith.constant 0 : i32
    return %c0_i32, %c0_i32_0 : i32, i32
  }
  func.func @transform_9(%arg0: i32) -> (i32, i32) {
    %c0_i32 = arith.constant 0 : i32
    %c0_i32_0 = arith.constant 0 : i32
    return %arg0, %c0_i32 : i32, i32
  }
}

</mosaic_0001>

<bundles_post_ra>
// kernel: encoder_forward.1
= control target key start
LH: loop header
LB: loop body
LE: loop exit
PB: predicated region body
PF: predicated region fallthrough
CT: control target
= control target key end

     0   :  { %v5328_v0 = vmov 4   ;;  %v5333_v1 = vmov 3   ;;  %v5331_v4 = vmov 5   ;;  %v5325_v5 = vmov 0   ;;  %s3356_s30 = smov 16   ;;  %s3359_s10 = smov 64   ;;  %s5313_s0 = inlined_call_operand.vmem [shape: f32[72,8], index: 0, kind: input, shape index: {}]   ;;  %s5314_s3 = inlined_call_operand.vmem [shape: f32[4,64,16], index: 3, kind: input, shape index: {}]   ;;  %s5315_s1 = inlined_call_operand.vmem [shape: f32[4,64], index: 1, kind: input, shape index: {}]   ;;  %s5316_s2 = inlined_call_operand.vmem [shape: f32[1,64], index: 2, kind: input, shape index: {}]   ;;  %s5317_s5 = inlined_call_operand.vmem [shape: f32[128,32], index: 5, kind: input, shape index: {}]   ;;  %s5318_s4 = inlined_call_operand.vmem [shape: f32[1,16], index: 4, kind: input, shape index: {}]   ;;  %s5319_s7 = inlined_call_operand.vmem [shape: f32[32,16], index: 7, kind: input, shape index: {}]   ;;  %s5320_s6 = inlined_call_operand.vmem [shape: f32[1,32], index: 6, kind: input, shape index: {}]   ;;  %s5321_s8 = inlined_call_operand.vmem [shape: f32[1,16], index: 8, kind: input, shape index: {}]   ;;  %s5322_s9 = inlined_call_operand.vmem [shape: f32[8,16], index: 9, kind: output, shape index: {}]  }
   0x1   :  { %3283 = vset.pattern.permute.xlu1 %v5328_v0  ;;  %3282 = vset.pattern.permute.xlu0 %v5333_v1  ;;  %v3418_v2 = vld [vmem:[%s5313_s0] sm:$0xff]  ;;  %v33_v3 = vld [vmem:[%s5313_s0 + $0x8] sm:$0xff]  ;;  %v5330_v6 = vmov 2   ;;  %v3432_v7 = vld [vmem:[%s5313_s0 + $0x18] sm:$0xff]  ;;  %v5339_v9 = vmov 7   ;;  %v3351_v12 = vmov 6  }
   0x2   :  { %5391 = vst [vmem:[#allocation2_spill] sm:$0xff] %v3418_v2  ;;  %366 = vperm.xlu1 %3283, %v3418_v2   ;;  %221 = vperm.xlu0 %3282, %v3418_v2   ;;  %v3439_v8 = vld [vmem:[%s5313_s0 + $0x20] sm:$0xff]  ;;  %v3447_v10 = vld [vmem:[%s5313_s0 + $0x28] sm:$0xff]  ;;  %v34_v11 = vld [vmem:[%s5313_s0 + $0x10] sm:$0xff]  ;;  %v5335_v15 = vmov 1   ;;  %v5323_v20 = vmov 0.0|0.0  }
   0x3   :  { %v3465_v13 = vld [vmem:[%s5313_s0 + $0x30] sm:$0xff]  ;;  %v3472_v14 = vld [vmem:[%s5313_s0 + $0x38] sm:$0xff]  ;;  %v3484_v16 = vld [vmem:[%s5313_s0 + $0x40] sm:$0xff]  ;;  %3082 = vmatprep.subr.bf16.mxu0 %v5323_v20  ;;  %3232 = vmatprep.subr.bf16.mxu1 %v5323_v20  ;;  %vm3354_vm0 = vmmov 0   ;;  %v5326_v30 = vmov 0.0   ;;  %vm1211_vm10 = vcmask 523264  }
   0x4   :  { %v2544_v17 = vld [vmem:[%s5314_s3 + $0x80] sm:$0xff]  ;;  %v2545_v18 = vld [vmem:[%s5314_s3 + $0x88] sm:$0xff]  ;;  %v2546_v21 = vld [vmem:[%s5314_s3 + $0x90] sm:$0xff]  ;;  %2798 = vmatprep.mubr.msk.f32.mxu0 %vm3354_vm0, %v5326_v30  ;;  %2810 = vmatprep.mubr.msk.f32.mxu1 %vm3354_vm0, %v5326_v30  ;;  %s3360_s11 = smov 80   ;;  %s3361_s12 = smov 96  }
   0x5   :  { %v3499_v19 = vpack.c.bf16 %v2545_v18, %v2544_v17  ;;  %v2547_v22 = vld [vmem:[%s5314_s3 + $0x98] sm:$0xff]  ;;  %v2548_v24 = vld [vmem:[%s5314_s3 + $0xa0] sm:$0xff]  ;;  %v2549_v25 = vld [vmem:[%s5314_s3 + $0xa8] sm:$0xff]  ;;  %s3362_s13 = smov 112  }
   0x6   :  { %3284 = vset.pattern.permute.xlu1 %v5331_v4  ;;  %225 = vperm.xlu0 %3282, %v33_v3   ;;  %v3512_v23 = vpack.c.bf16 %v2547_v22, %v2546_v21  ;;  %v3527_v26 = vpack.c.bf16 %v2549_v25, %v2548_v24  ;;  %v2550_v27 = vld [vmem:[%s5314_s3 + $0xb0] sm:$0xff]  ;;  %v2551_v28 = vld [vmem:[%s5314_s3 + $0xb8] sm:$0xff]  ;;  %v1501_v31 = vld [vmem:[%s5314_s3] sm:$0xff] }
   0x7   :  { %501 = vperm.xlu1 %3284, %v3418_v2   ;;  %5392 = vst [vmem:[#allocation3_spill] sm:$0xff] %v3499_v19  ;;  %3084 = vmatpush3.bf16.msra.mxu0 %v3499_v19  ;;  %v3540_v29 = vpack.c.bf16 %v2551_v28, %v2550_v27  ;;  %v1502_v32 = vld [vmem:[%s5314_s3 + $0x8] sm:$0xff]  ;;  %v3621_v46 = vld [vmem:[%s5315_s1] ss:$0 sm:$0xff]  ;;  %v3626_v47 = vld [vmem:[%s5315_s1 + $0x1] ss:$0 sm:$0xff] }
   0x8   :  { %3236 = vmatpush3.bf16.msra.mxu1 %v3499_v19  ;;  %3085 = vmatprep.subr.bf16.mxu0 %v5323_v20  ;;  %5393 = vst [vmem:[#allocation4_spill] sm:$0xff] %v3512_v23  ;;  %5394 = vst [vmem:[#allocation5_spill] sm:$0xff] %v3527_v26  ;;  %v3559_v33 = vpack.c.bf16 %v1502_v32, %v1501_v31  ;;  %v3631_v48 = vld [vmem:[%s5315_s1 + $0x2] ss:$0 sm:$0xff]  ;;  %v1503_v50 = vld [vmem:[%s5314_s3 + $0x10] sm:$0xff] }
   0x9   :  { %3233 = vmatprep.subr.bf16.mxu1 %v5323_v20  ;;  %5395 = vst [vmem:[#allocation6_spill] sm:$0xff] %v3540_v29  ;;  %v1504_v51 = vld [vmem:[%s5314_s3 + $0x18] sm:$0xff]  ;;  %v1505_v52 = vld [vmem:[%s5314_s3 + $0x20] sm:$0xff]  ;;  %v1506_v53 = vld [vmem:[%s5314_s3 + $0x28] sm:$0xff] }
   0xa   :  { %3297 = vset.pattern.permute.xlu0 %v5325_v5  ;;  %5396 = vst [vmem:[#allocation7_spill] sm:$0xff] %v3559_v33  ;;  %v1507_v54 = vld [vmem:[%s5314_s3 + $0x30] sm:$0xff]  ;;  %v1508_v55 = vld [vmem:[%s5314_s3 + $0x38] sm:$0xff]  ;;  %v3664_v61 = vpack.c.bf16 %v1504_v51, %v1503_v50 }
   0xb   :  { %3285 = vset.pattern.permute.xlu1 %v5330_v6  ;;  %53 = vperm.xlu0 %3297, %v33_v3  }
   0xc   :  { %167 = vperm.xlu1 %3285, %v33_v3   ;;  %3087 = vmatpush3.bf16.msra.mxu0 %v3512_v23  ;;  %5402 = vst [vmem:[#allocation13_spill] sm:$0xff] %v3664_v61 }
   0xd   :  { %3237 = vmatpush3.bf16.msra.mxu1 %v3512_v23  ;;  %3088 = vmatprep.subr.bf16.mxu0 %v5323_v20 }
   0xe   :  { %3234 = vmatprep.subr.bf16.mxu1 %v5323_v20 }
   0xf   :  { %63 = vperm.xlu0 %3297, %v3432_v7  }
  0x10   :  { %3286 = vset.pattern.permute.xlu1 %v5328_v0  ;;  %3090 = vmatpush3.bf16.msra.mxu0 %v3527_v26 }
  0x11   :  { %370 = vperm.xlu1 %3286, %v33_v3   ;;  %3091 = vmatprep.subr.bf16.mxu0 %v5323_v20 }
  0x12   :  { %3238 = vmatpush3.bf16.msra.mxu1 %v3527_v26 }
  0x13   :  { %3306 = vset.pattern.permute.xlu0 %v5339_v9  ;;  %3235 = vmatprep.subr.bf16.mxu1 %v5323_v20 }
  0x14   :  { %787 = vperm.xlu0 %3306, %v3439_v8   ;;  %3093 = vmatpush3.bf16.msra.mxu0 %v3540_v29 }
  0x15   :  { %3287 = vset.pattern.permute.xlu1 %v5331_v4  ;;  %3107 = vmatprep.subr.bf16.mxu0 %v3559_v33 }
  0x16   :  { %505 = vperm.xlu1 %3287, %v33_v3   ;;  %3239 = vmatpush3.bf16.msra.mxu1 %v3540_v29 }
  0x17   :  { %3094 = vmatprep.subr.bf16.mxu1 %v5323_v20 }
  0x18   :  { %791 = vperm.xlu0 %3306, %v3447_v10  }
  0x1a   :  { %3288 = vset.pattern.permute.xlu1 %v5339_v9 }
  0x1b   :  { %771 = vperm.xlu1 %3288, %v3418_v2  }
  0x1c   :  { %3312 = vset.pattern.permute.xlu0 %v5331_v4 }
  0x1d   :  { %517 = vperm.xlu0 %3312, %v3439_v8  }
  0x1f   :  { %3289 = vset.pattern.permute.xlu1 %v5333_v1 }
  0x20   :  { %229 = vperm.xlu1 %3289, %v34_v11  }
  0x21   :  { %3313 = vset.pattern.permute.xlu0 %v3351_v12 }
  0x22   :  { %636 = vperm.xlu0 %3313, %v3418_v2  }
  0x24   :  { %3290 = vset.pattern.permute.xlu1 %v5328_v0 }
  0x25   :  { %374 = vperm.xlu1 %3290, %v34_v11  }
  0x26   :  { %640 = vperm.xlu0 %3313, %v33_v3  }
  0x29   :  { %3291 = vset.pattern.permute.xlu1 %v5331_v4 }
  0x2a   :  { %509 = vperm.xlu1 %3291, %v34_v11   ;;  %644 = vperm.xlu0 %3313, %v34_v11  }
  0x2e   :  { %3292 = vset.pattern.permute.xlu1 %v5339_v9  ;;  %660 = vperm.xlu0 %3313, %v3465_v13  }
  0x2f   :  { %775 = vperm.xlu1 %3292, %v33_v3  }
  0x32   :  { %664 = vperm.xlu0 %3313, %v3472_v14  }
  0x33   :  { %3293 = vset.pattern.permute.xlu1 %v5333_v1 }
  0x34   :  { %233 = vperm.xlu1 %3293, %v3432_v7  }
  0x36   :  { %3320 = vset.pattern.permute.xlu0 %v5335_v15 }
  0x37   :  { %109 = vperm.xlu0 %3320, %v33_v3   ;;  %v3673_v3 = vpack.c.bf16 %v1506_v53, %v1505_v52 }
  0x38   :  { %3294 = vset.pattern.permute.xlu1 %v5328_v0 }
  0x39   :  { %378 = vperm.xlu1 %3294, %v3432_v7   ;;  %5403 = vst [vmem:[#allocation14_spill] sm:$0xff] %v3673_v3  ;;  %v5411_v3 = vmov 5  }
  0x3b   :  { %121 = vperm.xlu0 %3320, %v3439_v8  }
  0x3d   :  { %3295 = vset.pattern.permute.xlu1 %v5331_v4 }
  0x3e   :  { %513 = vperm.xlu1 %3295, %v3432_v7  }
  0x3f   :  { %137 = vperm.xlu0 %3320, %v3484_v16  }
  0x42   :  { %3296 = vset.pattern.permute.xlu1 %v5339_v9 }
  0x43   :  { %779 = vperm.xlu1 %3296, %v34_v11   ;;  %3323 = vset.pattern.permute.xlu0 %v5330_v6 }
  0x44   :  { %163 = vperm.xlu0 %3323, %v3418_v2  }
  0x47   :  { %3298 = vset.pattern.permute.xlu1 %v5325_v5 }
  0x48   :  { %58 = vperm.xlu1 %3298, %v34_v11   ;;  %171 = vperm.xlu0 %3323, %v34_v11  }
  0x4c   :  { %3299 = vset.pattern.permute.xlu1 %v3351_v12  ;;  %175 = vperm.xlu0 %3323, %v3432_v7  }
  0x4d   :  { %648 = vperm.xlu1 %3299, %v3432_v7  }
  0x50   :  { %187 = vperm.xlu0 %3323, %v3465_v13  }
  0x51   :  { %3300 = vset.pattern.permute.xlu1 %v5335_v15 }
  0x52   :  { %113 = vperm.xlu1 %3300, %v34_v11  }
  0x54   :  { %191 = vperm.xlu0 %3323, %v3472_v14  }
  0x56   :  { %3301 = vset.pattern.permute.xlu1 %v5339_v9 }
  0x57   :  { %783 = vperm.xlu1 %3301, %v3432_v7  }
  0x58   :  { %3326 = vset.pattern.permute.xlu0 %v5333_v1 }
  0x59   :  { %237 = vperm.xlu0 %3326, %v3439_v8  }
  0x5b   :  { %3302 = vset.pattern.permute.xlu1 %v5325_v5 }
  0x5c   :  { %68 = vperm.xlu1 %3302, %v3439_v8  }
  0x5d   :  { %249 = vperm.xlu0 %3326, %v3472_v14  }
  0x60   :  { %3303 = vset.pattern.permute.xlu1 %v5335_v15 }
  0x61   :  { %117 = vperm.xlu1 %3303, %v3432_v7   ;;  %3331 = vset.pattern.permute.xlu0 %v5328_v0  ;;  %v3675_v7 = vpack.c.bf16 %v1508_v55, %v1507_v54 }
  0x62   :  { %394 = vperm.xlu0 %3331, %v3472_v14  }
  0x63   :  { %5404 = vst [vmem:[#allocation15_spill] sm:$0xff] %v3675_v7 }
  0x65   :  { %3304 = vset.pattern.permute.xlu1 %v5325_v5 }
  0x66   :  { %73 = vperm.xlu1 %3304, %v3447_v10   ;;  %3333 = vset.pattern.permute.xlu0 %v5331_v4 }
  0x67   :  { %533 = vperm.xlu0 %3333, %v3484_v16  }
  0x6a   :  { %3305 = vset.pattern.permute.xlu1 %v3351_v12 }
  0x6b   :  { %652 = vperm.xlu1 %3305, %v3439_v8   ;;  %3336 = vset.pattern.permute.xlu0 %v3351_v12 }
  0x6c   :  { %668 = vperm.xlu0 %3336, %v3484_v16  }
  0x6f   :  { %3307 = vset.pattern.permute.xlu1 %v5325_v5 }
  0x70   :  { %78 = vperm.xlu1 %3307, %v3465_v13   ;;  %3338 = vset.pattern.permute.xlu0 %v5339_v9 }
  0x74   :  { %3308 = vset.pattern.permute.xlu1 %v5330_v6 }
  0x75   :  { %179 = vperm.xlu1 %3308, %v3439_v8  }
  0x79   :  { %3309 = vset.pattern.permute.xlu1 %v5328_v0 }
  0x7a   :  { %382 = vperm.xlu1 %3309, %v3439_v8   ;;  %v3680_v8 = vld [vmem:[%s5315_s1 + $0x3] ss:$0 sm:$0xff] }
  0x7e   :  { %3310 = vset.pattern.permute.xlu1 %v3351_v12 }
  0x7f   :  { %656 = vperm.xlu1 %3310, %v3447_v10  }
  0x81   :  { %v3589_v34 = vpop.permute.xlu1 %366  ;;  %v3591_v35 = vpop.permute.xlu0 %221 }
  0x82   :  { %5397 = vst [vmem:[#allocation8_spill] sm:$0xff] %v3589_v34  ;;  %5398 = vst [vmem:[#allocation9_spill] sm:$0xff] %v3591_v35  ;;  %v599_v56 = vmul.f32 %v3626_v47, %v3589_v34  ;;  %v590_v57 = vmul.f32 %v3621_v46, %v3591_v35  ;;  %v3668_v62 = vmul.f32 %v3631_v48, %v3589_v34 }
  0x83   :  { %3311 = vset.pattern.permute.xlu1 %v5335_v15  ;;  %v725_v63 = vmul.f32 %v3621_v46, %v3589_v34  ;;  %v3684_v11 = vmul.f32 %v3626_v47, %v3591_v35 }
  0x84   :  { %125 = vperm.xlu1 %3311, %v3447_v10   ;;  %v608_v22 = vadd.f32 %v599_v56, %v590_v57 }
  0x85   :  { %v226_v36 = vpop.permute.xlu0 %225 }
  0x86   :  { %v502_v37 = vpop.permute.xlu1 %501  ;;  %v465_v58 = vmul.f32 %v3626_v47, %v226_v36  ;;  %v3693_v25 = vmul.f32 %v3680_v8, %v226_v36  ;;  %v3697_v28 = vmul.f32 %v3631_v48, %v226_v36  ;;  %v591_v31 = vmul.f32 %v3621_v46, %v226_v36 }
  0x87   :  { %v617_v12 = vmul.f32 %v3631_v48, %v502_v37  ;;  %v734_v17 = vmul.f32 %v3626_v47, %v502_v37  ;;  %v860_v24 = vmul.f32 %v3621_v46, %v502_v37  ;;  %v3703_v51 = vmul.f32 %v3680_v8, %v502_v37 }
  0x88   :  { %129 = vperm.xlu1 %3311, %v3465_v13  }
  0x89   :  { %v626_v57 = vadd.f32 %v617_v12, %v608_v22 }
  0x8a   :  { %v3596_v38 = vpop.permute.xlu0 %53 }
  0x8b   :  { %v3598_v39 = vpop.permute.xlu1 %167  ;;  %v900_v52 = vmul.f32 %v3680_v8, %v3596_v38  ;;  %v3713_v56 = vmul.f32 %v3621_v46, %v3596_v38 }
  0x8c   :  { %3314 = vset.pattern.permute.xlu1 %v5325_v5  ;;  %v456_v59 = vmul.f32 %v3621_v46, %v3598_v39  ;;  %v3737_v22 = vmul.f32 %v3626_v47, %v3598_v39 }
  0x8d   :  { %83 = vperm.xlu1 %3314, %v3472_v14  }
  0x8e   :  { %v3602_v40 = vpop.permute.xlu0 %63  ;;  %v474_v32 = vadd.f32 %v465_v58, %v456_v59  ;;  %v743_v58 = vadd.f32 %v734_v17, %v725_v63  ;;  %v3720_v59 = vmul.f32 %v3631_v48, %v3598_v39 }
  0x8f   :  { %v3776_v4 = vmul.f32 %v3626_v47, %v3602_v40 }
  0x90   :  { %v3604_v41 = vpop.permute.xlu1 %370 }
  0x91   :  { %3315 = vset.pattern.permute.xlu1 %v5330_v6  ;;  %v483_v18 = vmul.f32 %v3631_v48, %v3604_v41  ;;  %v600_v63 = vmul.f32 %v3626_v47, %v3604_v41  ;;  %v3764_v6 = vmul.f32 %v3680_v8, %v3604_v41  ;;  %v726_v29 = vmul.f32 %v3621_v46, %v3604_v41 }
  0x92   :  { %183 = vperm.xlu1 %3315, %v3447_v10  }
  0x93   :  { %v3608_v42 = vpop.permute.xlu0 %787  ;;  %v492_v36 = vadd.f32 %v483_v18, %v474_v32  ;;  %v3745_v32 = vmul.f32 %v3621_v46, %v3602_v40 }
  0x94   :  { %5399 = vst [vmem:[#allocation10_spill] sm:$0xff] %v3608_v42 }
  0x95   :  { %v3610_v43 = vpop.permute.xlu1 %505  ;;  %5405 = vst [vmem:[#allocation16_spill] sm:$0xff] %v3745_v32 }
  0x96   :  { %3316 = vset.pattern.permute.xlu1 %v5339_v9  ;;  %v537_v50 = vmul.f32 %v3680_v8, %v3610_v43  ;;  %v861_v17 = vmul.f32 %v3621_v46, %v3610_v43 }
  0x97   :  { %795 = vperm.xlu1 %3316, %v3465_v13   ;;  %v3614_v44 = vpop.permute.xlu0 %791 }
  0x98   :  { %5400 = vst [vmem:[#allocation11_spill] sm:$0xff] %v3614_v44  ;;  %v546_v12 = vadd.f32 %v537_v50, %v492_v36  ;;  %v3750_v50 = vld [vmem:[%s5316_s2] ss:$0 sm:$0xff] }
  0x9a   :  { %v3616_v45 = vpop.permute.xlu1 %771 }
  0x9b   :  { %3317 = vset.pattern.permute.xlu1 %v5325_v5  ;;  %v884_v53 = vmul.f32 %v3631_v48, %v3616_v45 }
  0x9c   :  { %88 = vperm.xlu1 %3317, %v3484_v16   ;;  %v3635_v49 = vpop.permute.xlu0 %517 }
  0x9d   :  { %5401 = vst [vmem:[#allocation12_spill] sm:$0xff] %v3635_v49 }
  0x9f   :  { %v3662_v60 = vpop.permute.xlu1 %229 }
  0xa0   :  { %3318 = vset.pattern.permute.xlu1 %v5333_v1  ;;  %v735_v1 = vmul.f32 %v3626_v47, %v3610_v43 }
  0xa1   :  { %241 = vperm.xlu1 %3318, %v3447_v10   ;;  %v637_v21 = vpop.permute.xlu0 %636 }
  0xa2   :  { %v868_v27 = vmul.f32 %v3626_v47, %v637_v21  ;;  %v671_v36 = vmul.f32 %v3680_v8, %v637_v21  ;;  %v752_v5 = vmul.f32 %v3631_v48, %v637_v21  ;;  %v948_v19 = vmul.f32 %v3621_v46, %v637_v21 }
  0xa3   :  { %v956_v21 = vmul.f32 %v3626_v47, %v3616_v45 }
  0xa4   :  { %v876_v54 = vadd.f32 %v868_v27, %v860_v24  ;;  %v3709_v55 = vpop.permute.xlu1 %374  ;;  %v3724_v24 = vmul.f32 %v3631_v48, %v3596_v38  ;;  %v1044_v27 = vmul.f32 %v3626_v47, %v3596_v38  ;;  %v3741_v38 = vmul.f32 %v3680_v8, %v3598_v39 }
  0xa5   :  { %3319 = vset.pattern.permute.xlu1 %v5328_v0  ;;  %v3716_v37 = vpop.permute.xlu0 %640  ;;  %v761_v26 = vadd.f32 %v752_v5, %v743_v58  ;;  %v5407_v58 = vmov 1   ;;  %v964_v49 = vadd.f32 %v956_v21, %v948_v19 }
  0xa6   :  { %v892_v20 = vadd.f32 %v884_v53, %v876_v54  ;;  %386 = vperm.xlu1 %3319, %v3447_v10   ;;  %v869_v18 = vmul.f32 %v3626_v47, %v3716_v37  ;;  %v618_v54 = vmul.f32 %v3631_v48, %v3610_v43  ;;  %v592_v43 = vmul.f32 %v3621_v46, %v3662_v60 }
  0xa7   :  { %v672_v41 = vmul.f32 %v3680_v8, %v3716_v37  ;;  %v980_v21 = vadd.f32 %v3724_v24, %v964_v49 }
  0xa8   :  { %v3752_v53 = vadd.f32 %v900_v52, %v892_v20  ;;  %v877_v39 = vadd.f32 %v869_v18, %v861_v17  ;;  %v3768_v20 = vmul.f32 %v3680_v8, %v3602_v40  ;;  %v3772_v52 = vmul.f32 %v3631_v48, %v3602_v40 }
  0xa9   :  { %v3758_v30 = vpop.permute.xlu1 %509  ;;  %v3760_v0 = vpop.permute.xlu0 %644  ;;  %v609_v17 = vadd.f32 %v600_v63, %v591_v31  ;;  %v555_v18 = vadd.f32 %v3750_v50, %v546_v12  ;;  %v1036_v40 = vmul.f32 %v3621_v46, %v3616_v45  ;;  %v680_v12 = vadd.f32 %v671_v36, %v626_v57 }
  0xaa   :  { %3321 = vset.pattern.permute.xlu1 %v5339_v9  ;;  %v862_v15 = vmul.f32 %v3621_v46, %v3758_v30  ;;  %v601_v9 = vmul.f32 %v3626_v47, %v3709_v55  ;;  %v870_v31 = vmul.f32 %v3626_v47, %v3760_v0  ;;  %v619_v44 = vmul.f32 %v3631_v48, %v3758_v30 }
  0xab   :  { %799 = vperm.xlu1 %3321, %v3472_v14   ;;  %v627_v63 = vadd.f32 %v618_v54, %v609_v17  ;;  %v573_v54 = vmul.f32 0.2, %v555_v18  ;;  %v744_v17 = vadd.f32 %v735_v1, %v726_v29  ;;  %v806_v57 = vmul.f32 %v3680_v8, %v3616_v45 }
  0xac   :  { %v3802_v35 = vadd.f32 %v870_v31, %v862_v15  ;;  %v3813_v36 = vadd.f32 %v1044_v27, %v1036_v40  ;;  %vm564_vm1 = vcmp.gt.f32.partialorder %v555_v18, 0.0  ;;  %v3817_v15 = vadd.f32 %v3750_v50, %v680_v12 }
  0xad   :  { %v3795_v23 = vpop.permute.xlu0 %660  ;;  %v815_v1 = vadd.f32 %v806_v57, %v761_v26  ;;  %v753_v29 = vmul.f32 %v3631_v48, %v3716_v37  ;;  %v681_v32 = vadd.f32 %v672_v41, %v627_v63  ;;  %v3829_v27 = vmul.f32 %v3680_v8, %v3662_v60 }
  0xae   :  { %5406 = vst [vmem:[#allocation17_spill] sm:$0xff] %v3795_v23  ;;  %v3804_v42 = vpop.permute.xlu1 %775  ;;  %v610_v23 = vadd.f32 %v601_v9, %v592_v43  ;;  %v673_v9 = vmul.f32 %v3680_v8, %v3760_v0  ;;  %v3833_v26 = vmul.f32 %v3631_v48, %v3662_v60  ;;  %v3841_v19 = vsel %vm564_vm1, %v555_v18, %v573_v54 }
  0xaf   :  { %v885_v5 = vmul.f32 %v3631_v48, %v3804_v42  ;;  %3322 = vset.pattern.permute.xlu1 %v5407_v58  ;;  %5409 = vst [vmem:[#allocation19_spill] sm:$0xff] %v3841_v19  ;;  %v727_v63 = vmul.f32 %v3621_v46, %v3709_v55  ;;  %v807_v43 = vmul.f32 %v3680_v8, %v3804_v42  ;;  %v707_v12 = vmul.f32 0.2, %v3817_v15 }
  0xb0   :  { %133 = vperm.xlu1 %3322, %v3472_v14   ;;  %v628_v45 = vadd.f32 %v619_v44, %v610_v23  ;;  %v3845_v23 = vmul.f32 %v3680_v8, %v3709_v55  ;;  %v3849_v44 = vmul.f32 %v3631_v48, %v3709_v55  ;;  %v824_v18 = vadd.f32 %v3750_v50, %v815_v1 }
  0xb1   :  { %v3821_v31 = vadd.f32 %v885_v5, %v877_v39  ;;  %v3823_v34 = vpop.permute.xlu0 %664  ;;  %v3837_v39 = vmul.f32 %v3626_v47, %v3662_v60  ;;  %v5410_v60 = vmov 3   ;;  %v762_v41 = vadd.f32 %v753_v29, %v744_v17 }
  0xb2   :  { %5408 = vst [vmem:[#allocation18_spill] sm:$0xff] %v3823_v34  ;;  %v949_v54 = vmul.f32 %v3621_v46, %v3716_v37  ;;  %v690_v57 = vadd.f32 %v3750_v50, %v681_v32  ;;  %v736_v55 = vmul.f32 %v3626_v47, %v3758_v30  ;;  %v682_v5 = vadd.f32 %v673_v9, %v628_v45 }
  0xb3   :  { %v3839_v40 = vpop.permute.xlu1 %233  ;;  %v916_v7 = vadd.f32 %v3750_v50, %v3752_v53  ;;  %v3872_v29 = vmul.f32 %v3680_v8, %v3758_v30  ;;  %v754_v32 = vmul.f32 %v3631_v48, %v3760_v0  ;;  %v816_v45 = vadd.f32 %v807_v43, %v762_v41 }
  0xb4   :  { %3324 = vset.pattern.permute.xlu1 %v5410_v60  ;;  %vm698_vm2 = vcmp.gt.f32.partialorder %v3817_v15, 0.0  ;;  %v708_v2 = vmul.f32 0.2, %v690_v57  ;;  %v745_v30 = vadd.f32 %v736_v55, %v727_v63  ;;  %v691_v61 = vadd.f32 %v3750_v50, %v682_v5 }
  0xb5   :  { %245 = vperm.xlu1 %3324, %v3465_v13   ;;  %v957_v43 = vmul.f32 %v3626_v47, %v3804_v42  ;;  %v825_v63 = vadd.f32 %v3750_v50, %v816_v45  ;;  %v842_v55 = vmul.f32 0.2, %v824_v18  ;;  %vm924_vm3 = vcmp.gt.f32.partialorder %v916_v7, 0.0 }
  0xb6   :  { %v110_v34 = vpop.permute.xlu0 %109  ;;  %vm833_vm4 = vcmp.gt.f32.partialorder %v824_v18, 0.0  ;;  %vm699_vm5 = vcmp.gt.f32.partialorder %v690_v57, 0.0  ;;  %vm700_vm6 = vcmp.gt.f32.partialorder %v691_v61, 0.0 }
  0xb7   :  { %v145_v1 = vmul.f32 %v3626_v47, %v110_v34  ;;  %v321_v17 = vmul.f32 %v3621_v46, %v110_v34  ;;  %v988_v37 = vmul.f32 %v3680_v8, %v110_v34  ;;  %v1060_v58 = vmul.f32 %v3631_v48, %v110_v34 }
  0xb8   :  { %v3876_v9 = vpop.permute.xlu1 %378  ;;  %v932_v34 = vmul.f32 0.2, %v916_v7  ;;  %vm834_vm7 = vcmp.gt.f32.partialorder %v825_v63, 0.0 }
  0xb9   :  { %v154_v49 = vadd.f32 %v145_v1, %v3713_v56  ;;  %v339_v24 = vadd.f32 %v3737_v22, %v321_v17  ;;  %v996_v53 = vadd.f32 %v988_v37, %v980_v21  ;;  %3325 = vset.pattern.permute.xlu1 %v5411_v3  ;;  %v3894_v1 = vmul.f32 %v3621_v46, %v3760_v0 }
  0xba   :  { %521 = vperm.xlu1 %3325, %v3447_v10   ;;  %v3887_v41 = vpop.permute.xlu0 %121  ;;  %v763_v17 = vadd.f32 %v754_v32, %v745_v30  ;;  %v3906_v37 = vmul.f32 %v3621_v46, %v3804_v42  ;;  %v5413_v0 = vmov 2   ;;  %v3922_v42 = vmul.f32 %v3680_v8, %v3839_v40 }
  0xbb   :  { %v212_v56 = vadd.f32 %v3720_v59, %v154_v49  ;;  %v357_v22 = vadd.f32 %v3697_v28, %v339_v24  ;;  %v1004_v21 = vadd.f32 %v3750_v50, %v996_v53  ;;  %v1068_v59 = vadd.f32 %v1060_v58, %v3813_v36 }
  0xbc   :  { %v3916_v49 = vadd.f32 %v957_v43, %v949_v54  ;;  %v940_v36 = vsel %vm924_vm3, %v916_v7, %v932_v34  ;;  %v3924_v32 = vsel %vm833_vm4, %v824_v18, %v842_v55  ;;  %v843_v24 = vmul.f32 0.2, %v825_v63 }
  0xbd   :  { %v3898_v5 = vadd.f32 %v3693_v25, %v212_v56  ;;  %v3901_v10 = vadd.f32 %v3764_v6, %v357_v22  ;;  %v514_v28 = vpop.permute.xlu1 %513  ;;  %v3914_v25 = vsel %vm698_vm2, %v3817_v15, %v707_v12  ;;  %v709_v6 = vmul.f32 0.2, %v691_v61 }
  0xbe   :  { %3327 = vset.pattern.permute.xlu1 %v5413_v0  ;;  %v3909_v45 = vpop.permute.xlu0 %137  ;;  %v1020_v58 = vmul.f32 0.2, %v1004_v21  ;;  %v1084_v15 = vadd.f32 %v3741_v38, %v1068_v59  ;;  %v717_v12 = vsel %vm699_vm5, %v690_v57, %v708_v2  ;;  %vm1012_vm8 = vcmp.gt.f32.partialorder %v1004_v21, 0.0 }
  0xbf   :  { %5412 = vst [vmem:[#allocation20_spill] sm:$0xff] %v3901_v10  ;;  %5414 = vst [vmem:[#allocation21_spill] sm:$0xff] %v3909_v45  ;;  %195 = vperm.xlu1 %3327, %v3484_v16   ;;  %v3929_v54 = vmul.f32 %v3631_v48, %v3839_v40  ;;  %v3933_v7 = vmul.f32 %v3626_v47, %v3839_v40  ;;  %v593_v53 = vmul.f32 %v3621_v46, %v3839_v40  ;;  %v5415_v57 = vmov 4  }
  0xc0   :  { %v1160_v30 = vmax.f32 %v3924_v32, %v940_v36  ;;  %v602_v38 = vmul.f32 %v3626_v47, %v3876_v9  ;;  %v3944_v56 = vsel %vm700_vm6, %v691_v61, %v709_v6  ;;  %v3946_v22 = vsel %vm1012_vm8, %v1004_v21, %v1020_v58 }
  0xc1   :  { %v3950_v34 = vmul.f32 %v3680_v8, %v3876_v9  ;;  %v3956_v55 = vsel %vm834_vm7, %v825_v63, %v843_v24  ;;  %v1143_v59 = vmax.f32 %v3841_v19, %v717_v12  ;;  %v1092_v0 = vadd.f32 %v3750_v50, %v1084_v15 }
  0xc2   :  { %v780_v18 = vpop.permute.xlu1 %779  ;;  %v485_v61 = vmul.f32 %v3631_v48, %v3876_v9  ;;  %v728_v58 = vmul.f32 %v3621_v46, %v3876_v9  ;;  %v3969_v63 = vmax.f32 %v1160_v30, %v3946_v22  ;;  %v611_v24 = vadd.f32 %v602_v38, %v593_v53 }
  0xc3   :  { %v886_v2 = vmul.f32 %v3631_v48, %v780_v18  ;;  %3328 = vset.pattern.permute.xlu1 %v5415_v57  ;;  %v3942_v43 = vpop.permute.xlu0 %163  ;;  %v808_v21 = vmul.f32 %v3680_v8, %v780_v18  ;;  %v958_v36 = vmul.f32 %v3626_v47, %v780_v18  ;;  %v620_v15 = vmul.f32 %v3631_v48, %v514_v28 }
  0xc4   :  { %5416 = vst [vmem:[#allocation22_spill] sm:$0xff] %v3942_v43  ;;  %v455_v40 = vmul.f32 %v3621_v46, %v3942_v43  ;;  %390 = vperm.xlu1 %3328, %v3465_v13   ;;  %5417 = vst [vmem:[#allocation23_spill] sm:$0xff] %v3969_v63  ;;  %v737_v12 = vmul.f32 %v3626_v47, %v514_v28  ;;  %v1038_v9 = vmul.f32 %v3621_v46, %v780_v18 }
  0xc5   :  { %v894_v6 = vadd.f32 %v886_v2, %v3802_v35  ;;  %v539_v2 = vmul.f32 %v3680_v8, %v514_v28  ;;  %v863_v53 = vmul.f32 %v3621_v46, %v514_v28  ;;  %v817_v30 = vadd.f32 %v808_v21, %v763_v17 }
  0xc6   :  { %v473_v43 = vadd.f32 %v3684_v11, %v455_v40  ;;  %vm1100_vm9 = vcmp.gt.f32.partialorder %v1092_v0, 0.0  ;;  %v966_v38 = vadd.f32 %v958_v36, %v3894_v1  ;;  %v3993_v28 = vmax.f32 %v1143_v59, %v3956_v55 }
  0xc7   :  { %v3974_v19 = vadd.f32 %v3768_v20, %v894_v6  ;;  %v59_v45 = vpop.permute.xlu1 %58  ;;  %v172_v35 = vpop.permute.xlu0 %171  ;;  %v1108_v20 = vmul.f32 0.2, %v1092_v0  ;;  %v3996_v17 = vadd.f32 %v3776_v4, %v1038_v9  ;;  %v4007_v21 = vadd.f32 %v3750_v50, %v817_v30 }
  0xc8   :  { %v491_v10 = vadd.f32 %v3668_v62, %v473_v43  ;;  %v901_v11 = vmul.f32 %v3680_v8, %v59_v45  ;;  %3329 = vset.pattern.permute.xlu1 %v5410_v60  ;;  %v457_v18 = vmul.f32 %v3621_v46, %v172_v35  ;;  %v629_v62 = vadd.f32 %v620_v15, %v611_v24 }
  0xc9   :  { %5418 = vst [vmem:[#allocation24_spill] sm:$0xff] %v3974_v19  ;;  %253 = vperm.xlu1 %3329, %v3484_v16   ;;  %v3987_v43 = vadd.f32 %v737_v12, %v728_v58  ;;  %v973_v60 = vmul.f32 %v3631_v48, %v59_v45  ;;  %5419 = vst [vmem:[#allocation25_spill] sm:$0xff] %v3993_v28  ;;  %v4014_v4 = vsel %vm1100_vm9, %v1092_v0, %v1108_v20 }
  0xca   :  { %v545_v40 = vadd.f32 %v3703_v51, %v491_v10  ;;  %v909_v6 = vadd.f32 %v901_v11, %v3821_v31  ;;  %v1045_v51 = vmul.f32 %v3626_v47, %v59_v45  ;;  %v4004_v10 = vadd.f32 %v3750_v50, %v3898_v5 }
  0xcb   :  { %v3990_v63 = vpop.permute.xlu0 %175  ;;  %v475_v58 = vadd.f32 %v3837_v39, %v457_v18  ;;  %v97_v36 = vmul.f32 %v3621_v46, %v59_v45  ;;  %v4022_v39 = vadd.f32 %v3772_v52, %v966_v38  ;;  %v981_v15 = vadd.f32 %v973_v60, %v3916_v49 }
  0xcc   :  { %v554_v1 = vadd.f32 %v3750_v50, %v545_v40  ;;  %v4000_v31 = vpop.permute.xlu1 %648  ;;  %v458_v59 = vmul.f32 %v3621_v46, %v3990_v63  ;;  %v917_v24 = vadd.f32 %v3750_v50, %v909_v6  ;;  %v331_v12 = vmul.f32 %v3626_v47, %v172_v35 }
  0xcd   :  { %3330 = vset.pattern.permute.xlu1 %v5411_v3  ;;  %v871_v5 = vmul.f32 %v3626_v47, %v4000_v31  ;;  %v204_v3 = vmul.f32 %v3631_v48, %v172_v35  ;;  %v1053_v45 = vadd.f32 %v1045_v51, %v3906_v37  ;;  %v493_v30 = vadd.f32 %v3849_v44, %v475_v58 }
  0xce   :  { %525 = vperm.xlu1 %3330, %v3465_v13   ;;  %v476_v0 = vadd.f32 %v3933_v7, %v458_v59  ;;  %vm563_vm11 = vcmp.gt.f32.partialorder %v554_v1, 0.0  ;;  %v572_v11 = vmul.f32 0.2, %v554_v1  ;;  %v1077_v13 = vmul.f32 %v3680_v8, %v172_v35 }
  0xcf   :  { %v879_v9 = vadd.f32 %v871_v5, %v863_v53  ;;  %v674_v52 = vmul.f32 %v3680_v8, %v4000_v31  ;;  %v933_v38 = vmul.f32 0.2, %v917_v24  ;;  %v755_v37 = vmul.f32 %v3631_v48, %v4000_v31 }
  0xd0   :  { %v494_v20 = vadd.f32 %v485_v61, %v476_v0  ;;  %v4040_v35 = vsel %vm563_vm11, %v554_v1, %v572_v11  ;;  %vm925_vm12 = vcmp.gt.f32.partialorder %v917_v24, 0.0  ;;  %v547_v51 = vadd.f32 %v3872_v29, %v493_v30 }
  0xd1   :  { %v114_v49 = vpop.permute.xlu1 %113  ;;  %5420 = vst [vmem:[#allocation26_spill] sm:$0xff] %v4040_v35  ;;  %v1142_v60 = vmax.f32 %v4040_v35, %v3914_v25  ;;  %v683_v59 = vadd.f32 %v674_v52, %v629_v62  ;;  %v4067_v62 = vmul.f32 %v3631_v48, %v3990_v63  ;;  %v5422_v11 = vmov 0.0   ;;  %v5423_v52 = vld [vmem:[#allocation13_spill] sm:$0xff] }
  0xd2   :  { %v146_v40 = vmul.f32 %v3626_v47, %v114_v49  ;;  %v322_v6 = vmul.f32 %v3621_v46, %v114_v49  ;;  %v989_v7 = vmul.f32 %v3680_v8, %v114_v49  ;;  %529 = vperm.xlu1 %3330, %v3472_v14   ;;  %v1061_v44 = vmul.f32 %v3631_v48, %v114_v49 }
  0xd3   :  { %v548_v58 = vadd.f32 %v539_v2, %v494_v20  ;;  %v4048_v1 = vmax.f32 %v1142_v60, %v3924_v32  ;;  %v5424_v49 = vmov 0   ;;  %vm835_vm14 = vcmp.gt.f32.partialorder %v4007_v21, 0.0 }
  0xd4   :  { %v155_v61 = vadd.f32 %v146_v40, %v97_v36  ;;  %v340_v53 = vadd.f32 %v331_v12, %v322_v6  ;;  %v997_v18 = vadd.f32 %v989_v7, %v981_v15  ;;  %v1069_v5 = vadd.f32 %v1061_v44, %v1053_v45  ;;  %v5425_v40 = vld [vmem:[#allocation2_spill] sm:$0xff] }
  0xd5   :  { %5421 = vst [vmem:[#allocation27_spill] sm:$0xff] %v4048_v1  ;;  %2799 = vmatmul.mubr.msk.f32.vlgmr.msra.gmra.mrb[0].mxu0 %vm1211_vm10, %v4048_v1  ;;  %v844_v12 = vmul.f32 0.2, %v4007_v21  ;;  %v764_v45 = vadd.f32 %v755_v37, %v3987_v43  ;;  %vm294_vm15 = vcmp.gt.f32.partialorder %v4004_v10, 0.0  ;;  %v303_v6 = vmul.f32 0.2, %v4004_v10 }
  0xd6   :  { %v213_v14 = vadd.f32 %v204_v3, %v155_v61  ;;  %v358_v0 = vadd.f32 %v3833_v26, %v340_v53  ;;  %v1005_v19 = vadd.f32 %v3750_v50, %v997_v18  ;;  %3332 = vset.pattern.permute.xlu1 %v5415_v57  ;;  %v4051_v36 = vpop.permute.xlu1 %783  ;;  %v1085_v15 = vadd.f32 %v1077_v13, %v1069_v5 }
  0xd7   :  { %v809_v25 = vmul.f32 %v3680_v8, %v4051_v36  ;;  %v887_v29 = vmul.f32 %v3631_v48, %v4051_v36  ;;  %398 = vperm.xlu1 %3332, %v3484_v16   ;;  %v941_v26 = vsel %vm925_vm12, %v917_v24, %v933_v38  ;;  %3109 = vmatpush3.bf16.msra.mxu0 %v3559_v33  ;;  %v5428_v5 = vmov 1  }
  0xd8   :  { %v271_v2 = vadd.f32 %v3829_v27, %v213_v14  ;;  %v4061_v32 = vadd.f32 %v3845_v23, %v358_v0  ;;  %vm1013_vm13 = vcmp.gt.f32.partialorder %v1005_v19, 0.0  ;;  %v1021_v57 = vmul.f32 0.2, %v1005_v19  ;;  %2801 = vmatprep.mubr.msk.f32.mxu0 %vm3354_vm0, %v5422_v11  ;;  %3111 = vmatprep.subr.bf16.mxu0 %v5423_v52 }
  0xd9   :  { %v895_v3 = vadd.f32 %v887_v29, %v879_v9  ;;  %v1176_v27 = vmax.f32 %v3946_v22, %v4014_v4  ;;  %v556_v23 = vadd.f32 %v3750_v50, %v547_v51  ;;  %v692_v24 = vadd.f32 %v3750_v50, %v683_v59  ;;  %2802 = vmatmul.mubr.msk.f32.gmra.mrb[2].mxu0 %vm1211_vm10, %v3993_v28 }
  0xda   :  { %v4078_v30 = vsel %vm1013_vm13, %v1005_v19, %v1021_v57  ;;  %v557_v9 = vadd.f32 %v3750_v50, %v548_v58  ;;  %v1093_v13 = vadd.f32 %v3750_v50, %v1085_v15  ;;  %v1161_v20 = vmax.f32 %v3956_v55, %v941_v26  ;;  %2804 = vmatprep.mubr.msk.f32.mxu0 %vm3354_vm0, %v5422_v11  ;;  %v5427_v58 = vld [vmem:[#allocation14_spill] sm:$0xff] }
  0xdb   :  { %3334 = vset.pattern.permute.xlu1 %v5424_v49  ;;  %v4085_v38 = vpop.permute.xlu1 %68  ;;  %v4090_v43 = vadd.f32 %v3750_v50, %v271_v2  ;;  %v818_v19 = vadd.f32 %v809_v25, %v764_v45  ;;  %v332_v7 = vmul.f32 %v3626_v47, %v3990_v63  ;;  %v1078_v37 = vmul.f32 %v3680_v8, %v3990_v63  ;;  %v5430_v45 = vld [vmem:[#allocation16_spill] sm:$0xff] }
  0xdc   :  { %v903_v55 = vmul.f32 %v3680_v8, %v4085_v38  ;;  %48 = vperm.xlu1 %3334, %v5425_v40   ;;  %v951_v44 = vmul.f32 %v3621_v46, %v4000_v31  ;;  %v4105_v61 = vmax.f32 %v1161_v20, %v4078_v30  ;;  %3113 = vmatpush3.bf16.msra.mxu0 %v5423_v52  ;;  %v710_v53 = vmul.f32 0.2, %v692_v24  ;;  %v5451_v52 = vld [vmem:[#allocation18_spill] sm:$0xff] }
  0xdd   :  { %vm565_vm1 = vcmp.gt.f32.partialorder %v556_v23, 0.0  ;;  %v4115_v60 = vsel %vm835_vm14, %v4007_v21, %v844_v12  ;;  %vm1101_vm2 = vcmp.gt.f32.partialorder %v1093_v13, 0.0  ;;  %v1109_v63 = vmul.f32 0.2, %v1093_v13  ;;  %3115 = vmatprep.subr.bf16.mxu0 %v5427_v58  ;;  %v5429_v12 = vld [vmem:[#allocation15_spill] sm:$0xff] }
  0xde   :  { %5426 = vst [vmem:[#allocation2_spill] sm:$0xff] %v4105_v61  ;;  %v4108_v18 = vadd.f32 %v903_v55, %v895_v3  ;;  %v959_v31 = vmul.f32 %v3626_v47, %v4051_v36  ;;  %v574_v51 = vmul.f32 0.2, %v556_v23  ;;  %vm295_vm3 = vcmp.gt.f32.partialorder %v4090_v43, 0.0  ;;  %v3339_v3 = vld [vmem:[%s5313_s0] sm:$0xff] }
  0xdf   :  { %v827_v59 = vadd.f32 %v3750_v50, %v818_v19  ;;  %vm566_vm4 = vcmp.gt.f32.partialorder %v557_v9, 0.0  ;;  %v575_v0 = vmul.f32 0.2, %v557_v9  ;;  %vm701_vm5 = vcmp.gt.f32.partialorder %v692_v24, 0.0 }
  0xe0   :  { %3335 = vset.pattern.permute.xlu1 %v5428_v5  ;;  %v118_v14 = vpop.permute.xlu1 %117  ;;  %v4123_v15 = vsel %vm565_vm1, %v556_v23, %v574_v51  ;;  %3117 = vmatpush3.bf16.msra.mxu0 %v5427_v58  ;;  %v304_v29 = vmul.f32 0.2, %v4090_v43  ;;  %v1117_v23 = vsel %vm1101_vm2, %v1093_v13, %v1109_v63  ;;  %v719_v51 = vsel %vm701_vm5, %v692_v24, %v710_v53 }
  0xe1   :  { %v147_v21 = vmul.f32 %v3626_v47, %v118_v14  ;;  %v323_v25 = vmul.f32 %v3621_v46, %v118_v14  ;;  %v1144_v26 = vmax.f32 %v4123_v15, %v3944_v56  ;;  %v990_v2 = vmul.f32 %v3680_v8, %v118_v14  ;;  %105 = vperm.xlu1 %3335, %v3339_v3  }
  0xe2   :  { %v1062_v57 = vmul.f32 %v3631_v48, %v118_v14  ;;  %3119 = vmatprep.subr.bf16.mxu0 %v5429_v12  ;;  %v4140_v19 = vsel %vm566_vm4, %v557_v9, %v575_v0  ;;  %vm836_vm6 = vcmp.gt.f32.partialorder %v827_v59, 0.0  ;;  %v845_v13 = vmul.f32 0.2, %v827_v59  ;;  %v4152_v9 = vpop.permute.xlu0 %187 }
  0xe3   :  { %v156_v20 = vadd.f32 %v147_v21, %v5430_v45  ;;  %v341_v49 = vadd.f32 %v332_v7, %v323_v25  ;;  %v4143_v56 = vmax.f32 %v1144_v26, %v4115_v60  ;;  %v998_v55 = vadd.f32 %v990_v2, %v4022_v39  ;;  %v5436_v21 = vld [vmem:[#allocation12_spill] sm:$0xff] }
  0xe4   :  { %v1070_v40 = vadd.f32 %v1062_v57, %v3996_v17  ;;  %3121 = vmatpush3.bf16.msra.mxu0 %v5429_v12  ;;  %v975_v63 = vmul.f32 %v3631_v48, %v4085_v38  ;;  %v1145_v39 = vmax.f32 %v4140_v19, %v719_v51  ;;  %v4170_v53 = vsel %vm836_vm6, %v827_v59, %v845_v13 }
  0xe5   :  { %5431 = vst [vmem:[#allocation16_spill] sm:$0xff] %v4143_v56  ;;  %v214_v5 = vadd.f32 %v4067_v62, %v156_v20  ;;  %v359_v14 = vadd.f32 %v3929_v54, %v341_v49  ;;  %v4150_v7 = vpop.permute.xlu1 %73  ;;  %2805 = vmatmul.mubr.msk.f32.gmra.mrb[4].mxu0 %vm1211_vm10, %v4143_v56  ;;  %v4162_v54 = vsel %vm294_vm15, %v4004_v10, %v303_v6  ;;  %v5435_v6 = vmov 7  }
  0xe6   :  { %v1086_v17 = vadd.f32 %v1078_v37, %v1070_v40  ;;  %5432 = vst [vmem:[#allocation28_spill] sm:$0xff] %v4162_v54  ;;  %v1177_v62 = vmax.f32 %v4078_v30, %v1117_v23  ;;  %2807 = vmatprep.mubr.msk.f32.mxu0 %vm3354_vm0, %v5422_v11  ;;  %v4176_v37 = vmax.f32 %v1176_v27, %v4162_v54  ;;  %v5439_v27 = vld [vmem:[#allocation10_spill] sm:$0xff] }
  0xe7   :  { %v4166_v24 = vadd.f32 %v3950_v34, %v359_v14  ;;  %v272_v0 = vadd.f32 %v3922_v42, %v214_v5  ;;  %v1006_v10 = vadd.f32 %v3750_v50, %v998_v55  ;;  %v4182_v34 = vmax.f32 %v1145_v39, %v4170_v53  ;;  %3337 = vset.pattern.permute.xlu1 %v5435_v6  ;;  %v5437_v42 = vld [vmem:[#allocation8_spill] sm:$0xff]  ;;  %v5441_v39 = vld [vmem:[#allocation9_spill] sm:$0xff] }
  0xe8   :  { %5433 = vst [vmem:[#allocation29_spill] sm:$0xff] %v4176_v37  ;;  %v1094_v30 = vadd.f32 %v3750_v50, %v1086_v17  ;;  %v864_v59 = vmul.f32 %v3621_v46, %v5436_v21  ;;  %v967_v25 = vadd.f32 %v959_v31, %v951_v44  ;;  %v4190_v22 = vsel %vm295_vm3, %v4090_v43, %v304_v29  ;;  %v4211_v29 = vpop.permute.xlu0 %191 }
  0xe9   :  { %5434 = vst [vmem:[#allocation30_spill] sm:$0xff] %v4182_v34  ;;  %803 = vperm.xlu1 %3337, %v3484_v16   ;;  %v4195_v4 = vmul.f32 %v3680_v8, %v5437_v42  ;;  %v888_v26 = vmul.f32 %v3631_v48, %v5439_v27  ;;  %2808 = vmatmul.mubr.msk.f32.gmra.mrb[6].mxu0 %vm1211_vm10, %v4182_v34  ;;  %v1022_v3 = vmul.f32 0.2, %v1006_v10  ;;  %vm1014_vm8 = vcmp.gt.f32.partialorder %v1006_v10, 0.0 }
  0xea   :  { %v4201_v2 = vpop.permute.xlu1 %652  ;;  %v991_v44 = vmul.f32 %v3680_v8, %v3887_v41  ;;  %v983_v31 = vadd.f32 %v975_v63, %v967_v25  ;;  %v1047_v43 = vmul.f32 %v3626_v47, %v4085_v38  ;;  %2884 = vmatprep.mubr.msk.f32.mxu0 %vm1211_vm10, %v4176_v37  ;;  %v4214_v57 = vmax.f32 %v1177_v62, %v4190_v22 }
  0xeb   :  { %5438 = vst [vmem:[#allocation12_spill] sm:$0xff] %v4195_v4  ;;  %v872_v16 = vmul.f32 %v3626_v47, %v4201_v2  ;;  %v287_v23 = vadd.f32 %v3750_v50, %v272_v0  ;;  %vm1102_vm7 = vcmp.gt.f32.partialorder %v1094_v30, 0.0  ;;  %v148_v45 = vmul.f32 %v3626_v47, %v3887_v41 }
  0xec   :  { %5440 = vst [vmem:[#allocation8_spill] sm:$0xff] %v4214_v57  ;;  %v1110_v49 = vmul.f32 0.2, %v1094_v30  ;;  %v1039_v55 = vmul.f32 %v3621_v46, %v4051_v36  ;;  %v99_v40 = vmul.f32 %v3621_v46, %v4085_v38  ;;  %v999_v5 = vadd.f32 %v991_v44, %v983_v31  ;;  %v238_v42 = vpop.permute.xlu0 %237  ;;  %v5444_v31 = vld [vmem:[#allocation11_spill] sm:$0xff] }
  0xed   :  { %v880_v20 = vadd.f32 %v872_v16, %v864_v59  ;;  %2885 = vmatmul.mubr.msk.f32.vlgmr.msra.gmra.mrb[8].mxu0 %vm1211_vm10, %v4214_v57  ;;  %vm296_vm9 = vcmp.gt.f32.partialorder %v287_v23, 0.0  ;;  %v305_v51 = vmul.f32 0.2, %v287_v23  ;;  %v904_v14 = vmul.f32 %v3680_v8, %v4150_v7 }
  0xee   :  { %v1118_v17 = vsel %vm1102_vm7, %v1094_v30, %v1110_v49  ;;  %v4231_v62 = vmul.f32 %v3680_v8, %v5441_v39  ;;  %v1063_v36 = vmul.f32 %v3631_v48, %v3887_v41  ;;  %v1055_v38 = vadd.f32 %v1047_v43, %v1039_v55 }
  0xef   :  { %v896_v13 = vadd.f32 %v888_v26, %v880_v20  ;;  %v4227_v63 = vpop.permute.xlu1 %78  ;;  %v4235_v0 = vsel %vm1014_vm8, %v1006_v10, %v1022_v3  ;;  %v4239_v6 = vmul.f32 %v3631_v48, %v5441_v39  ;;  %v4243_v25 = vsel %vm296_vm9, %v287_v23, %v305_v51 }
  0xf0   :  { %5442 = vst [vmem:[#allocation10_spill] sm:$0xff] %v4231_v62  ;;  %v1178_v30 = vmax.f32 %v4235_v0, %v1118_v17  ;;  %v4248_v26 = vmul.f32 %v3680_v8, %v5439_v27  ;;  %v4252_v44 = vmul.f32 %v3626_v47, %v5439_v27  ;;  %v4256_v10 = vmul.f32 %v3621_v46, %v5439_v27 }
  0xf1   :  { %5443 = vst [vmem:[#allocation9_spill] sm:$0xff] %v4239_v6  ;;  %v4241_v59 = vadd.f32 %v904_v14, %v896_v13  ;;  %v4260_v43 = vmul.f32 %v3680_v8, %v5444_v31  ;;  %v324_v16 = vmul.f32 %v3621_v46, %v3887_v41  ;;  %v157_v3 = vadd.f32 %v148_v45, %v99_v40 }
  0xf2   :  { %v1007_v23 = vadd.f32 %v3750_v50, %v999_v5  ;;  %v4266_v20 = vmax.f32 %v1178_v30, %v4243_v25  ;;  %v1071_v55 = vadd.f32 %v1063_v36, %v1055_v38  ;;  %v264_v51 = vmul.f32 %v3680_v8, %v238_v42  ;;  %v2536_v38 = vld [vmem:[%s5314_s3 + $0x40] sm:$0xff]  ;;  %v2537_v30 = vld [vmem:[%s5314_s3 + $0x48] sm:$0xff] }
  0xf3   :  { %v351_v27 = vmul.f32 %v3631_v48, %v238_v42  ;;  %v468_v14 = vmul.f32 %v3626_v47, %v238_v42  ;;  %v4279_v5 = vmul.f32 %v3631_v48, %v5444_v31  ;;  %v540_v17 = vmul.f32 %v3680_v8, %v5436_v21 }
  0xf4   :  { %5445 = vst [vmem:[#allocation11_spill] sm:$0xff] %v4266_v20  ;;  %v180_v49 = vpop.permute.xlu1 %179  ;;  %2887 = vmatprep.mubr.msk.f32.mxu0 %vm1211_vm10, %v4266_v20  ;;  %v621_v39 = vmul.f32 %v3631_v48, %v5436_v21  ;;  %v738_v36 = vmul.f32 %v3626_v47, %v5436_v21  ;;  %v952_v35 = vmul.f32 %v3621_v46, %v4201_v2  ;;  %vm1015_vm11 = vcmp.gt.f32.partialorder %v1007_v23, 0.0 }
  0xf5   :  { %v206_v13 = vmul.f32 %v3631_v48, %v180_v49  ;;  %v333_v41 = vmul.f32 %v3626_v47, %v180_v49  ;;  %v459_v45 = vmul.f32 %v3621_v46, %v180_v49  ;;  %v1079_v40 = vmul.f32 %v3680_v8, %v180_v49 }
  0xf6   :  { %v756_v49 = vmul.f32 %v3631_v48, %v4201_v2  ;;  %v594_v21 = vmul.f32 %v3621_v46, %v238_v42  ;;  %v4299_v62 = vpack.c.bf16 %v2537_v30, %v2536_v38  ;;  %v1023_v42 = vmul.f32 0.2, %v1007_v23 }
  0xf7   :  { %v215_v20 = vadd.f32 %v206_v13, %v157_v3  ;;  %v342_v57 = vadd.f32 %v333_v41, %v324_v16  ;;  %v1087_v37 = vadd.f32 %v1079_v40, %v1071_v55  ;;  %v477_v34 = vadd.f32 %v468_v14, %v459_v45 }
  0xf8   :  { %3139 = vmatprep.subr.bf16.mxu0 %v4299_v62 }
  0xf9   :  { %v1095_v56 = vadd.f32 %v3750_v50, %v1087_v37  ;;  %v273_v28 = vadd.f32 %v264_v51, %v215_v20  ;;  %v360_v1 = vadd.f32 %v351_v27, %v342_v57  ;;  %v383_v4 = vpop.permute.xlu1 %382  ;;  %3141 = vmatpush3.bf16.msra.mxu0 %v4299_v62  ;;  %v961_v27 = vmul.f32 %v3626_v47, %v5444_v31 }
  0xfa   :  { %v405_v12 = vmul.f32 %v3680_v8, %v383_v4  ;;  %v486_v3 = vmul.f32 %v3631_v48, %v383_v4  ;;  %v603_v16 = vmul.f32 %v3626_v47, %v383_v4  ;;  %v729_v55 = vmul.f32 %v3621_v46, %v383_v4 }
  0xfb   :  { %v1111_v13 = vmul.f32 0.2, %v1095_v56  ;;  %v288_v14 = vadd.f32 %v3750_v50, %v273_v28  ;;  %vm1103_vm12 = vcmp.gt.f32.partialorder %v1095_v56, 0.0  ;;  %v675_v4 = vmul.f32 %v3680_v8, %v4201_v2  ;;  %v5446_v2 = vld [vmem:[#allocation17_spill] sm:$0xff] }
  0xfc   :  { %v4307_v37 = vadd.f32 %v405_v12, %v360_v1  ;;  %v495_v57 = vadd.f32 %v486_v3, %v477_v34  ;;  %v612_v20 = vadd.f32 %v603_v16, %v594_v21  ;;  %v747_v51 = vadd.f32 %v738_v36, %v729_v55  ;;  %v2538_v12 = vld [vmem:[%s5314_s3 + $0x50] sm:$0xff]  ;;  %v2539_v34 = vld [vmem:[%s5314_s3 + $0x58] sm:$0xff]  ;;  %v2541_v16 = vld [vmem:[%s5314_s3 + $0x68] sm:$0xff] }
  0xfd   :  { %vm297_vm13 = vcmp.gt.f32.partialorder %v288_v14, 0.0  ;;  %v306_v41 = vmul.f32 0.2, %v288_v14  ;;  %v1119_v1 = vsel %vm1103_vm12, %v1095_v56, %v1111_v13  ;;  %v1041_v36 = vmul.f32 %v3621_v46, %v5444_v31  ;;  %v2540_v31 = vld [vmem:[%s5314_s3 + $0x60] sm:$0xff] }
  0xfe   :  { %v549_v28 = vadd.f32 %v540_v17, %v495_v57  ;;  %v630_v45 = vadd.f32 %v621_v39, %v612_v20  ;;  %v765_v40 = vadd.f32 %v756_v49, %v747_v51  ;;  %v4314_v38 = vpop.permute.xlu1 %656  ;;  %v4326_v30 = vmul.f32 %v3680_v8, %v5446_v2  ;;  %v2543_v20 = vld [vmem:[%s5314_s3 + $0x78] sm:$0xff]  ;;  %v5448_v51 = vld [vmem:[#allocation24_spill] sm:$0xff] }
  0xff   :  { %v968_v17 = vadd.f32 %v4252_v44, %v952_v35  ;;  %v4330_v39 = vsel %vm1015_vm11, %v1007_v23, %v1023_v42  ;;  %v953_v3 = vmul.f32 %v3621_v46, %v4314_v38  ;;  %v4344_v35 = vmul.f32 %v3631_v48, %v5446_v2  ;;  %v5447_v46 = vld [vmem:[#allocation20_spill] sm:$0xff] }
 0x100   :  { %v558_v56 = vadd.f32 %v3750_v50, %v549_v28  ;;  %v684_v49 = vadd.f32 %v675_v4, %v630_v45  ;;  %v819_v21 = vadd.f32 %v4248_v26, %v765_v40  ;;  %v4347_v44 = vsel %vm297_vm13, %v288_v14, %v306_v41  ;;  %v2542_v14 = vld [vmem:[%s5314_s3 + $0x70] sm:$0xff] }
 0x101   :  { %v1179_v26 = vmax.f32 %v4330_v39, %v1119_v1  ;;  %v4350_v23 = vpack.c.bf16 %v2539_v34, %v2538_v12  ;;  %v4354_v55 = vadd.f32 %v3750_v50, %v5447_v46  ;;  %v976_v13 = vmul.f32 %v3631_v48, %v4150_v7 }
 0x102   :  { %v693_v42 = vadd.f32 %v3750_v50, %v684_v49  ;;  %v828_v57 = vadd.f32 %v3750_v50, %v819_v21  ;;  %v4368_v4 = vadd.f32 %v3750_v50, %v5448_v51  ;;  %v1049_v41 = vmul.f32 %v3626_v47, %v4227_v63  ;;  %v4398_v21 = vld [vmem:[%s5315_s1 + $0x2] ss:$0 sm:$0xff] }
 0x103   :  { %v4373_v48 = vmax.f32 %v1179_v26, %v4347_v44  ;;  %v4375_v28 = vpop.permute.xlu1 %125  ;;  %3143 = vmatprep.subr.bf16.mxu0 %v4350_v23  ;;  %v4378_v45 = vpack.c.bf16 %v2541_v16, %v2540_v31  ;;  %v969_v40 = vadd.f32 %v961_v27, %v953_v3  ;;  %v984_v1 = vadd.f32 %v976_v13, %v968_v17  ;;  %v4391_v27 = vld [vmem:[%s5315_s1 + $0x1] ss:$0 sm:$0xff] }
 0x104   :  { %v992_v12 = vmul.f32 %v3680_v8, %v4375_v28  ;;  %v576_v34 = vmul.f32 0.2, %v558_v56  ;;  %3145 = vmatpush3.bf16.msra.mxu0 %v4350_v23  ;;  %vm567_vm14 = vcmp.gt.f32.partialorder %v558_v56, 0.0  ;;  %vm702_vm15 = vcmp.gt.f32.partialorder %v693_v42, 0.0 }
 0x105   :  { %5449 = vst [vmem:[#allocation17_spill] sm:$0xff] %v4373_v48  ;;  %2888 = vmatmul.mubr.msk.f32.gmra.mrb[10].mxu0 %vm1211_vm10, %v4373_v48  ;;  %v711_v47 = vmul.f32 0.2, %v693_v42  ;;  %3147 = vmatprep.subr.bf16.mxu0 %v4378_v45  ;;  %v4386_v49 = vpack.c.bf16 %v2543_v20, %v2542_v14  ;;  %v335_v17 = vmul.f32 %v4391_v27, %v4152_v9  ;;  %v846_v16 = vmul.f32 0.2, %v828_v57 }
 0x106   :  { %v977_v3 = vmul.f32 %v4398_v21, %v4227_v63  ;;  %v1000_v31 = vadd.f32 %v992_v12, %v984_v1  ;;  %v919_v26 = vadd.f32 %v3750_v50, %v4108_v18  ;;  %v1048_v46 = vmul.f32 %v4391_v27, %v4150_v7  ;;  %v4411_v20 = vld [vmem:[%s5315_s1] ss:$0 sm:$0xff] }
 0x107   :  { %v4406_v13 = vpop.permute.xlu1 %129  ;;  %v720_v14 = vsel %vm702_vm15, %v693_v42, %v711_v47  ;;  %vm837_vm1 = vcmp.gt.f32.partialorder %v828_v57, 0.0  ;;  %v4418_v18 = vsel %vm567_vm14, %v558_v56, %v576_v34  ;;  %v4424_v42 = vld [vmem:[%s5315_s1 + $0x3] ss:$0 sm:$0xff]  ;;  %v1057_v48 = vadd.f32 %v1049_v41, %v1041_v36 }
 0x108   :  { %v326_v51 = vmul.f32 %v4411_v20, %v4406_v13  ;;  %v985_v1 = vadd.f32 %v977_v3, %v969_v40  ;;  %v993_v12 = vmul.f32 %v3680_v8, %v4406_v13  ;;  %3149 = vmatpush3.bf16.msra.mxu0 %v4378_v45  ;;  %v1081_v47 = vmul.f32 %v4424_v42, %v4152_v9 }
 0x109   :  { %v1065_v40 = vmul.f32 %v4398_v21, %v4406_v13  ;;  %v1146_v3 = vmax.f32 %v4418_v18, %v720_v14  ;;  %3151 = vmatprep.subr.bf16.mxu0 %v4386_v49  ;;  %v1008_v8 = vadd.f32 %v3750_v50, %v1000_v31  ;;  %v4436_v6 = vsel %vm837_vm1, %v828_v57, %v846_v16 }
 0x10a   :  { %v4433_v56 = vadd.f32 %v335_v17, %v326_v51  ;;  %v1001_v34 = vadd.f32 %v993_v12, %v985_v1  ;;  %v4440_v58 = vmul.f32 %v4391_v27, %v5446_v2  ;;  %v4444_v36 = vmul.f32 %v4411_v20, %v5446_v2 }
 0x10b   :  { %v1073_v41 = vadd.f32 %v1065_v40, %v1057_v48  ;;  %v4447_v14 = vmax.f32 %v1146_v3, %v4436_v6  ;;  %v4451_v17 = vmul.f32 %v4424_v42, %v5451_v52  ;;  %v935_v31 = vmul.f32 0.2, %v919_v26 }
 0x10c   :  { %v920_v57 = vadd.f32 %v3750_v50, %v4241_v59  ;;  %v1009_v16 = vadd.f32 %v3750_v50, %v1001_v34  ;;  %v4456_v51 = vpop.permute.xlu1 %83  ;;  %3153 = vmatpush3.bf16.msra.mxu0 %v4386_v49  ;;  %v4461_v2 = vmul.f32 %v4398_v21, %v5451_v52  ;;  %vm926_vm2 = vcmp.gt.f32.partialorder %v4368_v4, 0.0 }
 0x10d   :  { %5450 = vst [vmem:[#allocation20_spill] sm:$0xff] %v4447_v14  ;;  %5452 = vst [vmem:[#allocation24_spill] sm:$0xff] %v4451_v17  ;;  %v1089_v48 = vadd.f32 %v1081_v47, %v1073_v41  ;;  %2811 = vmatmul.mubr.msk.f32.vlgmr.msra.gmra.mrb[0].mxu1 %vm1211_vm10, %v4447_v14  ;;  %vm429_vm3 = vcmp.gt.f32.partialorder %v4354_v55, 0.0  ;;  %v421_v59 = vadd.f32 %v3750_v50, %v4061_v32  ;;  %v1024_v12 = vmul.f32 0.2, %v1008_v8 }
 0x10e   :  { %5453 = vst [vmem:[#allocation18_spill] sm:$0xff] %v4461_v2  ;;  %v1056_v1 = vadd.f32 %v1048_v46, %v4256_v10  ;;  %2813 = vmatprep.mubr.msk.f32.mxu1 %vm3354_vm0, %v5422_v11  ;;  %3155 = vmatprep.subr.bf16.mxu0 %v3559_v33  ;;  %v934_v47 = vmul.f32 0.2, %v4368_v4  ;;  %v1025_v40 = vmul.f32 0.2, %v1009_v16  ;;  %vm1017_vm4 = vcmp.gt.f32.partialorder %v1009_v16, 0.0 }
 0x10f   :  { %v1097_v3 = vadd.f32 %v3750_v50, %v1089_v48  ;;  %vm927_vm5 = vcmp.gt.f32.partialorder %v919_v26, 0.0  ;;  %3096 = vmatpush3.bf16.msra.mxu1 %v4299_v62  ;;  %vm928_vm6 = vcmp.gt.f32.partialorder %v920_v57, 0.0  ;;  %v936_v10 = vmul.f32 0.2, %v920_v57 }
 0x110   :  { %v942_v34 = vsel %vm926_vm2, %v4368_v4, %v934_v47  ;;  %v943_v32 = vsel %vm927_vm5, %v919_v26, %v935_v31  ;;  %v5454_v46 = vmov 0.0|0.0   ;;  %v325_v50 = vmul.f32 %v4411_v20, %v4375_v28 }
 0x111   :  { %3097 = vmatprep.subr.bf16.mxu1 %v5454_v46  ;;  %v4478_v41 = vpop.permute.xlu1 %183  ;;  %vm1105_vm7 = vcmp.gt.f32.partialorder %v1097_v3, 0.0  ;;  %v1113_v14 = vmul.f32 0.2, %v1097_v3  ;;  %v1162_v33 = vmax.f32 %v4115_v60, %v942_v34  ;;  %v1163_v61 = vmax.f32 %v4170_v53, %v943_v32  ;;  %v4503_v53 = vld [vmem:[%s5316_s2] ss:$0 sm:$0xff]  ;;  %s3358_s2 = smov 48  }
 0x112   :  { %v1064_v62 = vmul.f32 %v4398_v21, %v4375_v28  ;;  %v334_v4 = vmul.f32 %v4391_v27, %v4478_v41  ;;  %vm1016_vm8 = vcmp.gt.f32.partialorder %v1008_v8, 0.0  ;;  %v4489_v26 = vsel %vm1017_vm4, %v1009_v16, %v1025_v40 }
 0x113   :  { %v4491_v31 = vsel %vm1105_vm7, %v1097_v3, %v1113_v14  ;;  %v4494_v48 = vmax.f32 %v1162_v33, %v4235_v0  ;;  %v4497_v60 = vmax.f32 %v1163_v61, %v4330_v39  ;;  %3099 = vmatpush3.bf16.msra.mxu1 %v4350_v23  ;;  %v423_v47 = vadd.f32 %v4503_v53, %v4307_v37 }
 0x114   :  { %v4507_v16 = vadd.f32 %v334_v4, %v325_v50  ;;  %v944_v33 = vsel %vm928_vm6, %v920_v57, %v936_v10  ;;  %3100 = vmatprep.subr.bf16.mxu1 %v5454_v46  ;;  %v1080_v61 = vmul.f32 %v4424_v42, %v4478_v41  ;;  %v4515_v0 = vsel %vm1016_vm8, %v1008_v8, %v1024_v12  ;;  %v5458_v8 = vld [vmem:[#allocation21_spill] sm:$0xff]  ;;  %v250_v4 = vpop.permute.xlu0 %249 }
 0x115   :  { %5455 = vst [vmem:[#allocation31_spill] sm:$0xff] %v4494_v48  ;;  %5456 = vst [vmem:[#allocation32_spill] sm:$0xff] %v4497_v60  ;;  %v1164_v39 = vmax.f32 %v4436_v6, %v944_v33  ;;  %v438_v23 = vmul.f32 0.2, %v4354_v55  ;;  %v4521_v37 = vmul.f32 %v4391_v27, %v5451_v52  ;;  %v422_v40 = vadd.f32 %v4503_v53, %v4166_v24  ;;  %v2579_v24 = vld [vmem:[%s5314_s3 + $0xc0] sm:$0xff] }
 0x116   :  { %v4525_v3 = vpop.permute.xlu1 %795  ;;  %vm430_vm9 = vcmp.gt.f32.partialorder %v421_v59, 0.0  ;;  %v439_v57 = vmul.f32 0.2, %v421_v59  ;;  %v4529_v34 = vmul.f32 %v4411_v20, %v5451_v52  ;;  %v4533_v6 = vmul.f32 %v4391_v27, %v5458_v8  ;;  %v2580_v52 = vld [vmem:[%s5314_s3 + $0xc8] sm:$0xff] }
 0x117   :  { %5457 = vst [vmem:[#allocation33_spill] sm:$0xff] %v4521_v37  ;;  %v4537_v12 = vmul.f32 %v4411_v20, %v5458_v8  ;;  %v1072_v32 = vadd.f32 %v1064_v62, %v1056_v1  ;;  %3102 = vmatpush3.bf16.msra.mxu1 %v4378_v45  ;;  %v4548_v10 = vmul.f32 %v4424_v42, %v5458_v8  ;;  %v441_v62 = vmul.f32 0.2, %v423_v47 }
 0x118   :  { %v4552_v50 = vmul.f32 %v4398_v21, %v5458_v8  ;;  %v4555_v1 = vmax.f32 %v1164_v39, %v4515_v0  ;;  %3103 = vmatprep.subr.bf16.mxu1 %v5454_v46  ;;  %v4561_v45 = vsel %vm429_vm3, %v4354_v55, %v438_v23  ;;  %v448_v60 = vsel %vm430_vm9, %v421_v59, %v439_v57  ;;  %v5462_v59 = vld [vmem:[#allocation22_spill] sm:$0xff] }
 0x119   :  { %5460 = vst [vmem:[#allocation34_spill] sm:$0xff] %v4561_v45  ;;  %v1088_v33 = vadd.f32 %v1080_v61, %v1072_v32  ;;  %v4566_v8 = vpack.c.bf16 %v2580_v52, %v2579_v24  ;;  %v1126_v48 = vmax.f32 %v4190_v22, %v448_v60  ;;  %vm431_vm11 = vcmp.gt.f32.partialorder %v422_v40, 0.0 }
 0x11a   :  { %5459 = vst [vmem:[#allocation21_spill] sm:$0xff] %v4555_v1  ;;  %v440_v39 = vmul.f32 0.2, %v422_v40  ;;  %v462_v46 = vmul.f32 %v4411_v20, %v4211_v29  ;;  %v149_v55 = vmul.f32 %v4391_v27, %v4375_v28  ;;  %v471_v61 = vmul.f32 %v4391_v27, %v250_v4 }
 0x11b   :  { %5461 = vst [vmem:[#allocation35_spill] sm:$0xff] %v4566_v8  ;;  %v4573_v23 = vpop.permute.xlu1 %88  ;;  %3105 = vmatpush3.bf16.msra.mxu1 %v4386_v49  ;;  %vm432_vm12 = vcmp.gt.f32.partialorder %v423_v47, 0.0  ;;  %v4579_v57 = vmul.f32 %v4398_v21, %v5462_v59  ;;  %v4583_v22 = vmul.f32 %v4391_v27, %v5462_v59  ;;  %v100_v60 = vmul.f32 %v4411_v20, %v4150_v7  ;;  %v395_v7 = vpop.permute.xlu0 %394 }
 0x11c   :  { %v207_v28 = vmul.f32 %v4398_v21, %v4478_v41  ;;  %3123 = vmatprep.subr.bf16.mxu1 %v4566_v8  ;;  %v1096_v32 = vadd.f32 %v4503_v53, %v1088_v33  ;;  %v4592_v49 = vmax.f32 %v1126_v48, %v4123_v15  ;;  %v449_v24 = vsel %vm431_vm11, %v422_v40, %v440_v39 }
 0x11d   :  { %5463 = vst [vmem:[#allocation22_spill] sm:$0xff] %v4579_v57  ;;  %5464 = vst [vmem:[#allocation36_spill] sm:$0xff] %v4583_v22  ;;  %v450_v52 = vsel %vm432_vm12, %v423_v47, %v441_v62  ;;  %v208_v14 = vmul.f32 %v4398_v21, %v4152_v9  ;;  %v4598_v59 = vmul.f32 %v4411_v20, %v4152_v9 }
 0x11e   :  { %5465 = vst [vmem:[#allocation37_spill] sm:$0xff] %v4592_v49  ;;  %v1127_v45 = vmax.f32 %v4243_v25, %v449_v24  ;;  %v1128_v54 = vmax.f32 %v4347_v44, %v450_v52  ;;  %v4604_v33 = vmul.f32 %v4398_v21, %v4211_v29  ;;  %v4608_v15 = vmul.f32 %v4391_v27, %v4211_v29 }
 0x11f   :  { %v158_v48 = vadd.f32 %v149_v55, %v100_v60  ;;  %v480_v47 = vadd.f32 %v471_v61, %v462_v46  ;;  %v150_v40 = vmul.f32 %v4391_v27, %v4406_v13  ;;  %v489_v62 = vmul.f32 %v4398_v21, %v395_v7 }
 0x120   :  { %v4612_v9 = vpop.permute.xlu1 %241  ;;  %v4616_v25 = vmax.f32 %v1127_v45, %v4140_v19  ;;  %v4619_v44 = vmax.f32 %v1128_v54, %v4418_v18  ;;  %v1112_v24 = vmul.f32 0.2, %v1096_v32  ;;  %v4627_v13 = vmul.f32 %v4424_v42, %v4211_v29  ;;  %v534_v45 = vpop.permute.xlu0 %533 }
 0x121   :  { %v216_v39 = vadd.f32 %v207_v28, %v158_v48  ;;  %v265_v52 = vmul.f32 %v4424_v42, %v4612_v9  ;;  %v352_v46 = vmul.f32 %v4398_v21, %v4612_v9  ;;  %vm1104_vm13 = vcmp.gt.f32.partialorder %v1096_v32, 0.0 }
 0x122   :  { %5466 = vst [vmem:[#allocation38_spill] sm:$0xff] %v4616_v25  ;;  %5467 = vst [vmem:[#allocation39_spill] sm:$0xff] %v4619_v44  ;;  %v597_v55 = vmul.f32 %v4411_v20, %v250_v4  ;;  %v606_v19 = vmul.f32 %v4391_v27, %v395_v7  ;;  %v101_v54 = vmul.f32 %v4411_v20, %v4227_v63 }
 0x123   :  { %v4635_v18 = vmul.f32 %v4424_v42, %v4227_v63  ;;  %v274_v61 = vadd.f32 %v265_v52, %v216_v39  ;;  %v361_v60 = vadd.f32 %v352_v46, %v4507_v16  ;;  %v4639_v28 = vmul.f32 %v4424_v42, %v250_v4 }
 0x124   :  { %v4642_v29 = vmul.f32 %v4398_v21, %v250_v4  ;;  %v4645_v48 = vmul.f32 %v4424_v42, %v395_v7  ;;  %v4648_v44 = vmul.f32 %v4411_v20, %v395_v7  ;;  %v159_v25 = vadd.f32 %v150_v40, %v101_v54 }
 0x125   :  { %v289_v49 = vadd.f32 %v4503_v53, %v274_v61  ;;  %v4651_v63 = vpop.permute.xlu1 %386  ;;  %v1120_v39 = vsel %vm1104_vm13, %v1096_v32, %v1112_v24  ;;  %v4653_v52 = vadd.f32 %v489_v62, %v480_v47  ;;  %v4657_v16 = vmul.f32 %v4424_v42, %v4314_v38 }
 0x126   :  { %5468 = vst [vmem:[#allocation40_spill] sm:$0xff] %v4648_v44  ;;  %v962_v4 = vmul.f32 %v4391_v27, %v4525_v3  ;;  %v406_v46 = vmul.f32 %v4424_v42, %v4651_v63  ;;  %v4663_v7 = vadd.f32 %v606_v19, %v597_v55  ;;  %v4667_v40 = vmul.f32 %v4398_v21, %v4314_v38  ;;  %v4680_v55 = vpop.permute.xlu0 %668 }
 0x127   :  { %v4671_v32 = vmul.f32 %v4391_v27, %v4314_v38  ;;  %vm298_vm14 = vcmp.gt.f32.partialorder %v289_v49, 0.0  ;;  %v307_v47 = vmul.f32 0.2, %v289_v49  ;;  %v1180_v24 = vmax.f32 %v4515_v0, %v1120_v39  ;;  %5472 = vst [vmem:[#allocation44_spill] sm:$0xff] %v4680_v55 }
 0x128   :  { %5469 = vst [vmem:[#allocation41_spill] sm:$0xff] %v4663_v7  ;;  %v415_v62 = vadd.f32 %v406_v46, %v361_v60  ;;  %v4675_v54 = vmul.f32 %v4424_v42, %v534_v45  ;;  %v4678_v61 = vmul.f32 %v4398_v21, %v534_v45  ;;  %v217_v8 = vadd.f32 %v208_v14, %v159_v25 }
 0x129   :  { %v4682_v19 = vsel %vm298_vm14, %v289_v49, %v307_v47  ;;  %v4685_v57 = vmul.f32 %v4391_v27, %v534_v45  ;;  %v4689_v38 = vmul.f32 %v4424_v42, %v4680_v55  ;;  %v970_v0 = vadd.f32 %v962_v4, %v4444_v36 }
 0x12a   :  { %5470 = vst [vmem:[#allocation42_spill] sm:$0xff] %v4675_v54  ;;  %5471 = vst [vmem:[#allocation43_spill] sm:$0xff] %v4678_v61  ;;  %v1042_v60 = vmul.f32 %v4411_v20, %v4525_v3  ;;  %v424_v39 = vadd.f32 %v4503_v53, %v415_v62  ;;  %v4695_v46 = vpop.permute.xlu1 %799  ;;  %v4698_v49 = vmax.f32 %v1180_v24, %v4682_v19 }
 0x12b   :  { %5473 = vst [vmem:[#allocation45_spill] sm:$0xff] %v4685_v57  ;;  %5474 = vst [vmem:[#allocation46_spill] sm:$0xff] %v4689_v38  ;;  %v102_v14 = vmul.f32 %v4411_v20, %v4456_v51  ;;  %v4704_v25 = vmul.f32 %v4424_v42, %v4456_v51  ;;  %v978_v36 = vmul.f32 %v4398_v21, %v4456_v51 }
 0x12c   :  { %5475 = vst [vmem:[#allocation47_spill] sm:$0xff] %v4698_v49  ;;  %v963_v45 = vmul.f32 %v4391_v27, %v4695_v46  ;;  %v1050_v4 = vmul.f32 %v4391_v27, %v4456_v51  ;;  %v460_v47 = vmul.f32 %v4411_v20, %v4478_v41  ;;  %v442_v62 = vmul.f32 0.2, %v424_v39  ;;  %2890 = vmatprep.mubr.msk.f32.mxu0 %vm1211_vm10, %v4698_v49 }
 0x12d   :  { %vm433_vm15 = vcmp.gt.f32.partialorder %v424_v39, 0.0  ;;  %v4718_v24 = vmul.f32 %v4424_v42, %v4525_v3  ;;  %v103_v22 = vmul.f32 %v4411_v20, %v4573_v23  ;;  %v979_v1 = vmul.f32 %v4398_v21, %v4573_v23 }
 0x12e   :  { %v971_v51 = vadd.f32 %v963_v45, %v4529_v34  ;;  %v4727_v41 = vmul.f32 %v4398_v21, %v4525_v3  ;;  %v1058_v38 = vadd.f32 %v1050_v4, %v1042_v60  ;;  %v986_v54 = vadd.f32 %v978_v36, %v970_v0 }
 0x12f   :  { %5476 = vst [vmem:[#allocation48_spill] sm:$0xff] %v4718_v24  ;;  %v4729_v49 = vsel %vm433_vm15, %v424_v39, %v442_v62  ;;  %v469_v61 = vmul.f32 %v4391_v27, %v4612_v9  ;;  %v1043_v55 = vmul.f32 %v4411_v20, %v4695_v46  ;;  %v134_v2 = vpop.permute.xlu1 %133  ;;  %v4742_v39 = vadd.f32 %v4533_v6, %v103_v22 }
 0x130   :  { %v987_v57 = vadd.f32 %v979_v1, %v971_v51  ;;  %v151_v34 = vmul.f32 %v4391_v27, %v134_v2  ;;  %v327_v3 = vmul.f32 %v4411_v20, %v134_v2  ;;  %v994_v60 = vmul.f32 %v4424_v42, %v134_v2 }
 0x131   :  { %v1066_v0 = vmul.f32 %v4398_v21, %v134_v2  ;;  %v1051_v1 = vmul.f32 %v4391_v27, %v4573_v23  ;;  %v487_v36 = vmul.f32 %v4398_v21, %v4651_v63  ;;  %v478_v24 = vadd.f32 %v469_v61, %v460_v47 }
 0x132   :  { %v1003_v45 = vadd.f32 %v4548_v10, %v987_v57  ;;  %v160_v4 = vadd.f32 %v151_v34, %v102_v14  ;;  %v345_v62 = vadd.f32 %v4608_v15, %v327_v3  ;;  %v1002_v51 = vadd.f32 %v994_v60, %v986_v54 }
 0x133   :  { %v1074_v17 = vadd.f32 %v1066_v0, %v1058_v38  ;;  %v595_v2 = vmul.f32 %v4411_v20, %v4612_v9  ;;  %v604_v6 = vmul.f32 %v4391_v27, %v4651_v63  ;;  %v1059_v22 = vadd.f32 %v1051_v1, %v1043_v55 }
 0x134   :  { %v1010_v37 = vadd.f32 %v4503_v53, %v1002_v51  ;;  %v218_v7 = vadd.f32 %v4604_v33, %v160_v4  ;;  %v363_v10 = vadd.f32 %v4642_v29, %v345_v62  ;;  %v246_v57 = vpop.permute.xlu1 %245  ;;  %v730_v15 = vmul.f32 %v4411_v20, %v4651_v63 }
 0x135   :  { %v1090_v44 = vadd.f32 %v4627_v13, %v1074_v17  ;;  %v266_v54 = vmul.f32 %v4424_v42, %v246_v57  ;;  %v353_v9 = vmul.f32 %v4398_v21, %v246_v57  ;;  %v470_v61 = vmul.f32 %v4391_v27, %v246_v57 }
 0x136   :  { %v496_v38 = vadd.f32 %v487_v36, %v478_v24  ;;  %v1026_v55 = vmul.f32 0.2, %v1010_v37  ;;  %v276_v14 = vadd.f32 %v4639_v28, %v218_v7  ;;  %v417_v17 = vadd.f32 %v4645_v48, %v363_v10 }
 0x137   :  { %v1098_v33 = vadd.f32 %v4503_v53, %v1090_v44  ;;  %v275_v13 = vadd.f32 %v266_v54, %v217_v8  ;;  %v4767_v29 = vadd.f32 %v353_v9, %v4433_v56  ;;  %vm1018_vm1 = vcmp.gt.f32.partialorder %v1010_v37, 0.0 }
 0x138   :  { %v613_v63 = vadd.f32 %v604_v6, %v595_v2  ;;  %v1011_v47 = vadd.f32 %v4503_v53, %v1003_v45  ;;  %v4771_v34 = vmul.f32 %v4411_v20, %v246_v57  ;;  %v1075_v24 = vadd.f32 %v4552_v50, %v1059_v22 }
 0x139   :  { %v291_v3 = vadd.f32 %v4503_v53, %v276_v14  ;;  %v4776_v28 = vadd.f32 %v4503_v53, %v417_v17  ;;  %v290_v44 = vadd.f32 %v4503_v53, %v275_v13  ;;  %v4780_v8 = vadd.f32 %v470_v61, %v4598_v59  ;;  %v522_v56 = vpop.permute.xlu1 %521 }
 0x13a   :  { %v541_v48 = vmul.f32 %v4424_v42, %v522_v56  ;;  %v622_v7 = vmul.f32 %v4398_v21, %v522_v56  ;;  %v739_v60 = vmul.f32 %v4391_v27, %v522_v56  ;;  %v4785_v0 = vsel %vm1018_vm1, %v1010_v37, %v1026_v55 }
 0x13b   :  { %v865_v50 = vmul.f32 %v4411_v20, %v522_v56  ;;  %vm299_vm2 = vcmp.gt.f32.partialorder %v290_v44, 0.0  ;;  %v308_v1 = vmul.f32 0.2, %v290_v44  ;;  %v1114_v36 = vmul.f32 0.2, %v1098_v33 }
 0x13c   :  { %v550_v45 = vadd.f32 %v541_v48, %v496_v38  ;;  %v631_v4 = vadd.f32 %v622_v7, %v613_v63  ;;  %v748_v62 = vadd.f32 %v739_v60, %v730_v15  ;;  %vm1106_vm3 = vcmp.gt.f32.partialorder %v1098_v33, 0.0 }
 0x13d   :  { %v881_v59 = vadd.f32 %v4671_v32, %v865_v50  ;;  %v4789_v51 = vsel %vm299_vm2, %v290_v44, %v308_v1  ;;  %vm300_vm4 = vcmp.gt.f32.partialorder %v291_v3, 0.0  ;;  %v309_v2 = vmul.f32 0.2, %v291_v3 }
 0x13e   :  { %v559_v6 = vadd.f32 %v4503_v53, %v550_v45  ;;  %v685_v37 = vadd.f32 %v4657_v16, %v631_v4  ;;  %v766_v22 = vadd.f32 %v4667_v40, %v748_v62  ;;  %v4794_v10 = vpop.permute.xlu1 %195  ;;  %v5477_v57 = vmax.f32 %v4489_v26, %v4491_v31 }
 0x13f   :  { %v897_v32 = vadd.f32 %v4279_v5, %v881_v59  ;;  %v337_v54 = vmul.f32 %v4391_v27, %v4794_v10  ;;  %v1122_v9 = vsel %vm1106_vm3, %v1098_v33, %v1114_v36  ;;  %vm1019_vm5 = vcmp.gt.f32.partialorder %v1011_v47, 0.0 }
 0x140   :  { %v4800_v15 = vmax.f32 %v5477_v57, %v4789_v51  ;;  %v694_v61 = vadd.f32 %v4503_v53, %v685_v37  ;;  %v820_v16 = vadd.f32 %v4260_v43, %v766_v22  ;;  %v1083_v40 = vmul.f32 %v4424_v42, %v4794_v10 }
 0x141   :  { %v1027_v31 = vmul.f32 0.2, %v1011_v47  ;;  %v444_v38 = vmul.f32 0.2, %v4776_v28  ;;  %v913_v5 = vadd.f32 %v4635_v18, %v897_v32  ;;  %v4814_v55 = vadd.f32 %v337_v54, %v4537_v12 }
 0x142   :  { %2891 = vmatmul.mubr.msk.f32.gmra.mrb[12].mxu0 %vm1211_vm10, %v4800_v15  ;;  %v4817_v14 = vsel %vm300_vm4, %v291_v3, %v309_v2  ;;  %v577_v17 = vmul.f32 0.2, %v559_v6  ;;  %v1091_v33 = vadd.f32 %v1083_v40, %v1075_v24  ;;  %v1182_v43 = vmax.f32 %v4785_v0, %v1122_v9 }
 0x143   :  { %vm703_vm6 = vcmp.gt.f32.partialorder %v694_v61, 0.0  ;;  %v921_v13 = vadd.f32 %v4503_v53, %v913_v5  ;;  %v391_v63 = vpop.permute.xlu1 %390  ;;  %vm568_vm7 = vcmp.gt.f32.partialorder %v559_v6, 0.0  ;;  %v712_v44 = vmul.f32 0.2, %v694_v61 }
 0x144   :  { %v829_v56 = vadd.f32 %v4503_v53, %v820_v16  ;;  %v1099_v18 = vadd.f32 %v4503_v53, %v1091_v33  ;;  %v4824_v12 = vmax.f32 %v1182_v43, %v4817_v14  ;;  %v407_v3 = vmul.f32 %v4424_v42, %v391_v63 }
 0x145   :  { %v4828_v48 = vsel %vm1019_vm5, %v1011_v47, %v1027_v31  ;;  %v210_v24 = vmul.f32 %v4398_v21, %v4794_v10  ;;  %v488_v7 = vmul.f32 %v4398_v21, %v391_v63  ;;  %v721_v60 = vsel %vm703_vm6, %v694_v61, %v712_v44 }
 0x146   :  { %vm838_vm8 = vcmp.gt.f32.partialorder %v829_v56, 0.0  ;;  %v1115_v50 = vmul.f32 0.2, %v1099_v18  ;;  %2893 = vmatprep.mubr.msk.f32.mxu0 %vm1211_vm10, %v4824_v12  ;;  %v416_v1 = vadd.f32 %v407_v3, %v4767_v29  ;;  %v586_v36 = vsel %vm568_vm7, %v559_v6, %v577_v17 }
 0x147   :  { %v847_v45 = vmul.f32 0.2, %v829_v56  ;;  %v605_v4 = vmul.f32 %v4391_v27, %v391_v63  ;;  %v1147_v62 = vmax.f32 %v586_v36, %v721_v60  ;;  %vm1107_vm9 = vcmp.gt.f32.partialorder %v1099_v18, 0.0 }
 0x148   :  { %vm929_vm11 = vcmp.gt.f32.partialorder %v921_v13, 0.0  ;;  %v425_v47 = vadd.f32 %v4503_v53, %v416_v1  ;;  %v254_v59 = vpop.permute.xlu1 %253  ;;  %v1123_v37 = vsel %vm1107_vm9, %v1099_v18, %v1115_v50  ;;  %v937_v22 = vmul.f32 0.2, %v921_v13 }
 0x149   :  { %v856_v2 = vsel %vm838_vm8, %v829_v56, %v847_v45  ;;  %v219_v57 = vadd.f32 %v210_v24, %v4742_v39  ;;  %v497_v32 = vadd.f32 %v488_v7, %v4780_v8  ;;  %v731_v54 = vmul.f32 %v4411_v20, %v391_v63 }
 0x14a   :  { %v268_v29 = vmul.f32 %v4424_v42, %v254_v59  ;;  %v443_v6 = vmul.f32 0.2, %v425_v47  ;;  %v4842_v9 = vmax.f32 %v1147_v62, %v856_v2  ;;  %v1183_v61 = vmax.f32 %v4828_v48, %v1123_v37 }
 0x14b   :  { %v945_v16 = vsel %vm929_vm11, %v921_v13, %v937_v22  ;;  %v614_v40 = vadd.f32 %v605_v4, %v4771_v34  ;;  %v355_v5 = vmul.f32 %v4398_v21, %v254_v59  ;;  %v472_v39 = vmul.f32 %v4391_v27, %v254_v59 }
 0x14c   :  { %v277_v31 = vadd.f32 %v268_v29, %v219_v57  ;;  %v1165_v17 = vmax.f32 %v856_v2, %v945_v16  ;;  %2814 = vmatmul.mubr.msk.f32.gmra.mrb[2].mxu1 %vm1211_vm10, %v4842_v9  ;;  %v5478_v8 = vmax.f32 %v4682_v19, %v4729_v49  ;;  %vm434_vm12 = vcmp.gt.f32.partialorder %v425_v47, 0.0 }
 0x14d   :  { %vm435_vm13 = vcmp.gt.f32.partialorder %v4776_v28, 0.0  ;;  %v526_v34 = vpop.permute.xlu1 %525  ;;  %2816 = vmatprep.mubr.msk.f32.mxu1 %vm3354_vm0, %v5422_v11  ;;  %v4862_v63 = vsel %vm434_vm12, %v425_v47, %v443_v6  ;;  %v907_v50 = vmul.f32 %v4424_v42, %v4573_v23  ;;  %v891_v1 = vmul.f32 %v4398_v21, %v4695_v46 }
 0x14e   :  { %v4853_v33 = vmax.f32 %v5478_v8, %v586_v36  ;;  %v292_v43 = vadd.f32 %v4503_v53, %v277_v31  ;;  %v4860_v13 = vmax.f32 %v1165_v17, %v4489_v26  ;;  %v4865_v44 = vsel %vm435_vm13, %v4776_v28, %v444_v38 }
 0x14f   :  { %v542_v19 = vmul.f32 %v4424_v42, %v526_v34  ;;  %v623_v49 = vmul.f32 %v4398_v21, %v526_v34  ;;  %v740_v56 = vmul.f32 %v4391_v27, %v526_v34  ;;  %v866_v18 = vmul.f32 %v4411_v20, %v526_v34 }
 0x150   :  { %vm301_vm14 = vcmp.gt.f32.partialorder %v292_v43, 0.0  ;;  %v310_v3 = vmul.f32 0.2, %v292_v43  ;;  %v1130_v24 = vmax.f32 %v4789_v51, %v4862_v63  ;;  %v1131_v26 = vmax.f32 %v4817_v14, %v4865_v44 }
 0x151   :  { %v551_v7 = vadd.f32 %v542_v19, %v497_v32  ;;  %v632_v60 = vadd.f32 %v623_v49, %v614_v40  ;;  %v749_v28 = vadd.f32 %v740_v56, %v731_v54  ;;  %v882_v38 = vadd.f32 %v4440_v58, %v866_v18  ;;  %v530_v45 = vpop.permute.xlu1 %529  ;;  %v5481_v40 = vld [vmem:[#allocation33_spill] sm:$0xff] }
 0x152   :  { %v463_v36 = vmul.f32 %v4411_v20, %v4794_v10  ;;  %v4882_v4 = vsel %vm301_vm14, %v292_v43, %v310_v3  ;;  %v543_v37 = vmul.f32 %v4424_v42, %v530_v45  ;;  %v624_v23 = vmul.f32 %v4398_v21, %v530_v45  ;;  %v5482_v43 = vld [vmem:[#allocation48_spill] sm:$0xff] }
 0x153   :  { %v560_v62 = vadd.f32 %v4503_v53, %v551_v7  ;;  %v686_v47 = vadd.f32 %v4326_v30, %v632_v60  ;;  %v767_v2 = vadd.f32 %v4344_v35, %v749_v28  ;;  %v898_v58 = vadd.f32 %v4727_v41, %v882_v38  ;;  %v5479_v35 = vld [vmem:[#allocation41_spill] sm:$0xff]  ;;  %v5480_v41 = vld [vmem:[#allocation40_spill] sm:$0xff]  ;;  %v5485_v28 = vld [vmem:[#allocation23_spill] sm:$0xff] }
 0x154   :  { %v741_v22 = vmul.f32 %v4391_v27, %v530_v45  ;;  %v867_v57 = vmul.f32 %v4411_v20, %v530_v45  ;;  %v364_v10 = vadd.f32 %v355_v5, %v4814_v55  ;;  %v481_v32 = vadd.f32 %v472_v39, %v463_v36  ;;  %v5486_v38 = vld [vmem:[#allocation44_spill] sm:$0xff] }
 0x155   :  { %v598_v54 = vmul.f32 %v4411_v20, %v254_v59  ;;  %v914_v29 = vadd.f32 %v4704_v25, %v898_v58  ;;  %v552_v30 = vadd.f32 %v543_v37, %v4653_v52  ;;  %v633_v6 = vadd.f32 %v624_v23, %v5479_v35  ;;  %v5483_v25 = vld [vmem:[#allocation24_spill] sm:$0xff]  ;;  %v5484_v52 = vld [vmem:[#allocation18_spill] sm:$0xff] }
 0x156   :  { %v750_v16 = vadd.f32 %v741_v22, %v5480_v41  ;;  %v883_v31 = vadd.f32 %v5481_v40, %v867_v57  ;;  %v578_v17 = vmul.f32 0.2, %v560_v62  ;;  %v695_v8 = vadd.f32 %v4503_v53, %v686_v47  ;;  %v399_v5 = vpop.permute.xlu1 %398  ;;  %v5487_v57 = vld [vmem:[#allocation2_spill] sm:$0xff] }
 0x157   :  { %v821_v34 = vadd.f32 %v5482_v43, %v767_v2  ;;  %v4902_v55 = vmax.f32 %v1183_v61, %v4882_v4  ;;  %v561_v59 = vadd.f32 %v4503_v53, %v552_v30  ;;  %v687_v39 = vadd.f32 %v5483_v25, %v633_v6  ;;  %v5488_v30 = vld [vmem:[#allocation45_spill] sm:$0xff] }
 0x158   :  { %v768_v19 = vadd.f32 %v5484_v52, %v750_v16  ;;  %v899_v49 = vadd.f32 %v891_v1, %v883_v31  ;;  %v409_v56 = vmul.f32 %v4424_v42, %v399_v5  ;;  %v490_v18 = vmul.f32 %v4398_v21, %v399_v5  ;;  %v5492_v31 = vld [vmem:[#allocation42_spill] sm:$0xff]  ;;  %v5494_v52 = vld [vmem:[#allocation32_spill] sm:$0xff] }
 0x159   :  { %2894 = vmatmul.mubr.msk.f32.gmra.mrb[14].mxu0 %vm1211_vm10, %v4902_v55  ;;  %v607_v3 = vmul.f32 %v4391_v27, %v399_v5  ;;  %v733_v61 = vmul.f32 %v4411_v20, %v399_v5  ;;  %v813_v7 = vmul.f32 %v4424_v42, %v4695_v46  ;;  %v760_v1 = vmul.f32 %v4398_v21, %v5486_v38 }
 0x15a   :  { %v915_v60 = vadd.f32 %v907_v50, %v899_v49  ;;  %2940 = vmatprep.mubr.msk.f32.mxu0 %vm1211_vm10, %v5485_v28  ;;  %vm569_vm15 = vcmp.gt.f32.partialorder %v560_v62, 0.0  ;;  %v418_v36 = vadd.f32 %v409_v56, %v364_v10  ;;  %v499_v45 = vadd.f32 %v490_v18, %v481_v32  ;;  %v5489_v10 = vld [vmem:[#allocation43_spill] sm:$0xff]  ;;  %v5495_v49 = vld [vmem:[#allocation46_spill] sm:$0xff]  ;;  %v5496_v18 = vld [vmem:[#allocation21_spill] sm:$0xff] }
 0x15b   :  { %v616_v47 = vadd.f32 %v607_v3, %v598_v54  ;;  %vm704_vm1 = vcmp.gt.f32.partialorder %v695_v8, 0.0  ;;  %v922_v2 = vadd.f32 %v4503_v53, %v914_v29  ;;  %v696_v58 = vadd.f32 %v4503_v53, %v687_v39  ;;  %v49_v37 = vpop.permute.xlu1 %48  ;;  %v5490_v54 = vld [vmem:[#allocation31_spill] sm:$0xff] }
 0x15c   :  { %v713_v23 = vmul.f32 0.2, %v695_v8  ;;  %v830_v46 = vadd.f32 %v4503_v53, %v821_v34  ;;  %v579_v50 = vmul.f32 0.2, %v561_v59  ;;  %v822_v22 = vadd.f32 %v813_v7, %v768_v19  ;;  %v5491_v29 = vld [vmem:[#allocation7_spill] sm:$0xff]  ;;  %v5493_v34 = vld [vmem:[#allocation13_spill] sm:$0xff] }
 0x15d   :  { %2941 = vmatmul.mubr.msk.f32.vlgmr.msra.gmra.mrb[16].mxu0 %vm1211_vm10, %v5487_v57  ;;  %v751_v21 = vadd.f32 %v5488_v30, %v733_v61  ;;  %v587_v35 = vsel %vm569_vm15, %v560_v62, %v578_v17  ;;  %v634_v32 = vadd.f32 %v5489_v10, %v616_v47  ;;  %v923_v16 = vadd.f32 %v4503_v53, %v915_v60  ;;  %v5500_v10 = vld [vmem:[#allocation9_spill] sm:$0xff] }
 0x15e   :  { %2943 = vmatprep.mubr.msk.f32.mxu0 %vm1211_vm10, %v5490_v54  ;;  %3157 = vmatpush3.bf16.msra.mxu0 %v5491_v29  ;;  %v722_v6 = vsel %vm704_vm1, %v695_v8, %v713_v23  ;;  %vm839_vm2 = vcmp.gt.f32.partialorder %v830_v46, 0.0  ;;  %v848_v41 = vmul.f32 0.2, %v830_v46  ;;  %v427_v40 = vadd.f32 %v4503_v53, %v418_v36  ;;  %v5498_v23 = vld [vmem:[#allocation36_spill] sm:$0xff] }
 0x15f   :  { %v553_v43 = vadd.f32 %v5492_v31, %v499_v45  ;;  %3159 = vmatprep.subr.bf16.mxu0 %v5493_v34  ;;  %v1148_v5 = vmax.f32 %v587_v35, %v722_v6  ;;  %vm570_vm3 = vcmp.gt.f32.partialorder %v561_v59, 0.0  ;;  %vm705_vm4 = vcmp.gt.f32.partialorder %v696_v58, 0.0  ;;  %v5501_v6 = vld [vmem:[#allocation15_spill] sm:$0xff] }
 0x160   :  { %v857_v62 = vsel %vm839_vm2, %v830_v46, %v848_v41  ;;  %v714_v17 = vmul.f32 0.2, %v696_v58  ;;  %v769_v25 = vadd.f32 %v760_v1, %v751_v21  ;;  %v95_v39 = vmul.f32 %v4411_v20, %v49_v37  ;;  %v106_v3 = vpop.permute.xlu1 %105  ;;  %v5497_v1 = vld [vmem:[#allocation14_spill] sm:$0xff] }
 0x161   :  { %2944 = vmatmul.mubr.msk.f32.gmra.mrb[18].mxu0 %vm1211_vm10, %v5494_v52  ;;  %v4936_v8 = vmax.f32 %v1148_v5, %v857_v62  ;;  %v831_v19 = vadd.f32 %v4503_v53, %v822_v22  ;;  %v688_v56 = vadd.f32 %v5495_v49, %v634_v32  ;;  %vm930_vm5 = vcmp.gt.f32.partialorder %v922_v2, 0.0 }
 0x162   :  { %2946 = vmatprep.mubr.msk.f32.mxu0 %vm1211_vm10, %v5496_v18  ;;  %3161 = vmatpush3.bf16.msra.mxu0 %v5493_v34  ;;  %v723_v61 = vsel %vm705_vm4, %v696_v58, %v714_v17  ;;  %v938_v7 = vmul.f32 0.2, %v922_v2  ;;  %v144_v60 = vmul.f32 %v4391_v27, %v106_v3  ;;  %v320_v38 = vmul.f32 %v4411_v20, %v106_v3 }
 0x163   :  { %2817 = vmatmul.mubr.msk.f32.gmra.mrb[4].mxu1 %vm1211_vm10, %v4936_v8  ;;  %3163 = vmatprep.subr.bf16.mxu0 %v5497_v1  ;;  %v588_v36 = vsel %vm570_vm3, %v561_v59, %v579_v50  ;;  %vm840_vm6 = vcmp.gt.f32.partialorder %v831_v19, 0.0  ;;  %v849_v45 = vmul.f32 0.2, %v831_v19  ;;  %vm931_vm7 = vcmp.gt.f32.partialorder %v923_v16, 0.0  ;;  %v5499_v50 = vld [vmem:[#allocation22_spill] sm:$0xff] }
 0x164   :  { %2819 = vmatprep.mubr.msk.f32.mxu1 %vm3354_vm0, %v5422_v11  ;;  %v1149_v47 = vmax.f32 %v588_v36, %v723_v61  ;;  %v946_v58 = vsel %vm930_vm5, %v922_v2, %v938_v7  ;;  %v153_v37 = vadd.f32 %v144_v60, %v95_v39  ;;  %v338_v46 = vadd.f32 %v5498_v23, %v320_v38  ;;  %v5503_v39 = vld [vmem:[#allocation12_spill] sm:$0xff]  ;;  %v5505_v61 = vld [vmem:[#allocation27_spill] sm:$0xff]  ;;  %v5509_v23 = vld [vmem:[#allocation30_spill] sm:$0xff] }
 0x165   :  { %2947 = vmatmul.mubr.msk.f32.gmra.mrb[20].mxu0 %vm1211_vm10, %v4860_v13  ;;  %v1166_v27 = vmax.f32 %v857_v62, %v946_v58  ;;  %v445_v20 = vmul.f32 0.2, %v427_v40  ;;  %v697_v22 = vadd.f32 %v4503_v53, %v688_v56  ;;  %v858_v30 = vsel %vm840_vm6, %v831_v19, %v849_v45  ;;  %v5502_v62 = vld [vmem:[#allocation10_spill] sm:$0xff]  ;;  %v5508_v58 = vld [vmem:[#allocation4_spill] sm:$0xff] }
 0x166   :  { %3165 = vmatpush3.bf16.msra.mxu0 %v5497_v1  ;;  %v939_v59 = vmul.f32 0.2, %v923_v16  ;;  %v211_v21 = vadd.f32 %v5499_v50, %v153_v37  ;;  %v356_v32 = vadd.f32 %v5500_v10, %v338_v46  ;;  %v4958_v2 = vmax.f32 %v1149_v47, %v858_v30  ;;  %v5507_v47 = vld [vmem:[#allocation16_spill] sm:$0xff]  ;;  %v5514_v10 = vld [vmem:[#allocation35_spill] sm:$0xff] }
 0x167   :  { %v4961_v29 = vmax.f32 %v1166_v27, %v4785_v0  ;;  %3167 = vmatprep.subr.bf16.mxu0 %v5501_v6  ;;  %v562_v41 = vadd.f32 %v4503_v53, %v553_v43  ;;  %v4968_v34 = vmax.f32 %v1130_v24, %v587_v35  ;;  %v4973_v5 = vmax.f32 %v1131_v26, %v588_v36  ;;  %v5504_v35 = vld [vmem:[#allocation3_spill] sm:$0xff]  ;;  %v5506_v36 = vld [vmem:[#allocation25_spill] sm:$0xff]  ;;  %v5510_v46 = vld [vmem:[#allocation20_spill] sm:$0xff] }
 0x168   :  { %v947_v31 = vsel %vm931_vm7, %v923_v16, %v939_v59  ;;  %v269_v17 = vadd.f32 %v5502_v62, %v211_v21  ;;  %v410_v0 = vadd.f32 %v5503_v39, %v356_v32  ;;  %2820 = vmatmul.mubr.msk.f32.gmra.mrb[6].mxu1 %vm1211_vm10, %v4958_v2  ;;  %v804_v43 = vpop.permute.xlu1 %803  ;;  %vm436_vm8 = vcmp.gt.f32.partialorder %v427_v40, 0.0  ;;  %v5511_v27 = vld [vmem:[#allocation26_spill] sm:$0xff]  ;;  %v2582_v59 = vld [vmem:[%s5314_s3 + $0xd8] sm:$0xff]  ;;  %v5515_v32 = vld [vmem:[#allocation19_spill] sm:$0xff] }
 0x169   :  { %2949 = vmatprep.mubr.msk.f32.mxu0 %vm1211_vm10, %v4961_v29  ;;  %v1167_v16 = vmax.f32 %v858_v30, %v947_v31  ;;  %vm706_vm9 = vcmp.gt.f32.partialorder %v697_v22, 0.0  ;;  %v715_v51 = vmul.f32 0.2, %v697_v22  ;;  %v814_v63 = vmul.f32 %v4424_v42, %v804_v43  ;;  %2822 = vmatprep.mubr.msk.f32.mxu1 %vm3354_vm0, %v5422_v11  ;;  %v2581_v30 = vld [vmem:[%s5314_s3 + $0xd0] sm:$0xff]  ;;  %v5513_v21 = vld [vmem:[#allocation6_spill] sm:$0xff]  ;;  %v5521_v39 = vld [vmem:[#allocation37_spill] sm:$0xff] }
 0x16a   :  { %3169 = vmatpush3.bf16.msra.mxu0 %v5501_v6  ;;  %v4985_v14 = vsel %vm436_vm8, %v427_v40, %v445_v20  ;;  %v284_v44 = vadd.f32 %v4503_v53, %v269_v17  ;;  %v419_v24 = vadd.f32 %v4503_v53, %v410_v0  ;;  %vm571_vm11 = vcmp.gt.f32.partialorder %v562_v41, 0.0  ;;  %v5516_v6 = vld [vmem:[#allocation28_spill] sm:$0xff]  ;;  %v5522_v0 = vld [vmem:[#allocation11_spill] sm:$0xff] }
 0x16b   :  { %v4990_v26 = vmax.f32 %v1167_v16, %v4828_v48  ;;  %3171 = vmatprep.subr.bf16.mxu0 %v5504_v35  ;;  %v1132_v19 = vmax.f32 %v4882_v4, %v4985_v14  ;;  %v823_v42 = vadd.f32 %v814_v63, %v769_v25  ;;  %v580_v49 = vmul.f32 0.2, %v562_v41  ;;  %v5520_v17 = vld [vmem:[#allocation8_spill] sm:$0xff]  ;;  %v5523_v63 = vld [vmem:[#allocation17_spill] sm:$0xff] }
 0x16c   :  { %vm293_vm12 = vcmp.gt.f32.partialorder %v284_v44, 0.0  ;;  %v302_v56 = vmul.f32 0.2, %v284_v44  ;;  %vm428_vm13 = vcmp.gt.f32.partialorder %v419_v24, 0.0  ;;  %v437_v40 = vmul.f32 0.2, %v419_v24 }
 0x16d   :  { %2950 = vmatmul.mubr.msk.f32.gmra.mrb[22].mxu0 %vm1211_vm10, %v4990_v26  ;;  %v724_v3 = vsel %vm706_vm9, %v697_v22, %v715_v51  ;;  %v832_v48 = vadd.f32 %v4503_v53, %v823_v42  ;;  %v5001_v1 = vsel %vm571_vm11, %v562_v41, %v580_v49  ;;  %v5512_v22 = vld [vmem:[#allocation5_spill] sm:$0xff]  ;;  %v3126_v50 = vpack.c.bf16 %v2582_v59, %v2581_v30  ;;  %v5517_v41 = vld [vmem:[#allocation34_spill] sm:$0xff]  ;;  %v2585_v43 = vld [vmem:[%s5314_s3 + $0xf0] sm:$0xff] }
 0x16e   :  { %2968 = vmatprep.mubr.msk.f32.mxu0 %vm1211_vm10, %v5505_v61  ;;  %v311_v7 = vsel %vm293_vm12, %v284_v44, %v302_v56  ;;  %v446_v60 = vsel %vm428_vm13, %v419_v24, %v437_v40  ;;  %v1150_v45 = vmax.f32 %v5001_v1, %v724_v3  ;;  %v5518_v31 = vmax.f32 %v5516_v6, %v5517_v41  ;;  %v2586_v51 = vld [vmem:[%s5314_s3 + $0xf8] sm:$0xff]  ;;  %v5524_v44 = vld [vmem:[#allocation38_spill] sm:$0xff]  ;;  %v5525_v24 = vld [vmem:[#allocation47_spill] sm:$0xff] }
 0x16f   :  { %v1124_v38 = vmax.f32 %v311_v7, %v446_v60  ;;  %vm841_vm14 = vcmp.gt.f32.partialorder %v832_v48, 0.0  ;;  %v850_v25 = vmul.f32 0.2, %v832_v48  ;;  %v5526_v42 = vld [vmem:[#allocation39_spill] sm:$0xff]  ;;  %v2348_v56 = vld [vmem:[%s5317_s5 + $0x10] sm:$0xff]  ;;  %v2349_v3 = vld [vmem:[%s5317_s5 + $0x18] sm:$0xff] }
 0x170   :  { %v1134_v62 = vmax.f32 %v5518_v31, %v5515_v32  ;;  %v2347_v49 = vld [vmem:[%s5317_s5 + $0x8] sm:$0xff]  ;;  %v2350_v61 = vld [vmem:[%s5317_s5 + $0x20] sm:$0xff] }
 0x171   :  { %2969 = vmatmul.mubr.msk.f32.vlgmr.msra.gmra.mrb[16].mxu0 %vm1211_vm10, %v5506_v36  ;;  %v859_v53 = vsel %vm841_vm14, %v832_v48, %v850_v25  ;;  %v1133_v20 = vmax.f32 %v1124_v38, %v5511_v27  ;;  %v3206_v48 = vpack.c.bf16 %v2349_v3, %v2348_v56  ;;  %v2351_v7 = vld [vmem:[%s5317_s5 + $0x28] sm:$0xff]  ;;  %v2352_v38 = vld [vmem:[%s5317_s5 + $0x30] sm:$0xff]  ;;  %v2353_v25 = vld [vmem:[%s5317_s5 + $0x38] sm:$0xff] }
 0x172   :  { %2971 = vmatprep.mubr.msk.f32.mxu0 %vm1211_vm10, %v5507_v47  ;;  %3173 = vmatpush3.bf16.msra.mxu0 %v5504_v35  ;;  %v1159_v37 = vmax.f32 %v1150_v45, %v859_v53  ;;  %v3134_v35 = vpack.c.bf16 %v2586_v51, %v2585_v43  ;;  %v3209_v60 = vpack.c.bf16 %v2351_v7, %v2350_v61  ;;  %v2354_v47 = vld [vmem:[%s5317_s5 + $0x40] sm:$0xff]  ;;  %v2355_v53 = vld [vmem:[%s5317_s5 + $0x48] sm:$0xff] }
 0x173   :  { %3175 = vmatprep.subr.bf16.mxu0 %v5508_v58  ;;  %v3212_v45 = vpack.c.bf16 %v2353_v25, %v2352_v38  ;;  %v5184_v32 = vld [vmem:[%s5318_s4] ss:$0 sm:$0xff] }
 0x174   :  { %2823 = vmatmul.mubr.msk.f32.gmra.mrb[8].mxu1 %vm1211_vm10, %v1159_v37 }
 0x175   :  { %2972 = vmatmul.mubr.msk.f32.gmra.mrb[18].mxu0 %vm1211_vm10, %v5509_v23  ;;  %2841 = vmatprep.mubr.msk.f32.mxu1 %vm3354_vm0, %v5422_v11 }
 0x176   :  { %2974 = vmatprep.mubr.msk.f32.mxu0 %vm1211_vm10, %v5510_v46  ;;  %3177 = vmatpush3.bf16.msra.mxu0 %v5508_v58  ;;  %v3215_v58 = vpack.c.bf16 %v2355_v53, %v2354_v47 }
 0x177   :  { %3179 = vmatprep.subr.bf16.mxu0 %v5512_v22 }
 0x178   :  { %2842 = vmatmul.mubr.msk.f32.vlgmr.msra.gmra.mrb[10].mxu1 %vm1211_vm10, %v1133_v20 }
 0x179   :  { %2975 = vmatmul.mubr.msk.f32.gmra.mrb[20].mxu0 %vm1211_vm10, %v4842_v9  ;;  %3125 = vmatpush3.bf16.msra.mxu1 %v5514_v10  ;;  %v5519_v9 = vld [vmem:[#allocation29_spill] sm:$0xff] }
 0x17a   :  { %2977 = vmatprep.mubr.msk.f32.mxu0 %vm1211_vm10, %v4936_v8  ;;  %3181 = vmatpush3.bf16.msra.mxu0 %v5512_v22  ;;  %v2583_v8 = vld [vmem:[%s5314_s3 + $0xe0] sm:$0xff] }
 0x17b   :  { %3183 = vmatprep.subr.bf16.mxu0 %v5513_v21  ;;  %2844 = vmatprep.mubr.msk.f32.mxu1 %vm3354_vm0, %v5422_v11 }
 0x17c   :  { %3127 = vmatprep.subr.bf16.mxu1 %v3126_v50  ;;  %2845 = vmatmul.mubr.msk.f32.gmra.mrb[12].mxu1 %vm1211_vm10, %v1134_v62 }
 0x17d   :  { %2978 = vmatmul.mubr.msk.f32.gmra.mrb[22].mxu0 %vm1211_vm10, %v4958_v2  ;;  %2847 = vmatprep.mubr.msk.f32.mxu1 %vm3354_vm0, %v5422_v11  ;;  %v2584_v2 = vld [vmem:[%s5314_s3 + $0xe8] sm:$0xff] }
 0x17e   :  { %3185 = vmatpush3.bf16.msra.mxu0 %v5513_v21  ;;  %2996 = vmatprep.mubr.msk.f32.mxu0 %vm1211_vm10, %v5519_v9  ;;  %v3130_v16 = vpack.c.bf16 %v2584_v2, %v2583_v8 }
 0x17f   :  { %3187 = vmatprep.subr.bf16.mxu0 %v5514_v10  ;;  %3129 = vmatpush3.bf16.msra.mxu1 %v3126_v50 }
 0x180   :  { %2848 = vmatmul.mubr.msk.f32.gmra.mrb[14].mxu1 %vm1211_vm10, %v5521_v39  ;;  %3131 = vmatprep.subr.bf16.mxu1 %v3130_v16 }
 0x181   :  { %2997 = vmatmul.mubr.msk.f32.vlgmr.msra.gmra.mrb[16].mxu0 %vm1211_vm10, %v5520_v17  ;;  %2850 = vmatprep.mubr.msk.f32.mxu1 %vm3354_vm0, %v5422_v11 }
 0x182   :  { %2999 = vmatprep.mubr.msk.f32.mxu0 %vm1211_vm10, %v5522_v0  ;;  %3189 = vmatpush3.bf16.msra.mxu0 %v5514_v10 }
 0x183   :  { %3191 = vmatprep.subr.bf16.mxu0 %v3126_v50  ;;  %3133 = vmatpush3.bf16.msra.mxu1 %v3130_v16 }
 0x184   :  { %2851 = vmatmul.mubr.msk.f32.gmra.mrb[16].mxu1 %vm1211_vm10, %v5524_v44  ;;  %3135 = vmatprep.subr.bf16.mxu1 %v3134_v35 }
 0x185   :  { %3000 = vmatmul.mubr.msk.f32.gmra.mrb[18].mxu0 %vm1211_vm10, %v5523_v63  ;;  %2853 = vmatprep.mubr.msk.f32.mxu1 %vm3354_vm0, %v5422_v11 }
 0x186   :  { %3002 = vmatprep.mubr.msk.f32.mxu0 %vm1211_vm10, %v5525_v24  ;;  %3193 = vmatpush3.bf16.msra.mxu0 %v3126_v50 }
 0x187   :  { %3195 = vmatprep.subr.bf16.mxu0 %v3130_v16  ;;  %3137 = vmatpush3.bf16.msra.mxu1 %v3134_v35 }
 0x188   :  { %2854 = vmatmul.mubr.msk.f32.gmra.mrb[18].mxu1 %vm1211_vm10, %v5526_v42 }
 0x189   :  { %3003 = vmatmul.mubr.msk.f32.gmra.mrb[20].mxu0 %vm1211_vm10, %v4800_v15  ;;  %2856 = vmatprep.mubr.msk.f32.mxu1 %vm3354_vm0, %v5422_v11  ;;  %v5527_v15 = vmov 0.0|0.0  }
 0x18a   :  { %3005 = vmatprep.mubr.msk.f32.mxu0 %vm1211_vm10, %v4824_v12  ;;  %3197 = vmatpush3.bf16.msra.mxu0 %v3130_v16  ;;  %v1141_v12 = vmax.f32 %v1132_v19, %v5001_v1 }
 0x18b   :  { %3199 = vmatprep.subr.bf16.mxu0 %v3134_v35  ;;  %3202 = vmatprep.subr.bf16.mxu1 %v5527_v15 }
 0x18c   :  { %2857 = vmatmul.mubr.msk.f32.gmra.mrb[20].mxu1 %vm1211_vm10, %v4853_v33 }
 0x18d   :  { %3006 = vmatmul.mubr.msk.f32.gmra.mrb[22].mxu0 %vm1211_vm10, %v4902_v55  ;;  %2859 = vmatprep.mubr.msk.f32.mxu1 %vm3354_vm0, %v5422_v11 }
 0x18e   :  { %3201 = vmatpush3.bf16.msra.mxu0 %v3134_v35  ;;  %3024 = vmatprep.mubr.msk.f32.mxu0 %vm1211_vm10, %v1134_v62 }
 0x190   :  { %2860 = vmatmul.mubr.msk.f32.gmra.mrb[22].mxu1 %vm1211_vm10, %v4968_v34 }
 0x191   :  { %3025 = vmatmul.mubr.msk.f32.vlgmr.msra.gmra.mrb[16].mxu0 %vm1211_vm10, %v5521_v39  ;;  %2862 = vmatprep.mubr.msk.f32.mxu1 %vm3354_vm0, %v5422_v11 }
 0x192   :  { %3027 = vmatprep.mubr.msk.f32.mxu0 %vm1211_vm10, %v5524_v44 }
 0x194   :  { %2863 = vmatmul.mubr.msk.f32.gmra.mrb[24].mxu1 %vm1211_vm10, %v4973_v5 }
 0x195   :  { %3028 = vmatmul.mubr.msk.f32.gmra.mrb[18].mxu0 %vm1211_vm10, %v5526_v42  ;;  %2865 = vmatprep.mubr.msk.f32.mxu1 %vm3354_vm0, %v5422_v11 }
 0x196   :  { %3030 = vmatprep.mubr.msk.f32.mxu0 %vm1211_vm10, %v4853_v33 }
 0x198   :  { %2866 = vmatmul.mubr.msk.f32.gmra.mrb[26].mxu1 %vm1211_vm10, %v1141_v12 }
 0x199   :  { %3031 = vmatmul.mubr.msk.f32.gmra.mrb[20].mxu0 %vm1211_vm10, %v4968_v34  ;;  %2912 = vmatprep.mubr.msk.f32.mxu1 %vm1211_vm10, %v5485_v28 }
 0x19a   :  { %3033 = vmatprep.mubr.msk.f32.mxu0 %vm1211_vm10, %v4973_v5 }
 0x19c   :  { %2913 = vmatmul.mubr.msk.f32.vlgmr.msra.gmra.mrb[28].mxu1 %vm1211_vm10, %v5487_v57 }
 0x19d   :  { %3034 = vmatmul.mubr.msk.f32.gmra.mrb[22].mxu0 %vm1211_vm10, %v1141_v12  ;;  %2915 = vmatprep.mubr.msk.f32.mxu1 %vm1211_vm10, %v5490_v54 }
 0x1a0   :  { %2916 = vmatmul.mubr.msk.f32.gmra.mrb[30].mxu1 %vm1211_vm10, %v5494_v52 }
 0x1a1   :  { %2918 = vmatprep.mubr.msk.f32.mxu1 %vm1211_vm10, %v5496_v18 }
 0x1a4   :  { %2919 = vmatmul.mubr.msk.f32.gmra.mrb[32].mxu1 %vm1211_vm10, %v4860_v13 }
 0x1a5   :  { %2921 = vmatprep.mubr.msk.f32.mxu1 %vm1211_vm10, %v4961_v29 }
 0x1a8   :  { %2922 = vmatmul.mubr.msk.f32.gmra.mrb[34].mxu1 %vm1211_vm10, %v4990_v26  ;;  %v1305_v33 = vpop.f32.mrb[0].mxu0  ;;  %v2346_v26 = vld [vmem:[%s5317_s5] sm:$0xff] }
 0x1a9   :  { %3068 = vmatprep.mubr.msk.f32.mxu1 %vm3354_vm0, %v5422_v11  ;;  %v2800_v4 = vpop.f32.mrb[1].mxu0  ;;  %v3203_v40 = vpack.c.bf16 %v2347_v49, %v2346_v26 }
 0x1ab   :  { %3204 = vmatpush3.bf16.msra.mxu1 %v3203_v40 }
 0x1ac   :  { %v1310_v55 = vpop.f32.mrb[2].mxu0  ;;  %3205 = vmatprep.subr.bf16.mxu1 %v5527_v15 }
 0x1ad   :  { %v2803_v28 = vpop.f32.mrb[3].mxu0 }
 0x1af   :  { %3207 = vmatpush3.bf16.msra.mxu1 %v3206_v48 }
 0x1b0   :  { %3208 = vmatprep.subr.bf16.mxu1 %v5527_v15 }
 0x1b3   :  { %3210 = vmatpush3.bf16.msra.mxu1 %v3209_v60 }
 0x1b4   :  { %3211 = vmatprep.subr.bf16.mxu1 %v5527_v15 }
 0x1b7   :  { %3213 = vmatpush3.bf16.msra.mxu1 %v3212_v45 }
 0x1b8   :  { %v1315_v57 = vpop.f32.mrb[4].mxu0  ;;  %3214 = vmatprep.subr.bf16.mxu1 %v5527_v15 }
 0x1b9   :  { %v2806_v54 = vpop.f32.mrb[5].mxu0 }
 0x1bb   :  { %3216 = vmatpush3.bf16.msra.mxu1 %v3215_v58 }
 0x1bc   :  { %v1320_v52 = vpop.f32.mrb[6].mxu0  ;;  %3217 = vmatprep.subr.bf16.mxu1 %v5527_v15 }
 0x1bd   :  { %v2809_v18 = vpop.f32.mrb[7].mxu0 }
 0x1c0   :  { %v2886_v34 = vpop.f32.mrb[8].mxu0 }
 0x1c1   :  { %v1599_v5 = vpop.f32.mrb[9].mxu0 }
 0x1d8   :  { %v5138_v13 = vpop.f32.mrb[10].mxu0 }
 0x1d9   :  { %v5140_v14 = vpop.f32.mrb[11].mxu0 }
 0x1e0   :  { %v1325_v29 = vpop.f32.mrb[0].mxu1 }
 0x1e1   :  { %v2812_v19 = vpop.f32.mrb[1].mxu1 }
 0x215   :  { %v5168_v1 = vpop.f32.mrb[12].mxu0 }
 0x216   :  { %v1619_v36 = vpop.f32.mrb[13].mxu0 }
 0x21f   :  { %v1330_v37 = vpop.f32.mrb[2].mxu1 }
 0x220   :  { %v2815_v23 = vpop.f32.mrb[3].mxu1 }
 0x22c   :  { %v5179_v46 = vpop.f32.mrb[14].mxu0 }
 0x22d   :  { %v1629_v27 = vpop.f32.mrb[15].mxu0 }
 0x236   :  { %v1335_v20 = vpop.f32.mrb[4].mxu1 }
 0x237   :  { %v2818_v22 = vpop.f32.mrb[5].mxu1 }
 0x23b   :  { %v1340_v30 = vpop.f32.mrb[6].mxu1 }
 0x23c   :  { %v2821_v59 = vpop.f32.mrb[7].mxu1 }
 0x247   :  { %v1345_v50 = vpop.f32.mrb[8].mxu1 }
 0x248   :  { %v2824_v21 = vpop.f32.mrb[9].mxu1 }
 0x24b   :  { %v1442_v10 = vpop.f32.mrb[10].mxu1 }
 0x24c   :  { %v1443_v6 = vadd.f32 %v1442_v10, %v1305_v33  ;;  %v2843_v41 = vpop.f32.mrb[11].mxu1 }
 0x24e   :  { %v5187_v31 = vadd.f32 %v5184_v32, %v1443_v6 }
 0x24f   :  { %v1447_v62 = vpop.f32.mrb[12].mxu1 }
 0x250   :  { %v1448_v9 = vadd.f32 %v1447_v62, %v1310_v55  ;;  %v2846_v8 = vpop.f32.mrb[13].mxu1 }
 0x252   :  { %v1493_v2 = vadd.f32 %v5184_v32, %v1448_v9 }
 0x253   :  { %v1452_v17 = vpop.f32.mrb[14].mxu1 }
 0x254   :  { %v1453_v39 = vadd.f32 %v1452_v17, %v1315_v57  ;;  %v2849_v0 = vpop.f32.mrb[15].mxu1  ;;  %v1639_v16 = vadd.f32 %v1599_v5, %v1493_v2 }
 0x256   :  { %v1494_v43 = vadd.f32 %v5184_v32, %v1453_v39 }
 0x257   :  { %v1457_v51 = vpop.f32.mrb[16].mxu1 }
 0x258   :  { %v1458_v63 = vadd.f32 %v1457_v51, %v1320_v52  ;;  %v2852_v44 = vpop.f32.mrb[17].mxu1  ;;  %v5191_v24 = vadd.f32 %v2886_v34, %v1494_v43 }
 0x25a   :  { %v1495_v35 = vadd.f32 %v5184_v32, %v1458_v63 }
 0x25b   :  { %v1462_v42 = vpop.f32.mrb[18].mxu1 }
 0x25c   :  { %v1463_v12 = vadd.f32 %v1462_v42, %v1325_v29  ;;  %v2855_v33 = vpop.f32.mrb[19].mxu1  ;;  %v5195_v4 = vadd.f32 %v5140_v14, %v1495_v35 }
 0x25d   :  { %v2357_v33 = vld [vmem:[%s5317_s5 + $0x58] sm:$0xff] }
 0x25e   :  { %v1496_v55 = vadd.f32 %v5184_v32, %v1463_v12  ;;  %v2356_v12 = vld [vmem:[%s5317_s5 + $0x50] sm:$0xff] }
 0x25f   :  { %v1467_v28 = vpop.f32.mrb[20].mxu1 }
 0x260   :  { %v1468_v57 = vadd.f32 %v1467_v28, %v1330_v37  ;;  %v2858_v54 = vpop.f32.mrb[21].mxu1  ;;  %v5199_v18 = vadd.f32 %v5138_v13, %v1496_v55 }
 0x261   :  { %v3218_v54 = vpack.c.bf16 %v2357_v33, %v2356_v12 }
 0x262   :  { %v1497_v52 = vadd.f32 %v5184_v32, %v1468_v57 }
 0x263   :  { %v1472_v5 = vpop.f32.mrb[22].mxu1  ;;  %3219 = vmatpush3.bf16.msra.mxu1 %v3218_v54 }
 0x264   :  { %v3026_v34 = vpop.f32.mrb[16].mxu0  ;;  %v1473_v26 = vadd.f32 %v1472_v5, %v1335_v20  ;;  %v2861_v49 = vpop.f32.mrb[23].mxu1  ;;  %v5202_v29 = vadd.f32 %v1619_v36, %v1497_v52  ;;  %3220 = vmatprep.subr.bf16.mxu1 %v5527_v15 }
 0x265   :  { %v2210_v19 = vpop.f32.mrb[17].mxu0  ;;  %v2258_v48 = vadd.f32 %v3026_v34, %v5184_v32 }
 0x266   :  { %v2257_v14 = vadd.f32 %v5184_v32, %v2210_v19  ;;  %v1498_v56 = vadd.f32 %v5184_v32, %v1473_v26  ;;  %v2358_v19 = vld [vmem:[%s5317_s5 + $0x60] sm:$0xff]  ;;  %v2359_v26 = vld [vmem:[%s5317_s5 + $0x68] sm:$0xff] }
 0x267   :  { %v1477_v3 = vpop.f32.mrb[24].mxu1  ;;  %vm2266_vm15 = vcmp.gt.f32.partialorder %v2258_v48, 0.0  ;;  %v2274_v22 = vmul.f32 0.2, %v2258_v48 }
 0x268   :  { %v3029_v40 = vpop.f32.mrb[18].mxu0  ;;  %v1478_v13 = vadd.f32 %v1477_v3, %v1340_v30  ;;  %v2864_v7 = vpop.f32.mrb[25].mxu1  ;;  %v5208_v60 = vadd.f32 %v5168_v1, %v1498_v56  ;;  %vm2265_vm1 = vcmp.gt.f32.partialorder %v2257_v14, 0.0  ;;  %v2273_v1 = vmul.f32 0.2, %v2257_v14 }
 0x269   :  { %v2220_v61 = vpop.f32.mrb[19].mxu0  ;;  %v2260_v38 = vadd.f32 %v3029_v40, %v5184_v32  ;;  %v2282_v0 = vsel %vm2266_vm15, %v2258_v48, %v2274_v22  ;;  %v3221_v56 = vpack.c.bf16 %v2359_v26, %v2358_v19  ;;  %v2444_v26 = vld [vmem:[%s5319_s7 + $0x10] sm:$0xff] }
 0x26a   :  { %v2259_v25 = vadd.f32 %v5184_v32, %v2220_v61  ;;  %v1499_v36 = vadd.f32 %v5184_v32, %v1478_v13  ;;  %v2281_v43 = vsel %vm2265_vm1, %v2257_v14, %v2273_v1 }
 0x26b   :  { %v1482_v47 = vpop.f32.mrb[26].mxu1  ;;  %vm2268_vm2 = vcmp.gt.f32.partialorder %v2260_v38, 0.0  ;;  %v2276_v59 = vmul.f32 0.2, %v2260_v38  ;;  %3222 = vmatpush3.bf16.msra.mxu1 %v3221_v56 }
 0x26c   :  { %v3032_v45 = vpop.f32.mrb[20].mxu0  ;;  %v1483_v37 = vadd.f32 %v1482_v47, %v1345_v50  ;;  %v2867_v23 = vpop.f32.mrb[27].mxu1  ;;  %v5214_v20 = vadd.f32 %v1629_v27, %v1499_v36  ;;  %vm2267_vm3 = vcmp.gt.f32.partialorder %v2259_v25, 0.0  ;;  %v2275_v10 = vmul.f32 0.2, %v2259_v25  ;;  %3223 = vmatprep.subr.bf16.mxu1 %v5527_v15 }
 0x26d   :  { %v2262_v53 = vadd.f32 %v3032_v45, %v5184_v32  ;;  %v2230_v58 = vpop.f32.mrb[21].mxu0  ;;  %v5228_v51 = vsel %vm2268_vm2, %v2260_v38, %v2276_v59  ;;  %v2360_v45 = vld [vmem:[%s5317_s5 + $0x70] sm:$0xff] }
 0x26e   :  { %v2261_v30 = vadd.f32 %v5184_v32, %v2230_v58  ;;  %v1500_v21 = vadd.f32 %v5184_v32, %v1483_v37  ;;  %v2283_v63 = vsel %vm2267_vm3, %v2259_v25, %v2275_v10  ;;  %vm2333_vm3 = vcmask 130048  }
 0x26f   :  { %v2278_v6 = vmul.f32 0.2, %v2262_v53  ;;  %v2914_v62 = vpop.f32.mrb[28].mxu1  ;;  %vm2270_vm4 = vcmp.gt.f32.partialorder %v2262_v53, 0.0 }
 0x270   :  { %v3035_v41 = vpop.f32.mrb[22].mxu0  ;;  %v2277_v9 = vmul.f32 0.2, %v2261_v30  ;;  %v5219_v50 = vadd.f32 %v5179_v46, %v1500_v21  ;;  %v1786_v8 = vadd.f32 %v2914_v62, %v1639_v16  ;;  %v1746_v2 = vpop.f32.mrb[29].mxu1  ;;  %vm2269_vm5 = vcmp.gt.f32.partialorder %v2261_v30, 0.0 }
 0x271   :  { %v2240_v27 = vpop.f32.mrb[23].mxu0  ;;  %v5222_v17 = vadd.f32 %v3035_v41, %v5184_v32  ;;  %v1785_v39 = vadd.f32 %v1746_v2, %v5187_v31  ;;  %v5231_v46 = vsel %vm2270_vm4, %v2262_v53, %v2278_v6  ;;  %vm2335_vm4 = vcmask 261120  }
 0x272   :  { %vm1795_vm6 = vcmp.gt.f32.partialorder %v1786_v8, 0.0  ;;  %v1804_v16 = vmul.f32 0.2, %v1786_v8  ;;  %v5233_v44 = vsel %vm2269_vm5, %v2261_v30, %v2277_v9  ;;  %v5236_v35 = vadd.f32 %v5184_v32, %v2240_v27 }
 0x273   :  { %vm1794_vm7 = vcmp.gt.f32.partialorder %v1785_v39, 0.0  ;;  %v1803_v31 = vmul.f32 0.2, %v1785_v39  ;;  %v2917_v42 = vpop.f32.mrb[30].mxu1  ;;  %vm2272_vm8 = vcmp.gt.f32.partialorder %v5222_v17, 0.0  ;;  %vm1802_vm1 = vcmp.gt.f32.partialorder %v5219_v50, 0.0 }
 0x274   :  { %v1813_v55 = vsel %vm1795_vm6, %v1786_v8, %v1804_v16  ;;  %v1788_v28 = vadd.f32 %v2917_v42, %v5195_v4  ;;  %v1756_v57 = vpop.f32.mrb[31].mxu1  ;;  %v2280_v32 = vmul.f32 0.2, %v5222_v17  ;;  %v1811_v40 = vmul.f32 0.2, %v5219_v50 }
 0x275   :  { %v1812_v52 = vsel %vm1794_vm7, %v1785_v39, %v1803_v31  ;;  %v1787_v34 = vadd.f32 %v1756_v57, %v5191_v24  ;;  %v2290_v5 = vmax.f32 %v1813_v55, %v2282_v0  ;;  %vm2271_vm12 = vcmp.gt.f32.partialorder %v5236_v35, 0.0  ;;  %v2443_v57 = vld [vmem:[%s5319_s7 + $0x8] sm:$0xff] }
 0x276   :  { %v2289_v49 = vmax.f32 %v1812_v52, %v2281_v43  ;;  %vm1797_vm9 = vcmp.gt.f32.partialorder %v1788_v28, 0.0  ;;  %v1806_v14 = vmul.f32 0.2, %v1788_v28  ;;  %v2279_v37 = vmul.f32 0.2, %v5236_v35 }
 0x277   :  { %v2920_v4 = vpop.f32.mrb[32].mxu1  ;;  %vm1796_vm11 = vcmp.gt.f32.partialorder %v1787_v34, 0.0  ;;  %v1805_v3 = vmul.f32 0.2, %v1787_v34  ;;  %vm2337_vm5 = vcmask 392192   ;;  %vm2340_vm6 = vcmask 654336  }
 0x278   :  { %v1790_v24 = vadd.f32 %v2920_v4, %v5202_v29  ;;  %v1766_v48 = vpop.f32.mrb[33].mxu1  ;;  %v1815_v13 = vsel %vm1797_vm9, %v1788_v28, %v1806_v14  ;;  %v2297_v7 = vmax.f32 %v2289_v49, %v1813_v55  ;;  %v2361_v29 = vld [vmem:[%s5317_s5 + $0x78] sm:$0xff]  ;;  %s3357_s5 = smov 32   ;;  %v2287_v2 = vsel %vm2271_vm12, %v5236_v35, %v2279_v37  ;;  %v2442_v28 = vld [vmem:[%s5319_s7] sm:$0xff] }
 0x279   :  { %v1789_v61 = vadd.f32 %v1766_v48, %v5199_v18  ;;  %v1814_v25 = vsel %vm1796_vm11, %v1787_v34, %v1805_v3  ;;  %v2292_v36 = vmax.f32 %v1815_v13, %v5228_v51  ;;  %v3224_v30 = vpack.c.bf16 %v2361_v29, %v2360_v45  ;;  %v2445_v49 = vld [vmem:[%s5319_s7 + $0x18] sm:$0xff]  ;;  %v2627_v4 = vld [vmem:[%s5320_s6] ss:$0 sm:$0xff] }
 0x27a   :  { %vm1799_vm13 = vcmp.gt.f32.partialorder %v1790_v24, 0.0  ;;  %v1808_v38 = vmul.f32 0.2, %v1790_v24  ;;  %v2298_v58 = vmax.f32 %v2290_v5, %v1814_v25  ;;  %v2291_v18 = vmax.f32 %v1814_v25, %v2283_v63 }
 0x27b   :  { %vm1798_vm14 = vcmp.gt.f32.partialorder %v1789_v61, 0.0  ;;  %v1807_v47 = vmul.f32 0.2, %v1789_v61  ;;  %v2923_v53 = vpop.f32.mrb[34].mxu1  ;;  %3225 = vmatpush3.bf16.msra.mxu1 %v3224_v30  ;;  %v1820_v63 = vsel %vm1802_vm1, %v5219_v50, %v1811_v40  ;;  %vm2342_vm7 = vcmask 785408  }
 0x27c   :  { %v1792_v23 = vadd.f32 %v2923_v53, %v5214_v20  ;;  %v1776_v22 = vpop.f32.mrb[35].mxu1  ;;  %v1817_v1 = vsel %vm1799_vm13, %v1790_v24, %v1808_v38  ;;  %2306 = vrot.lane.b32.xlu1 %v2298_v58, %s3356_s30  ;;  %v2299_v21 = vmax.f32 %v2291_v18, %v1815_v13  ;;  %3226 = vmatprep.subr.bf16.mxu1 %v5527_v15  ;;  %v2628_v24 = vld [vmem:[%s5321_s8] ss:$0 sm:$0xff] }
 0x27d   :  { %v1791_v59 = vadd.f32 %v1776_v22, %v5208_v60  ;;  %v1816_v10 = vsel %vm1798_vm14, %v1789_v61, %v1807_v47  ;;  %v2294_v6 = vmax.f32 %v1817_v1, %v5231_v46  ;;  %v2288_v60 = vsel %vm2272_vm8, %v5222_v17, %v2280_v32 }
 0x27e   :  { %vm1801_vm15 = vcmp.gt.f32.partialorder %v1792_v23, 0.0  ;;  %v1810_v41 = vmul.f32 0.2, %v1792_v23  ;;  %v2300_v62 = vmax.f32 %v2292_v36, %v1816_v10  ;;  %v2293_v9 = vmax.f32 %v1816_v10, %v5233_v44  ;;  %2310 = vrot.lane.b32.xlu0 %v2299_v21, %s3357_s5 }
 0x27f   :  { %vm1800_vm2 = vcmp.gt.f32.partialorder %v1791_v59, 0.0  ;;  %v1809_v20 = vmul.f32 0.2, %v1791_v59  ;;  %vm2344_vm8 = vcmask 916480   ;;  %v3227_v34 = vpack.c.bf16 %v2443_v57, %v2442_v28 }
 0x280   :  { %v2301_v27 = vmax.f32 %v2293_v9, %v1817_v1  ;;  %v1819_v8 = vsel %vm1801_vm15, %v1792_v23, %v1810_v41  ;;  %2314 = vrot.lane.b32.xlu1 %v2300_v62, %s3358_s2  ;;  %v3230_v14 = vpack.c.bf16 %v2445_v49, %v2444_v26 }
 0x281   :  { %v1818_v39 = vsel %vm1800_vm2, %v1791_v59, %v1809_v20  ;;  %v2296_v0 = vmax.f32 %v1819_v8, %v2288_v60 }
 0x282   :  { %v2302_v43 = vmax.f32 %v2294_v6, %v1818_v39  ;;  %v2295_v51 = vmax.f32 %v1818_v39, %v2287_v2  ;;  %2318 = vrot.lane.b32.xlu0 %v2301_v27, %s3359_s10 }
 0x283   :  { %v2304_v17 = vmax.f32 %v2296_v0, %v1820_v63 }
 0x284   :  { %v2303_v46 = vmax.f32 %v2295_v51, %v1819_v8  ;;  %2322 = vrot.lane.b32.xlu1 %v2302_v43, %s3360_s11 }
 0x286   :  { %2326 = vrot.lane.b32.xlu0 %v2303_v46, %s3361_s12 }
 0x288   :  { %2330 = vrot.lane.b32.xlu1 %v2304_v17, %s3362_s13 }
 0x2ee   :  { %v2307_v16 = vpop.permute.xlu1 %2306 }
 0x2ef   :  { %v2334_v44 = vsel %vm2333_vm3, %v2297_v7, %v2307_v16 }
 0x2f0   :  { %v2311_v35 = vpop.permute.xlu0 %2310 }
 0x2f1   :  { %v2336_v31 = vsel %vm2335_vm4, %v2334_v44, %v2311_v35 }
 0x2f2   :  { %v2315_v50 = vpop.permute.xlu1 %2314 }
 0x2f3   :  { %v2338_v42 = vsel %vm2337_vm5, %v2336_v31, %v2315_v50 }
 0x2f4   :  { %v2319_v12 = vpop.permute.xlu0 %2318 }
 0x2f5   :  { %v2339_v33 = vsel %vm1211_vm10, %v2338_v42, %v2319_v12 }
 0x2f6   :  { %v2323_v55 = vpop.permute.xlu1 %2322 }
 0x2f7   :  { %v2341_v54 = vsel %vm2340_vm6, %v2339_v33, %v2323_v55 }
 0x2f8   :  { %v2327_v32 = vpop.permute.xlu0 %2326 }
 0x2f9   :  { %v2343_v52 = vsel %vm2342_vm7, %v2341_v54, %v2327_v32 }
 0x2fa   :  { %v2331_v5 = vpop.permute.xlu1 %2330 }
 0x2fb   :  { %v2345_v19 = vsel %vm2344_vm8, %v2343_v52, %v2331_v5 }
 0x2fc   :  { %3069 = vmatmul.mubr.f32.vlgmr.msra.gmra.mrb[36].mxu1 %v2345_v19 }
 0x2fd   :  { %3228 = vmatpush3.bf16.msra.mxu1 %v3227_v34  ;;  %3079 = vmatprep.mubr.msk.f32.mxu1 %vm3354_vm0, %v5422_v11 }
 0x2fe   :  { %3229 = vmatprep.subr.bf16.mxu1 %v5527_v15 }
 0x301   :  { %3231 = vmatpush3.bf16.msra.mxu1 %v3230_v14 }
 0x3cf   :  { %v2435_v56 = vpop.f32.mrb[36].mxu1 }
 0x3d0   :  { %v2436_v40 = vadd.f32 %v2627_v4, %v2435_v56  ;;  %v3070_v3 = vpop.f32.mrb[37].mxu1 }
 0x3d2   :  { %vm2439_vm0 = vcmp.gt.f32.partialorder %v2436_v40, 0.0  ;;  %v2440_v11 = vmul.f32 0.2, %v2436_v40 }
 0x3d4   :  { %v2441_v15 = vsel %vm2439_vm0, %v2436_v40, %v2440_v11 }
 0x3d5   :  { %3080 = vmatmul.mubr.msk.f32.vlgmr.msra.gmra.mrb[38].mxu1 %vm2335_vm4, %v2441_v15 }
 0x4a8   :  { %v2522_v48 = vpop.f32.mrb[38].mxu1 }
 0x4a9   :  { %v2523_v61 = vadd.f32 %v2628_v24, %v2522_v48  ;;  %v3081_v13 = vpop.f32.mrb[39].mxu1 }
 0x4ab   :  { %2526 = vst.msk [vmem:[%s5322_s9] sm:$0xff] %vm2333_vm3, %v2523_v61 }

</bundles_post_ra>
